<compile_context>
chip_gen: v7x
topology: tpu7x:2x2x1
jax: 0.10.0
libtpu: 0.0.40
codegen_flags: <defaults>
</compile_context>

<pallas_src>
import functools

import jax
import jax.numpy as jnp
from jax.experimental import pallas as pl
from jax.experimental.pallas import tpu as pltpu


# ----------------------------------------------------------------------------
# Prologue kernel (once per layer): projections for all heads.
#   z  = x @ W_packed      (N, H*F), stored bf16
#   el = x @ wal           (N, H)
#   er = x @ war           (N, H)
# ----------------------------------------------------------------------------
def _gat_project_kernel(x_ref, wz_ref, wl_ref, wr_ref, z_ref, el_ref, er_ref):
    x = x_ref[...]                                               # (TM, Din)
    z = jnp.dot(x, wz_ref[...], preferred_element_type=jnp.float32)
    z_ref[...] = z.astype(z_ref.dtype)                           # bf16 store
    el_ref[...] = jnp.dot(x, wl_ref[...], preferred_element_type=jnp.float32)
    er_ref[...] = jnp.dot(x, wr_ref[...], preferred_element_type=jnp.float32)


# ----------------------------------------------------------------------------
# Main kernel: attention scores + masked softmax + aggregation for one block
# of TM destination rows (all heads fused).
# ----------------------------------------------------------------------------
def _gat_attn_kernel(z_ref, elt_ref, er_ref, b_ref, adjm_ref, out_ref, *,
                     num_heads, feat, reduce_mean_relu):
    z = z_ref[...]                                   # (N, H*F) bf16, resident
    elt = elt_ref[...]                               # (H, N)  f32 (src scores)
    er = er_ref[...]                                 # (TM, H) f32 (dst scores)
    edge = adjm_ref[...].astype(jnp.float32) > 0.0   # (TM, N) edge mask
    neg_inf = jnp.float32(-1e30)

    acc = None
    for h in range(num_heads):                       # static unroll (H small)
        f0 = h * feat
        # e[v, u] = LeakyReLU(er[v] + el[u]), masked to edges u -> v
        e = er[:, h:h + 1] + elt[h:h + 1, :]                     # (TM, N)
        e = jnp.where(e > 0, e, 0.2 * e)
        e = jnp.where(edge, e, neg_inf)
        # softmax over incoming edges; normalize AFTER the aggregation matmul
        m = jnp.max(e, axis=-1, keepdims=True)
        p = jnp.exp(e - m)
        s = jnp.sum(p, axis=-1, keepdims=True)
        agg = jnp.dot(p.astype(jnp.bfloat16), z[:, f0:f0 + feat],
                      preferred_element_type=jnp.float32)        # (TM, F)
        out_h = agg * pl.reciprocal(s, approx=True)
        if reduce_mean_relu:
            acc = out_h if acc is None else acc + out_h
        else:
            # Direct static-slice store per head (no concatenate / relayout).
            out_ref[:, f0:f0 + feat] = out_h + b_ref[:, f0:f0 + feat]

    if reduce_mean_relu:
        # Fused inter-layer epilogue: mean over heads + bias + ReLU.
        out = acc * (1.0 / num_heads) + b_ref[...]               # (TM, F)
        out_ref[...] = jnp.maximum(out, 0.0)


def _pick_block_m(n, requested=None):
    """Generation-aware dst-row block: big blocks amortize grid overhead and
    fill the 256-wide MXU (v6e/v7x); cap at 128 for huge graphs so the (TM,N)
    f32 softmax temporaries stay inside a 64 MiB (v7x) VMEM budget."""
    if requested is not None:
        return max(1, min(requested, n))
    cap = 128 if n > 8192 else 256
    tm = min(cap, n)
    if tm >= 8:
        tm -= tm % 8
    return max(tm, 1)


def gat_conv_layer(x, w, al, ar, b, adj_mask, *, reduce_mean_relu,
                   block_m=None):
    """One fused GATConv layer.

    x: (N, Din), w: (H, Din, F), al/ar/b: (H, 1, F),
    adj_mask: (N, N) int8 (1 where edge, 0 where not, indexed [dst, src]).
    Returns (N, F) (mean over heads + ReLU) if reduce_mean_relu else (N, H*F).
    """
    H, Din, F = w.shape
    N = x.shape[0]
    TM = _pick_block_m(N, block_m)
    nblk = pl.cdiv(N, TM)

    # ---- host-side, parameter-only packing --------------------------------
    w_packed = jnp.transpose(w, (1, 0, 2)).reshape(Din, H * F)   # (Din, H*F)
    wal = jnp.einsum("hdf,hf->dh", w, al[:, 0, :])               # (Din, H)
    war = jnp.einsum("hdf,hf->dh", w, ar[:, 0, :])               # (Din, H)
    if reduce_mean_relu:
        b_layer = jnp.mean(b[:, 0, :], axis=0, keepdims=True)    # (1, F)
        out_dim = F
    else:
        b_layer = b[:, 0, :].reshape(1, H * F)                   # (1, H*F)
        out_dim = H * F

    # ---- prologue: z / el / er computed ONCE (not per dst block) ----------
    z, el, er = pl.pallas_call(
        _gat_project_kernel,
        out_shape=(jax.ShapeDtypeStruct((N, H * F), jnp.bfloat16),
                   jax.ShapeDtypeStruct((N, H), jnp.float32),
                   jax.ShapeDtypeStruct((N, H), jnp.float32)),
        grid_spec=pltpu.PrefetchScalarGridSpec(
            num_scalar_prefetch=0,
            grid=(nblk,),
            in_specs=[
                pl.BlockSpec((TM, Din), lambda i: (i, 0)),       # x row block
                pl.BlockSpec((Din, H * F), lambda i: (0, 0)),    # packed W
                pl.BlockSpec((Din, H), lambda i: (0, 0)),        # W @ attn_l
                pl.BlockSpec((Din, H), lambda i: (0, 0)),        # W @ attn_r
            ],
            out_specs=(
                pl.BlockSpec((TM, H * F), lambda i: (i, 0)),
                pl.BlockSpec((TM, H), lambda i: (i, 0)),
                pl.BlockSpec((TM, H), lambda i: (i, 0)),
            ),
        ),
        compiler_params=pltpu.CompilerParams(
            dimension_semantics=("parallel",)),
    )(x, w_packed, wal, war)

    # Tiny (N, H) -> (H, N) transpose (lane-dense src scores for the in-kernel
    # broadcast) done in XLA; negligible next to the O(N^2) attention work.
    el_t = el.T

    kernel = functools.partial(_gat_attn_kernel, num_heads=H, feat=F,
                               reduce_mean_relu=reduce_mean_relu)

    cost = pl.CostEstimate(
        flops=int(2 * H * N * N * F          # aggregation matmuls
                  + 12 * H * N * N),         # softmax / mask elementwise
        transcendentals=int(H * N * N),
        bytes_accessed=int(2 * N * H * F     # bf16 z (resident)
                           + N * N           # int8 adjacency stream
                           + 8 * N * H       # el / er
                           + 4 * N * out_dim),
    )

    # Explicit VMEM budget: above the 16/32 MiB scoped defaults, below v7x's
    # 64 MiB physical VMEM.
    vmem_limit = 48 * 1024 * 1024

    return pl.pallas_call(
        kernel,
        out_shape=jax.ShapeDtypeStruct((N, out_dim), jnp.float32),
        grid_spec=pltpu.PrefetchScalarGridSpec(
            num_scalar_prefetch=0,
            grid=(nblk,),
            in_specs=[
                pl.BlockSpec((N, H * F), lambda i: (0, 0)),      # z (bf16)
                pl.BlockSpec((H, N), lambda i: (0, 0)),          # el^T
                pl.BlockSpec((TM, H), lambda i: (i, 0)),         # er (dst blk)
                pl.BlockSpec((1, out_dim), lambda i: (0, 0)),    # bias
                pl.BlockSpec((TM, N), lambda i: (i, 0)),         # adj int8
            ],
            out_specs=pl.BlockSpec((TM, out_dim), lambda i: (i, 0)),
        ),
        compiler_params=pltpu.CompilerParams(
            dimension_semantics=("parallel",),
            vmem_limit_bytes=vmem_limit),
        cost_estimate=cost,
    )(z, el_t, er, b_layer, adj_mask)


def gat_forward(x, adj, params):
    """Full GAT forward (matches GAT.forward / test_forward)."""
    # int8 0/1 edge mask, computed once and shared by all layers.
    adj_mask = (adj > 0).astype(jnp.int8)
    h = x
    num_layers = len(params)
    for i, p in enumerate(params):
        last = (i == num_layers - 1)
        h = gat_conv_layer(h, p["w"], p["al"], p["ar"], p["b"], adj_mask,
                           reduce_mean_relu=not last)
    return h


# ----------------------------------------------------------------------------
# Pure-JAX reference (dense), for correctness checking.
# ----------------------------------------------------------------------------
def _gat_conv_ref(x, w, al, ar, b, adj):
    z = jnp.einsum("nd,hdf->hnf", x, w)
    el = jnp.einsum("hnf,hof->hn", z, al)
    er = jnp.einsum("hnf,hof->hn", z, ar)
    e = er[:, :, None] + el[:, None, :]
    e = jnp.where(e > 0, e, 0.2 * e)
    e = jnp.where(adj[None] > 0, e, -1e30)
    e = e - jnp.max(e, axis=-1, keepdims=True)
    p = jnp.exp(e)
    alpha = p / jnp.sum(p, axis=-1, keepdims=True)
    return jnp.einsum("hvu,huf->hvf", alpha, z) + b


def _gat_forward_ref(x, adj, params):
    h = x
    num_layers = len(params)
    for i, p in enumerate(params):
        out = _gat_conv_ref(h, p["w"], p["al"], p["ar"], p["b"], adj)
        if i == num_layers - 1:
            H, N, F = out.shape
            h = jnp.transpose(out, (1, 0, 2)).reshape(N, H * F)
            break
        h = jnp.maximum(jnp.mean(out, axis=0), 0.0)
    return h


# ----------------------------------------------------------------------------
# Deterministic parameter / input construction.
# ----------------------------------------------------------------------------
def make_params(key, in_size, hid_size, out_size, heads, num_layers):
    params = []
    dims = []
    if num_layers > 1:
        dims.append((in_size, hid_size, heads))
        for _ in range(num_layers - 2):
            dims.append((hid_size, hid_size, heads))
        dims.append((hid_size, out_size, 1))
    else:
        dims.append((in_size, out_size, heads))
    for (din, f, h) in dims:
        key, kw, kl, kr = jax.random.split(key, 4)
        params.append({
            "w": 0.1 * jax.random.normal(kw, (h, din, f), jnp.float32),
            "al": 0.1 * jax.random.normal(kl, (h, 1, f), jnp.float32),
            "ar": 0.1 * jax.random.normal(kr, (h, 1, f), jnp.float32),
            "b": jnp.zeros((h, 1, f), jnp.float32),
        })
    return params


if __name__ == "__main__":
    N = 128           # number of graph nodes
    in_size = 16
    hid_size = 32
    out_size = 16
    heads = 4
    num_layers = 2

    key = jax.random.PRNGKey(0)
    kx, kg, kp = jax.random.split(key, 3)

    # Node features and a random sparse graph with self-loops (adj[dst, src]).
    x = jax.random.normal(kx, (N, in_size), jnp.float32)
    adj = (jax.random.uniform(kg, (N, N)) < 0.1).astype(jnp.float32)
    adj = jnp.maximum(adj, jnp.eye(N, dtype=jnp.float32))

    params = make_params(kp, in_size, hid_size, out_size, heads, num_layers)

    fwd = jax.jit(gat_forward)
    out = jax.block_until_ready(fwd(x, adj, params))

    ref = _gat_forward_ref(x, adj, params)
    assert out.shape == (N, out_size), out.shape
    # bf16 MXU operands (z and the softmax weights) -> loosened tolerance.
    assert jnp.allclose(out, ref, atol=2e-2, rtol=2e-2), (
        float(jnp.max(jnp.abs(out - ref))))

    print("KERNEL_OK")
</pallas_src>

<mosaic_0001>
module attributes {stable_mosaic.version = 11 : i64} {
  func.func @_gat_project_kernel(%arg0: i32, %arg1: memref<128x16xf32, #tpu.memory_space<vmem>>, %arg2: memref<16x128xf32, #tpu.memory_space<vmem>>, %arg3: memref<16x4xf32, #tpu.memory_space<vmem>>, %arg4: memref<16x4xf32, #tpu.memory_space<vmem>>, %arg5: memref<128x128xbf16, #tpu.memory_space<vmem>>, %arg6: memref<128x4xf32, #tpu.memory_space<vmem>>, %arg7: memref<128x4xf32, #tpu.memory_space<vmem>>) attributes {dimension_semantics = [#tpu.dimension_semantics<parallel>], iteration_bounds = array<i64: 1>, scalar_prefetch = 0 : i64, scratch_operands = 0 : i64, tpu.core_type = #tpu.core_type<tc>, window_params = [{transform_indices = @transform_0, window_bounds = array<i64: 128, 16>}, {pipeline_mode = #tpu.pipeline_mode<synchronous>, transform_indices = @transform_1, window_bounds = array<i64: 16, 128>}, {pipeline_mode = #tpu.pipeline_mode<synchronous>, transform_indices = @transform_2, window_bounds = array<i64: 16, 4>}, {pipeline_mode = #tpu.pipeline_mode<synchronous>, transform_indices = @transform_3, window_bounds = array<i64: 16, 4>}, {transform_indices = @transform_4, window_bounds = array<i64: 128, 128>}, {transform_indices = @transform_5, window_bounds = array<i64: 128, 4>}, {transform_indices = @transform_6, window_bounds = array<i64: 128, 4>}]} {
    %c0 = arith.constant 0 : index
    %c0_0 = arith.constant 0 : index
    %0 = vector.load %arg1[%c0, %c0_0] : memref<128x16xf32, #tpu.memory_space<vmem>>, vector<128x16xf32>
    %c0_1 = arith.constant 0 : index
    %c0_2 = arith.constant 0 : index
    %1 = vector.load %arg2[%c0_1, %c0_2] : memref<16x128xf32, #tpu.memory_space<vmem>>, vector<16x128xf32>
    %cst = arith.constant dense<0.000000e+00> : vector<128x128xf32>
    %2 = tpu.matmul %0, %1, %cst {dimension_numbers = #tpu.dot_dimension_numbers<[1], [0], [0], [1], [0, 0, 1, 1], [], []>} : vector<128x16xf32>, vector<16x128xf32>, vector<128x128xf32> -> vector<128x128xf32>
    %3 = arith.truncf %2 : vector<128x128xf32> to vector<128x128xbf16>
    %c0_3 = arith.constant 0 : index
    %c0_4 = arith.constant 0 : index
    %4 = vector.load %arg5[%c0_3, %c0_4] : memref<128x128xbf16, #tpu.memory_space<vmem>>, vector<128x128xbf16>
    tpu.vector_store %arg5[%c0_3, %c0_4], %3 {strides = array<i32>} : memref<128x128xbf16, #tpu.memory_space<vmem>>, vector<128x128xbf16>,
    %c0_5 = arith.constant 0 : index
    %c0_6 = arith.constant 0 : index
    %5 = vector.load %arg3[%c0_5, %c0_6] : memref<16x4xf32, #tpu.memory_space<vmem>>, vector<16x4xf32>
    %cst_7 = arith.constant dense<0.000000e+00> : vector<128x4xf32>
    %6 = tpu.matmul %0, %5, %cst_7 {dimension_numbers = #tpu.dot_dimension_numbers<[1], [0], [0], [1], [0, 0, 1, 1], [], []>} : vector<128x16xf32>, vector<16x4xf32>, vector<128x4xf32> -> vector<128x4xf32>
    %c0_8 = arith.constant 0 : index
    %c0_9 = arith.constant 0 : index
    %7 = vector.load %arg6[%c0_8, %c0_9] : memref<128x4xf32, #tpu.memory_space<vmem>>, vector<128x4xf32>
    tpu.vector_store %arg6[%c0_8, %c0_9], %6 {strides = array<i32>} : memref<128x4xf32, #tpu.memory_space<vmem>>, vector<128x4xf32>,
    %c0_10 = arith.constant 0 : index
    %c0_11 = arith.constant 0 : index
    %8 = vector.load %arg4[%c0_10, %c0_11] : memref<16x4xf32, #tpu.memory_space<vmem>>, vector<16x4xf32>
    %cst_12 = arith.constant dense<0.000000e+00> : vector<128x4xf32>
    %9 = tpu.matmul %0, %8, %cst_12 {dimension_numbers = #tpu.dot_dimension_numbers<[1], [0], [0], [1], [0, 0, 1, 1], [], []>} : vector<128x16xf32>, vector<16x4xf32>, vector<128x4xf32> -> vector<128x4xf32>
    %c0_13 = arith.constant 0 : index
    %c0_14 = arith.constant 0 : index
    %10 = vector.load %arg7[%c0_13, %c0_14] : memref<128x4xf32, #tpu.memory_space<vmem>>, vector<128x4xf32>
    tpu.vector_store %arg7[%c0_13, %c0_14], %9 {strides = array<i32>} : memref<128x4xf32, #tpu.memory_space<vmem>>, vector<128x4xf32>,
    return
  }
  func.func @transform_0(%arg0: i32) -> (i32, i32) {
    %c0_i32 = arith.constant 0 : i32
    %c0_i32_0 = arith.constant 0 : i32
    return %arg0, %c0_i32 : i32, i32
  }
  func.func @transform_1(%arg0: i32) -> (i32, i32) {
    %c0_i32 = arith.constant 0 : i32
    %c0_i32_0 = arith.constant 0 : i32
    %c0_i32_1 = arith.constant 0 : i32
    return %c0_i32, %c0_i32_0 : i32, i32
  }
  func.func @transform_2(%arg0: i32) -> (i32, i32) {
    %c0_i32 = arith.constant 0 : i32
    %c0_i32_0 = arith.constant 0 : i32
    %c0_i32_1 = arith.constant 0 : i32
    return %c0_i32, %c0_i32_0 : i32, i32
  }
  func.func @transform_3(%arg0: i32) -> (i32, i32) {
    %c0_i32 = arith.constant 0 : i32
    %c0_i32_0 = arith.constant 0 : i32
    %c0_i32_1 = arith.constant 0 : i32
    return %c0_i32, %c0_i32_0 : i32, i32
  }
  func.func @transform_4(%arg0: i32) -> (i32, i32) {
    %c0_i32 = arith.constant 0 : i32
    %c0_i32_0 = arith.constant 0 : i32
    return %arg0, %c0_i32 : i32, i32
  }
  func.func @transform_5(%arg0: i32) -> (i32, i32) {
    %c0_i32 = arith.constant 0 : i32
    %c0_i32_0 = arith.constant 0 : i32
    return %arg0, %c0_i32 : i32, i32
  }
  func.func @transform_6(%arg0: i32) -> (i32, i32) {
    %c0_i32 = arith.constant 0 : i32
    %c0_i32_0 = arith.constant 0 : i32
    return %arg0, %c0_i32 : i32, i32
  }
}

module attributes {stable_mosaic.version = 11 : i64} {
  func.func @_gat_attn_kernel(%arg0: i32, %arg1: memref<128x128xbf16, #tpu.memory_space<vmem>>, %arg2: memref<4x128xf32, #tpu.memory_space<vmem>>, %arg3: memref<128x4xf32, #tpu.memory_space<vmem>>, %arg4: memref<1x32xf32, #tpu.memory_space<vmem>>, %arg5: memref<128x128xi8, #tpu.memory_space<vmem>>, %arg6: memref<128x32xf32, #tpu.memory_space<vmem>>) attributes {dimension_semantics = [#tpu.dimension_semantics<parallel>], iteration_bounds = array<i64: 1>, scalar_prefetch = 0 : i64, scratch_operands = 0 : i64, tpu.core_type = #tpu.core_type<tc>, window_params = [{pipeline_mode = #tpu.pipeline_mode<synchronous>, transform_indices = @transform_0, window_bounds = array<i64: 128, 128>}, {pipeline_mode = #tpu.pipeline_mode<synchronous>, transform_indices = @transform_1, window_bounds = array<i64: 4, 128>}, {transform_indices = @transform_2, window_bounds = array<i64: 128, 4>}, {pipeline_mode = #tpu.pipeline_mode<synchronous>, transform_indices = @transform_3, window_bounds = array<i64: 1, 32>}, {transform_indices = @transform_4, window_bounds = array<i64: 128, 128>}, {transform_indices = @transform_5, window_bounds = array<i64: 128, 32>}]} {
    %c0 = arith.constant 0 : index
    %c0_0 = arith.constant 0 : index
    %0 = vector.load %arg1[%c0, %c0_0] : memref<128x128xbf16, #tpu.memory_space<vmem>>, vector<128x128xbf16>
    %c0_1 = arith.constant 0 : index
    %c0_2 = arith.constant 0 : index
    %1 = vector.load %arg2[%c0_1, %c0_2] : memref<4x128xf32, #tpu.memory_space<vmem>>, vector<4x128xf32>
    %c0_3 = arith.constant 0 : index
    %c0_4 = arith.constant 0 : index
    %2 = vector.load %arg3[%c0_3, %c0_4] : memref<128x4xf32, #tpu.memory_space<vmem>>, vector<128x4xf32>
    %c0_5 = arith.constant 0 : index
    %c0_6 = arith.constant 0 : index
    %3 = vector.load %arg5[%c0_5, %c0_6] : memref<128x128xi8, #tpu.memory_space<vmem>>, vector<128x128xi8>
    %4 = arith.sitofp %3 : vector<128x128xi8> to vector<128x128xf32>
    %cst = arith.constant 0.000000e+00 : f32
    %5 = vector.broadcast %cst : f32 to vector<128x128xf32>
    %6 = arith.cmpf ogt, %4, %5 : vector<128x128xf32>
    %7 = vector.extract_strided_slice %2 {offsets = [0, 0], sizes = [128, 1], strides = [1, 1]} : vector<128x4xf32> to vector<128x1xf32>
    %8 = vector.extract_strided_slice %1 {offsets = [0, 0], sizes = [1, 128], strides = [1, 1]} : vector<4x128xf32> to vector<1x128xf32>
    %9 = vector.broadcast %7 : vector<128x1xf32> to vector<128x128xf32>
    %10 = vector.broadcast %8 : vector<1x128xf32> to vector<128x128xf32>
    %11 = arith.addf %9, %10 : vector<128x128xf32>
    %cst_7 = arith.constant 0.000000e+00 : f32
    %12 = vector.broadcast %cst_7 : f32 to vector<128x128xf32>
    %13 = arith.cmpf ogt, %11, %12 : vector<128x128xf32>
    %cst_8 = arith.constant 2.000000e-01 : f32
    %14 = vector.broadcast %cst_8 : f32 to vector<128x128xf32>
    %15 = arith.mulf %14, %11 : vector<128x128xf32>
    %16 = arith.select %13, %11, %15 : vector<128x128xi1>, vector<128x128xf32>
    %cst_9 = arith.constant -1.000000e+30 : f32
    %17 = vector.broadcast %cst_9 : f32 to vector<128x128xf32>
    %18 = arith.select %6, %16, %17 : vector<128x128xi1>, vector<128x128xf32>
    %cst_10 = arith.constant dense<0xFF800000> : vector<128xf32>
    %19 = vector.multi_reduction <maximumf>, %18, %cst_10 [1] : vector<128x128xf32> to vector<128xf32>
    %20 = vector.shape_cast %19 : vector<128xf32> to vector<128x1xf32>
    %21 = vector.broadcast %20 : vector<128x1xf32> to vector<128x128xf32>
    %22 = arith.subf %18, %21 : vector<128x128xf32>
    %23 = math.exp %22 : vector<128x128xf32>
    %cst_11 = arith.constant dense<0.000000e+00> : vector<128xf32>
    %24 = vector.multi_reduction <add>, %23, %cst_11 [1] : vector<128x128xf32> to vector<128xf32>
    %25 = vector.shape_cast %24 : vector<128xf32> to vector<128x1xf32>
    %26 = arith.truncf %23 : vector<128x128xf32> to vector<128x128xbf16>
    %27 = vector.extract_strided_slice %0 {offsets = [0, 0], sizes = [128, 32], strides = [1, 1]} : vector<128x128xbf16> to vector<128x32xbf16>
    %cst_12 = arith.constant dense<0.000000e+00> : vector<128x32xf32>
    %28 = tpu.matmul %26, %27, %cst_12 {dimension_numbers = #tpu.dot_dimension_numbers<[1], [0], [0], [1], [0, 0, 1, 1], [], []>} : vector<128x128xbf16>, vector<128x32xbf16>, vector<128x32xf32> -> vector<128x32xf32>
    %29 = tpu.reciprocal %25 {approx = true} : vector<128x1xf32> -> vector<128x1xf32>
    %30 = vector.broadcast %29 : vector<128x1xf32> to vector<128x32xf32>
    %31 = arith.mulf %28, %30 : vector<128x32xf32>
    %32 = vector.extract_strided_slice %2 {offsets = [0, 1], sizes = [128, 1], strides = [1, 1]} : vector<128x4xf32> to vector<128x1xf32>
    %33 = vector.extract_strided_slice %1 {offsets = [1, 0], sizes = [1, 128], strides = [1, 1]} : vector<4x128xf32> to vector<1x128xf32>
    %34 = vector.broadcast %32 : vector<128x1xf32> to vector<128x128xf32>
    %35 = vector.broadcast %33 : vector<1x128xf32> to vector<128x128xf32>
    %36 = arith.addf %34, %35 : vector<128x128xf32>
    %cst_13 = arith.constant 0.000000e+00 : f32
    %37 = vector.broadcast %cst_13 : f32 to vector<128x128xf32>
    %38 = arith.cmpf ogt, %36, %37 : vector<128x128xf32>
    %cst_14 = arith.constant 2.000000e-01 : f32
    %39 = vector.broadcast %cst_14 : f32 to vector<128x128xf32>
    %40 = arith.mulf %39, %36 : vector<128x128xf32>
    %41 = arith.select %38, %36, %40 : vector<128x128xi1>, vector<128x128xf32>
    %cst_15 = arith.constant -1.000000e+30 : f32
    %42 = vector.broadcast %cst_15 : f32 to vector<128x128xf32>
    %43 = arith.select %6, %41, %42 : vector<128x128xi1>, vector<128x128xf32>
    %cst_16 = arith.constant dense<0xFF800000> : vector<128xf32>
    %44 = vector.multi_reduction <maximumf>, %43, %cst_16 [1] : vector<128x128xf32> to vector<128xf32>
    %45 = vector.shape_cast %44 : vector<128xf32> to vector<128x1xf32>
    %46 = vector.broadcast %45 : vector<128x1xf32> to vector<128x128xf32>
    %47 = arith.subf %43, %46 : vector<128x128xf32>
    %48 = math.exp %47 : vector<128x128xf32>
    %cst_17 = arith.constant dense<0.000000e+00> : vector<128xf32>
    %49 = vector.multi_reduction <add>, %48, %cst_17 [1] : vector<128x128xf32> to vector<128xf32>
    %50 = vector.shape_cast %49 : vector<128xf32> to vector<128x1xf32>
    %51 = arith.truncf %48 : vector<128x128xf32> to vector<128x128xbf16>
    %52 = vector.extract_strided_slice %0 {offsets = [0, 32], sizes = [128, 32], strides = [1, 1]} : vector<128x128xbf16> to vector<128x32xbf16>
    %cst_18 = arith.constant dense<0.000000e+00> : vector<128x32xf32>
    %53 = tpu.matmul %51, %52, %cst_18 {dimension_numbers = #tpu.dot_dimension_numbers<[1], [0], [0], [1], [0, 0, 1, 1], [], []>} : vector<128x128xbf16>, vector<128x32xbf16>, vector<128x32xf32> -> vector<128x32xf32>
    %54 = tpu.reciprocal %50 {approx = true} : vector<128x1xf32> -> vector<128x1xf32>
    %55 = vector.broadcast %54 : vector<128x1xf32> to vector<128x32xf32>
    %56 = arith.mulf %53, %55 : vector<128x32xf32>
    %57 = arith.addf %31, %56 : vector<128x32xf32>
    %58 = vector.extract_strided_slice %2 {offsets = [0, 2], sizes = [128, 1], strides = [1, 1]} : vector<128x4xf32> to vector<128x1xf32>
    %59 = vector.extract_strided_slice %1 {offsets = [2, 0], sizes = [1, 128], strides = [1, 1]} : vector<4x128xf32> to vector<1x128xf32>
    %60 = vector.broadcast %58 : vector<128x1xf32> to vector<128x128xf32>
    %61 = vector.broadcast %59 : vector<1x128xf32> to vector<128x128xf32>
    %62 = arith.addf %60, %61 : vector<128x128xf32>
    %cst_19 = arith.constant 0.000000e+00 : f32
    %63 = vector.broadcast %cst_19 : f32 to vector<128x128xf32>
    %64 = arith.cmpf ogt, %62, %63 : vector<128x128xf32>
    %cst_20 = arith.constant 2.000000e-01 : f32
    %65 = vector.broadcast %cst_20 : f32 to vector<128x128xf32>
    %66 = arith.mulf %65, %62 : vector<128x128xf32>
    %67 = arith.select %64, %62, %66 : vector<128x128xi1>, vector<128x128xf32>
    %cst_21 = arith.constant -1.000000e+30 : f32
    %68 = vector.broadcast %cst_21 : f32 to vector<128x128xf32>
    %69 = arith.select %6, %67, %68 : vector<128x128xi1>, vector<128x128xf32>
    %cst_22 = arith.constant dense<0xFF800000> : vector<128xf32>
    %70 = vector.multi_reduction <maximumf>, %69, %cst_22 [1] : vector<128x128xf32> to vector<128xf32>
    %71 = vector.shape_cast %70 : vector<128xf32> to vector<128x1xf32>
    %72 = vector.broadcast %71 : vector<128x1xf32> to vector<128x128xf32>
    %73 = arith.subf %69, %72 : vector<128x128xf32>
    %74 = math.exp %73 : vector<128x128xf32>
    %cst_23 = arith.constant dense<0.000000e+00> : vector<128xf32>
    %75 = vector.multi_reduction <add>, %74, %cst_23 [1] : vector<128x128xf32> to vector<128xf32>
    %76 = vector.shape_cast %75 : vector<128xf32> to vector<128x1xf32>
    %77 = arith.truncf %74 : vector<128x128xf32> to vector<128x128xbf16>
    %78 = vector.extract_strided_slice %0 {offsets = [0, 64], sizes = [128, 32], strides = [1, 1]} : vector<128x128xbf16> to vector<128x32xbf16>
    %cst_24 = arith.constant dense<0.000000e+00> : vector<128x32xf32>
    %79 = tpu.matmul %77, %78, %cst_24 {dimension_numbers = #tpu.dot_dimension_numbers<[1], [0], [0], [1], [0, 0, 1, 1], [], []>} : vector<128x128xbf16>, vector<128x32xbf16>, vector<128x32xf32> -> vector<128x32xf32>
    %80 = tpu.reciprocal %76 {approx = true} : vector<128x1xf32> -> vector<128x1xf32>
    %81 = vector.broadcast %80 : vector<128x1xf32> to vector<128x32xf32>
    %82 = arith.mulf %79, %81 : vector<128x32xf32>
    %83 = arith.addf %57, %82 : vector<128x32xf32>
    %84 = vector.extract_strided_slice %2 {offsets = [0, 3], sizes = [128, 1], strides = [1, 1]} : vector<128x4xf32> to vector<128x1xf32>
    %85 = vector.extract_strided_slice %1 {offsets = [3, 0], sizes = [1, 128], strides = [1, 1]} : vector<4x128xf32> to vector<1x128xf32>
    %86 = vector.broadcast %84 : vector<128x1xf32> to vector<128x128xf32>
    %87 = vector.broadcast %85 : vector<1x128xf32> to vector<128x128xf32>
    %88 = arith.addf %86, %87 : vector<128x128xf32>
    %cst_25 = arith.constant 0.000000e+00 : f32
    %89 = vector.broadcast %cst_25 : f32 to vector<128x128xf32>
    %90 = arith.cmpf ogt, %88, %89 : vector<128x128xf32>
    %cst_26 = arith.constant 2.000000e-01 : f32
    %91 = vector.broadcast %cst_26 : f32 to vector<128x128xf32>
    %92 = arith.mulf %91, %88 : vector<128x128xf32>
    %93 = arith.select %90, %88, %92 : vector<128x128xi1>, vector<128x128xf32>
    %cst_27 = arith.constant -1.000000e+30 : f32
    %94 = vector.broadcast %cst_27 : f32 to vector<128x128xf32>
    %95 = arith.select %6, %93, %94 : vector<128x128xi1>, vector<128x128xf32>
    %cst_28 = arith.constant dense<0xFF800000> : vector<128xf32>
    %96 = vector.multi_reduction <maximumf>, %95, %cst_28 [1] : vector<128x128xf32> to vector<128xf32>
    %97 = vector.shape_cast %96 : vector<128xf32> to vector<128x1xf32>
    %98 = vector.broadcast %97 : vector<128x1xf32> to vector<128x128xf32>
    %99 = arith.subf %95, %98 : vector<128x128xf32>
    %100 = math.exp %99 : vector<128x128xf32>
    %cst_29 = arith.constant dense<0.000000e+00> : vector<128xf32>
    %101 = vector.multi_reduction <add>, %100, %cst_29 [1] : vector<128x128xf32> to vector<128xf32>
    %102 = vector.shape_cast %101 : vector<128xf32> to vector<128x1xf32>
    %103 = arith.truncf %100 : vector<128x128xf32> to vector<128x128xbf16>
    %104 = vector.extract_strided_slice %0 {offsets = [0, 96], sizes = [128, 32], strides = [1, 1]} : vector<128x128xbf16> to vector<128x32xbf16>
    %cst_30 = arith.constant dense<0.000000e+00> : vector<128x32xf32>
    %105 = tpu.matmul %103, %104, %cst_30 {dimension_numbers = #tpu.dot_dimension_numbers<[1], [0], [0], [1], [0, 0, 1, 1], [], []>} : vector<128x128xbf16>, vector<128x32xbf16>, vector<128x32xf32> -> vector<128x32xf32>
    %106 = tpu.reciprocal %102 {approx = true} : vector<128x1xf32> -> vector<128x1xf32>
    %107 = vector.broadcast %106 : vector<128x1xf32> to vector<128x32xf32>
    %108 = arith.mulf %105, %107 : vector<128x32xf32>
    %109 = arith.addf %83, %108 : vector<128x32xf32>
    %cst_31 = arith.constant 2.500000e-01 : f32
    %110 = vector.broadcast %cst_31 : f32 to vector<128x32xf32>
    %111 = arith.mulf %109, %110 : vector<128x32xf32>
    %c0_32 = arith.constant 0 : index
    %c0_33 = arith.constant 0 : index
    %112 = vector.load %arg4[%c0_32, %c0_33] : memref<1x32xf32, #tpu.memory_space<vmem>>, vector<1x32xf32>
    %113 = vector.broadcast %112 : vector<1x32xf32> to vector<128x32xf32>
    %114 = arith.addf %111, %113 : vector<128x32xf32>
    %cst_34 = arith.constant 0.000000e+00 : f32
    %115 = vector.broadcast %cst_34 : f32 to vector<128x32xf32>
    %116 = arith.maximumf %114, %115 : vector<128x32xf32>
    %c0_35 = arith.constant 0 : index
    %c0_36 = arith.constant 0 : index
    %117 = vector.load %arg6[%c0_35, %c0_36] : memref<128x32xf32, #tpu.memory_space<vmem>>, vector<128x32xf32>
    tpu.vector_store %arg6[%c0_35, %c0_36], %116 {strides = array<i32>} : memref<128x32xf32, #tpu.memory_space<vmem>>, vector<128x32xf32>,
    return
  }
  func.func @transform_0(%arg0: i32) -> (i32, i32) {
    %c0_i32 = arith.constant 0 : i32
    %c0_i32_0 = arith.constant 0 : i32
    %c0_i32_1 = arith.constant 0 : i32
    return %c0_i32, %c0_i32_0 : i32, i32
  }
  func.func @transform_1(%arg0: i32) -> (i32, i32) {
    %c0_i32 = arith.constant 0 : i32
    %c0_i32_0 = arith.constant 0 : i32
    %c0_i32_1 = arith.constant 0 : i32
    return %c0_i32, %c0_i32_0 : i32, i32
  }
  func.func @transform_2(%arg0: i32) -> (i32, i32) {
    %c0_i32 = arith.constant 0 : i32
    %c0_i32_0 = arith.constant 0 : i32
    return %arg0, %c0_i32 : i32, i32
  }
  func.func @transform_3(%arg0: i32) -> (i32, i32) {
    %c0_i32 = arith.constant 0 : i32
    %c0_i32_0 = arith.constant 0 : i32
    %c0_i32_1 = arith.constant 0 : i32
    return %c0_i32, %c0_i32_0 : i32, i32
  }
  func.func @transform_4(%arg0: i32) -> (i32, i32) {
    %c0_i32 = arith.constant 0 : i32
    %c0_i32_0 = arith.constant 0 : i32
    return %arg0, %c0_i32 : i32, i32
  }
  func.func @transform_5(%arg0: i32) -> (i32, i32) {
    %c0_i32 = arith.constant 0 : i32
    %c0_i32_0 = arith.constant 0 : i32
    return %arg0, %c0_i32 : i32, i32
  }
}

module attributes {stable_mosaic.version = 11 : i64} {
  func.func @_gat_project_kernel(%arg0: i32, %arg1: memref<128x32xf32, #tpu.memory_space<vmem>>, %arg2: memref<32x16xf32, #tpu.memory_space<vmem>>, %arg3: memref<32x1xf32, #tpu.memory_space<vmem>>, %arg4: memref<32x1xf32, #tpu.memory_space<vmem>>, %arg5: memref<128x16xbf16, #tpu.memory_space<vmem>>, %arg6: memref<128x1xf32, #tpu.memory_space<vmem>>, %arg7: memref<128x1xf32, #tpu.memory_space<vmem>>) attributes {dimension_semantics = [#tpu.dimension_semantics<parallel>], iteration_bounds = array<i64: 1>, scalar_prefetch = 0 : i64, scratch_operands = 0 : i64, tpu.core_type = #tpu.core_type<tc>, window_params = [{transform_indices = @transform_0, window_bounds = array<i64: 128, 32>}, {pipeline_mode = #tpu.pipeline_mode<synchronous>, transform_indices = @transform_1, window_bounds = array<i64: 32, 16>}, {pipeline_mode = #tpu.pipeline_mode<synchronous>, transform_indices = @transform_2, window_bounds = array<i64: 32, 1>}, {pipeline_mode = #tpu.pipeline_mode<synchronous>, transform_indices = @transform_3, window_bounds = array<i64: 32, 1>}, {transform_indices = @transform_4, window_bounds = array<i64: 128, 16>}, {transform_indices = @transform_5, window_bounds = array<i64: 128, 1>}, {transform_indices = @transform_6, window_bounds = array<i64: 128, 1>}]} {
    %c0 = arith.constant 0 : index
    %c0_0 = arith.constant 0 : index
    %0 = vector.load %arg1[%c0, %c0_0] : memref<128x32xf32, #tpu.memory_space<vmem>>, vector<128x32xf32>
    %c0_1 = arith.constant 0 : index
    %c0_2 = arith.constant 0 : index
    %1 = vector.load %arg2[%c0_1, %c0_2] : memref<32x16xf32, #tpu.memory_space<vmem>>, vector<32x16xf32>
    %cst = arith.constant dense<0.000000e+00> : vector<128x16xf32>
    %2 = tpu.matmul %0, %1, %cst {dimension_numbers = #tpu.dot_dimension_numbers<[1], [0], [0], [1], [0, 0, 1, 1], [], []>} : vector<128x32xf32>, vector<32x16xf32>, vector<128x16xf32> -> vector<128x16xf32>
    %3 = arith.truncf %2 : vector<128x16xf32> to vector<128x16xbf16>
    %c0_3 = arith.constant 0 : index
    %c0_4 = arith.constant 0 : index
    %4 = vector.load %arg5[%c0_3, %c0_4] : memref<128x16xbf16, #tpu.memory_space<vmem>>, vector<128x16xbf16>
    tpu.vector_store %arg5[%c0_3, %c0_4], %3 {strides = array<i32>} : memref<128x16xbf16, #tpu.memory_space<vmem>>, vector<128x16xbf16>,
    %c0_5 = arith.constant 0 : index
    %c0_6 = arith.constant 0 : index
    %5 = vector.load %arg3[%c0_5, %c0_6] : memref<32x1xf32, #tpu.memory_space<vmem>>, vector<32x1xf32>
    %cst_7 = arith.constant dense<0.000000e+00> : vector<128x1xf32>
    %6 = tpu.matmul %0, %5, %cst_7 {dimension_numbers = #tpu.dot_dimension_numbers<[1], [0], [0], [1], [0, 0, 1, 1], [], []>} : vector<128x32xf32>, vector<32x1xf32>, vector<128x1xf32> -> vector<128x1xf32>
    %c0_8 = arith.constant 0 : index
    %c0_9 = arith.constant 0 : index
    %7 = vector.load %arg6[%c0_8, %c0_9] : memref<128x1xf32, #tpu.memory_space<vmem>>, vector<128x1xf32>
    tpu.vector_store %arg6[%c0_8, %c0_9], %6 {strides = array<i32>} : memref<128x1xf32, #tpu.memory_space<vmem>>, vector<128x1xf32>,
    %c0_10 = arith.constant 0 : index
    %c0_11 = arith.constant 0 : index
    %8 = vector.load %arg4[%c0_10, %c0_11] : memref<32x1xf32, #tpu.memory_space<vmem>>, vector<32x1xf32>
    %cst_12 = arith.constant dense<0.000000e+00> : vector<128x1xf32>
    %9 = tpu.matmul %0, %8, %cst_12 {dimension_numbers = #tpu.dot_dimension_numbers<[1], [0], [0], [1], [0, 0, 1, 1], [], []>} : vector<128x32xf32>, vector<32x1xf32>, vector<128x1xf32> -> vector<128x1xf32>
    %c0_13 = arith.constant 0 : index
    %c0_14 = arith.constant 0 : index
    %10 = vector.load %arg7[%c0_13, %c0_14] : memref<128x1xf32, #tpu.memory_space<vmem>>, vector<128x1xf32>
    tpu.vector_store %arg7[%c0_13, %c0_14], %9 {strides = array<i32>} : memref<128x1xf32, #tpu.memory_space<vmem>>, vector<128x1xf32>,
    return
  }
  func.func @transform_0(%arg0: i32) -> (i32, i32) {
    %c0_i32 = arith.constant 0 : i32
    %c0_i32_0 = arith.constant 0 : i32
    return %arg0, %c0_i32 : i32, i32
  }
  func.func @transform_1(%arg0: i32) -> (i32, i32) {
    %c0_i32 = arith.constant 0 : i32
    %c0_i32_0 = arith.constant 0 : i32
    %c0_i32_1 = arith.constant 0 : i32
    return %c0_i32, %c0_i32_0 : i32, i32
  }
  func.func @transform_2(%arg0: i32) -> (i32, i32) {
    %c0_i32 = arith.constant 0 : i32
    %c0_i32_0 = arith.constant 0 : i32
    %c0_i32_1 = arith.constant 0 : i32
    return %c0_i32, %c0_i32_0 : i32, i32
  }
  func.func @transform_3(%arg0: i32) -> (i32, i32) {
    %c0_i32 = arith.constant 0 : i32
    %c0_i32_0 = arith.constant 0 : i32
    %c0_i32_1 = arith.constant 0 : i32
    return %c0_i32, %c0_i32_0 : i32, i32
  }
  func.func @transform_4(%arg0: i32) -> (i32, i32) {
    %c0_i32 = arith.constant 0 : i32
    %c0_i32_0 = arith.constant 0 : i32
    return %arg0, %c0_i32 : i32, i32
  }
  func.func @transform_5(%arg0: i32) -> (i32, i32) {
    %c0_i32 = arith.constant 0 : i32
    %c0_i32_0 = arith.constant 0 : i32
    return %arg0, %c0_i32 : i32, i32
  }
  func.func @transform_6(%arg0: i32) -> (i32, i32) {
    %c0_i32 = arith.constant 0 : i32
    %c0_i32_0 = arith.constant 0 : i32
    return %arg0, %c0_i32 : i32, i32
  }
}

module attributes {stable_mosaic.version = 11 : i64} {
  func.func @_gat_attn_kernel(%arg0: i32, %arg1: memref<128x16xbf16, #tpu.memory_space<vmem>>, %arg2: memref<1x128xf32, #tpu.memory_space<vmem>>, %arg3: memref<128x1xf32, #tpu.memory_space<vmem>>, %arg4: memref<1x16xf32, #tpu.memory_space<vmem>>, %arg5: memref<128x128xi8, #tpu.memory_space<vmem>>, %arg6: memref<128x16xf32, #tpu.memory_space<vmem>>) attributes {dimension_semantics = [#tpu.dimension_semantics<parallel>], iteration_bounds = array<i64: 1>, scalar_prefetch = 0 : i64, scratch_operands = 0 : i64, tpu.core_type = #tpu.core_type<tc>, window_params = [{pipeline_mode = #tpu.pipeline_mode<synchronous>, transform_indices = @transform_0, window_bounds = array<i64: 128, 16>}, {pipeline_mode = #tpu.pipeline_mode<synchronous>, transform_indices = @transform_1, window_bounds = array<i64: 1, 128>}, {transform_indices = @transform_2, window_bounds = array<i64: 128, 1>}, {pipeline_mode = #tpu.pipeline_mode<synchronous>, transform_indices = @transform_3, window_bounds = array<i64: 1, 16>}, {transform_indices = @transform_4, window_bounds = array<i64: 128, 128>}, {transform_indices = @transform_5, window_bounds = array<i64: 128, 16>}]} {
    %c0 = arith.constant 0 : index
    %c0_0 = arith.constant 0 : index
    %0 = vector.load %arg1[%c0, %c0_0] : memref<128x16xbf16, #tpu.memory_space<vmem>>, vector<128x16xbf16>
    %c0_1 = arith.constant 0 : index
    %c0_2 = arith.constant 0 : index
    %1 = vector.load %arg2[%c0_1, %c0_2] : memref<1x128xf32, #tpu.memory_space<vmem>>, vector<1x128xf32>
    %c0_3 = arith.constant 0 : index
    %c0_4 = arith.constant 0 : index
    %2 = vector.load %arg3[%c0_3, %c0_4] : memref<128x1xf32, #tpu.memory_space<vmem>>, vector<128x1xf32>
    %c0_5 = arith.constant 0 : index
    %c0_6 = arith.constant 0 : index
    %3 = vector.load %arg5[%c0_5, %c0_6] : memref<128x128xi8, #tpu.memory_space<vmem>>, vector<128x128xi8>
    %4 = arith.sitofp %3 : vector<128x128xi8> to vector<128x128xf32>
    %cst = arith.constant 0.000000e+00 : f32
    %5 = vector.broadcast %cst : f32 to vector<128x128xf32>
    %6 = arith.cmpf ogt, %4, %5 : vector<128x128xf32>
    %7 = vector.broadcast %2 : vector<128x1xf32> to vector<128x128xf32>
    %8 = vector.broadcast %1 : vector<1x128xf32> to vector<128x128xf32>
    %9 = arith.addf %7, %8 : vector<128x128xf32>
    %cst_7 = arith.constant 0.000000e+00 : f32
    %10 = vector.broadcast %cst_7 : f32 to vector<128x128xf32>
    %11 = arith.cmpf ogt, %9, %10 : vector<128x128xf32>
    %cst_8 = arith.constant 2.000000e-01 : f32
    %12 = vector.broadcast %cst_8 : f32 to vector<128x128xf32>
    %13 = arith.mulf %12, %9 : vector<128x128xf32>
    %14 = arith.select %11, %9, %13 : vector<128x128xi1>, vector<128x128xf32>
    %cst_9 = arith.constant -1.000000e+30 : f32
    %15 = vector.broadcast %cst_9 : f32 to vector<128x128xf32>
    %16 = arith.select %6, %14, %15 : vector<128x128xi1>, vector<128x128xf32>
    %cst_10 = arith.constant dense<0xFF800000> : vector<128xf32>
    %17 = vector.multi_reduction <maximumf>, %16, %cst_10 [1] : vector<128x128xf32> to vector<128xf32>
    %18 = vector.shape_cast %17 : vector<128xf32> to vector<128x1xf32>
    %19 = vector.broadcast %18 : vector<128x1xf32> to vector<128x128xf32>
    %20 = arith.subf %16, %19 : vector<128x128xf32>
    %21 = math.exp %20 : vector<128x128xf32>
    %cst_11 = arith.constant dense<0.000000e+00> : vector<128xf32>
    %22 = vector.multi_reduction <add>, %21, %cst_11 [1] : vector<128x128xf32> to vector<128xf32>
    %23 = vector.shape_cast %22 : vector<128xf32> to vector<128x1xf32>
    %24 = arith.truncf %21 : vector<128x128xf32> to vector<128x128xbf16>
    %cst_12 = arith.constant dense<0.000000e+00> : vector<128x16xf32>
    %25 = tpu.matmul %24, %0, %cst_12 {dimension_numbers = #tpu.dot_dimension_numbers<[1], [0], [0], [1], [0, 0, 1, 1], [], []>} : vector<128x128xbf16>, vector<128x16xbf16>, vector<128x16xf32> -> vector<128x16xf32>
    %26 = tpu.reciprocal %23 {approx = true} : vector<128x1xf32> -> vector<128x1xf32>
    %27 = vector.broadcast %26 : vector<128x1xf32> to vector<128x16xf32>
    %28 = arith.mulf %25, %27 : vector<128x16xf32>
    %c0_13 = arith.constant 0 : index
    %c0_14 = arith.constant 0 : index
    %29 = vector.load %arg4[%c0_13, %c0_14] : memref<1x16xf32, #tpu.memory_space<vmem>>, vector<1x16xf32>
    %30 = vector.broadcast %29 : vector<1x16xf32> to vector<128x16xf32>
    %31 = arith.addf %28, %30 : vector<128x16xf32>
    %c0_15 = arith.constant 0 : index
    %c0_16 = arith.constant 0 : index
    %32 = vector.load %arg6[%c0_15, %c0_16] : memref<128x16xf32, #tpu.memory_space<vmem>>, vector<128x16xf32>
    tpu.vector_store %arg6[%c0_15, %c0_16], %31 {strides = array<i32>} : memref<128x16xf32, #tpu.memory_space<vmem>>, vector<128x16xf32>,
    return
  }
  func.func @transform_0(%arg0: i32) -> (i32, i32) {
    %c0_i32 = arith.constant 0 : i32
    %c0_i32_0 = arith.constant 0 : i32
    %c0_i32_1 = arith.constant 0 : i32
    return %c0_i32, %c0_i32_0 : i32, i32
  }
  func.func @transform_1(%arg0: i32) -> (i32, i32) {
    %c0_i32 = arith.constant 0 : i32
    %c0_i32_0 = arith.constant 0 : i32
    %c0_i32_1 = arith.constant 0 : i32
    return %c0_i32, %c0_i32_0 : i32, i32
  }
  func.func @transform_2(%arg0: i32) -> (i32, i32) {
    %c0_i32 = arith.constant 0 : i32
    %c0_i32_0 = arith.constant 0 : i32
    return %arg0, %c0_i32 : i32, i32
  }
  func.func @transform_3(%arg0: i32) -> (i32, i32) {
    %c0_i32 = arith.constant 0 : i32
    %c0_i32_0 = arith.constant 0 : i32
    %c0_i32_1 = arith.constant 0 : i32
    return %c0_i32, %c0_i32_0 : i32, i32
  }
  func.func @transform_4(%arg0: i32) -> (i32, i32) {
    %c0_i32 = arith.constant 0 : i32
    %c0_i32_0 = arith.constant 0 : i32
    return %arg0, %c0_i32 : i32, i32
  }
  func.func @transform_5(%arg0: i32) -> (i32, i32) {
    %c0_i32 = arith.constant 0 : i32
    %c0_i32_0 = arith.constant 0 : i32
    return %arg0, %c0_i32 : i32, i32
  }
}

</mosaic_0001>

<bundles_post_ra>
// kernel: gat_forward.4
= control target key start
LH: loop header
LB: loop body
LE: loop exit
PB: predicated region body
PF: predicated region fallthrough
CT: control target
= control target key end

     0   :  { %vm38_vm0 = vcmask 130048   ;;  %vm459_vm1 = vcmask 31744   ;;  %s1231_s1 = inlined_call_operand.vmem [shape: f32[16,128], index: 1, kind: input, shape index: {}]   ;;  %s1232_s0 = inlined_call_operand.vmem [shape: f32[128,16], index: 0, kind: input, shape index: {}]   ;;  %s1233_s2 = inlined_call_operand.vmem [shape: f32[16,4], index: 2, kind: input, shape index: {}]   ;;  %s1234_s3 = inlined_call_operand.vmem [shape: f32[16,4], index: 3, kind: input, shape index: {}]   ;;  %s1235_s4 = inlined_call_operand.vmem [shape: bf16[128,128], index: 4, kind: output, shape index: {0}]   ;;  %s1236_s5 = inlined_call_operand.vmem [shape: f32[128,4], index: 5, kind: output, shape index: {1}]   ;;  %s1237_s6 = inlined_call_operand.vmem [shape: f32[128,4], index: 6, kind: output, shape index: {2}]  }
   0x1   :  { %v36_v0 = vld [vmem:[%s1231_s1] sm:$0xff]  ;;  %v37_v1 = vld [vmem:[%s1231_s1 + $0x8] sm:$0xff]  ;;  %v22_v13 = vld [vmem:[%s1232_s0 + $0x10] sm:$0xff] }
   0x2   :  { %v20_v2 = vld [vmem:[%s1232_s0] sm:$0xff]  ;;  %v916_v3 = vpack.c.bf16 %v37_v1, %v36_v0  ;;  %v313_v6 = vld [vmem:[%s1233_s2 + $0x8] sm:$0xff]  ;;  %v30_v14 = vld [vmem:[%s1232_s0 + $0x50] sm:$0xff] }
   0x3   :  { %836 = vmatprep.mubr.msk.f32.mxu0 %vm38_vm0, %v20_v2  ;;  %v28_v4 = vld [vmem:[%s1232_s0 + $0x40] sm:$0xff]  ;;  %v477_v9 = vld [vmem:[%s1234_s3 + $0x8] sm:$0xff]  ;;  %v23_v15 = vld [vmem:[%s1232_s0 + $0x18] sm:$0xff] }
   0x4   :  { %848 = vmatprep.mubr.msk.f32.mxu1 %vm38_vm0, %v28_v4  ;;  %v312_v5 = vld [vmem:[%s1233_s2] sm:$0xff]  ;;  %917 = vmatprep.subr.bf16.mxu0 %v916_v3  ;;  %v21_v10 = vld [vmem:[%s1232_s0 + $0x8] sm:$0xff]  ;;  %v31_v16 = vld [vmem:[%s1232_s0 + $0x58] sm:$0xff] }
   0x5   :  { %v476_v7 = vld [vmem:[%s1234_s3] sm:$0xff]  ;;  %928 = vmatprep.subr.bf16.mxu1 %v916_v3  ;;  %v920_v8 = vpack.c.bf16 %v313_v6, %v312_v5  ;;  %919 = vmatpush3.bf16.msra.mxu0 %v916_v3  ;;  %v29_v11 = vld [vmem:[%s1232_s0 + $0x48] sm:$0xff]  ;;  %v26_v21 = vld [vmem:[%s1232_s0 + $0x30] sm:$0xff] }
   0x6   :  { %929 = vmatpush3.bf16.msra.mxu1 %v916_v3  ;;  %v924_v12 = vpack.c.bf16 %v477_v9, %v476_v7  ;;  %v24_v17 = vld [vmem:[%s1232_s0 + $0x20] sm:$0xff]  ;;  %v25_v19 = vld [vmem:[%s1232_s0 + $0x28] sm:$0xff]  ;;  %v34_v22 = vld [vmem:[%s1232_s0 + $0x70] sm:$0xff] }
   0x7   :  { %921 = vmatprep.subr.bf16.mxu1 %v920_v8  ;;  %v32_v18 = vld [vmem:[%s1232_s0 + $0x60] sm:$0xff]  ;;  %v33_v20 = vld [vmem:[%s1232_s0 + $0x68] sm:$0xff]  ;;  %v27_v23 = vld [vmem:[%s1232_s0 + $0x38] sm:$0xff] }
   0x8   :  { %925 = vmatprep.subr.bf16.mxu0 %v924_v12  ;;  %837 = vmatmul.mubr.msk.f32.vlgmr.msra.gmra.mrb[0].mxu0 %vm38_vm0, %v21_v10  ;;  %v35_v24 = vld [vmem:[%s1232_s0 + $0x78] sm:$0xff] }
   0x9   :  { %849 = vmatmul.mubr.msk.f32.vlgmr.msra.gmra.mrb[0].mxu1 %vm38_vm0, %v29_v11  ;;  %927 = vmatpush3.bf16.msra.mxu0 %v924_v12 }
   0xa   :  { %923 = vmatpush3.bf16.msra.mxu1 %v920_v8  ;;  %839 = vmatprep.mubr.msk.f32.mxu0 %vm38_vm0, %v22_v13 }
   0xb   :  { %851 = vmatprep.mubr.msk.f32.mxu1 %vm38_vm0, %v30_v14 }
   0xc   :  { %840 = vmatmul.mubr.msk.f32.gmra.mrb[2].mxu0 %vm38_vm0, %v23_v15 }
   0xd   :  { %852 = vmatmul.mubr.msk.f32.gmra.mrb[2].mxu1 %vm38_vm0, %v31_v16  ;;  %842 = vmatprep.mubr.msk.f32.mxu0 %vm38_vm0, %v24_v17 }
   0xe   :  { %854 = vmatprep.mubr.msk.f32.mxu1 %vm38_vm0, %v32_v18 }
  0x10   :  { %843 = vmatmul.mubr.msk.f32.gmra.mrb[4].mxu0 %vm38_vm0, %v25_v19 }
  0x11   :  { %855 = vmatmul.mubr.msk.f32.gmra.mrb[4].mxu1 %vm38_vm0, %v33_v20  ;;  %845 = vmatprep.mubr.msk.f32.mxu0 %vm38_vm0, %v26_v21 }
  0x12   :  { %857 = vmatprep.mubr.msk.f32.mxu1 %vm38_vm0, %v34_v22 }
  0x14   :  { %846 = vmatmul.mubr.msk.f32.gmra.mrb[6].mxu0 %vm38_vm0, %v27_v23 }
  0x15   :  { %858 = vmatmul.mubr.msk.f32.gmra.mrb[6].mxu1 %vm38_vm0, %v35_v24  ;;  %892 = vmatprep.mubr.msk.f32.mxu0 %vm38_vm0, %v20_v2 }
  0x16   :  { %864 = vmatprep.mubr.msk.f32.mxu1 %vm38_vm0, %v20_v2 }
  0x18   :  { %893 = vmatmul.mubr.msk.f32.vlgmr.msra.gmra.mrb[8].mxu0 %vm38_vm0, %v21_v10 }
  0x19   :  { %865 = vmatmul.mubr.msk.f32.vlgmr.msra.gmra.mrb[8].mxu1 %vm38_vm0, %v21_v10  ;;  %895 = vmatprep.mubr.msk.f32.mxu0 %vm38_vm0, %v22_v13 }
  0x1a   :  { %867 = vmatprep.mubr.msk.f32.mxu1 %vm38_vm0, %v22_v13 }
  0x1c   :  { %896 = vmatmul.mubr.msk.f32.gmra.mrb[10].mxu0 %vm38_vm0, %v23_v15 }
  0x1d   :  { %868 = vmatmul.mubr.msk.f32.gmra.mrb[10].mxu1 %vm38_vm0, %v23_v15  ;;  %898 = vmatprep.mubr.msk.f32.mxu0 %vm38_vm0, %v24_v17 }
  0x1e   :  { %870 = vmatprep.mubr.msk.f32.mxu1 %vm38_vm0, %v24_v17 }
  0x20   :  { %899 = vmatmul.mubr.msk.f32.gmra.mrb[12].mxu0 %vm38_vm0, %v25_v19 }
  0x21   :  { %871 = vmatmul.mubr.msk.f32.gmra.mrb[12].mxu1 %vm38_vm0, %v25_v19  ;;  %901 = vmatprep.mubr.msk.f32.mxu0 %vm38_vm0, %v26_v21 }
  0x22   :  { %873 = vmatprep.mubr.msk.f32.mxu1 %vm38_vm0, %v26_v21 }
  0x24   :  { %902 = vmatmul.mubr.msk.f32.gmra.mrb[14].mxu0 %vm38_vm0, %v27_v23 }
  0x25   :  { %874 = vmatmul.mubr.msk.f32.gmra.mrb[14].mxu1 %vm38_vm0, %v27_v23  ;;  %904 = vmatprep.mubr.msk.f32.mxu0 %vm38_vm0, %v28_v4 }
  0x26   :  { %876 = vmatprep.mubr.msk.f32.mxu1 %vm38_vm0, %v28_v4 }
  0x28   :  { %905 = vmatmul.mubr.msk.f32.gmra.mrb[16].mxu0 %vm38_vm0, %v29_v11 }
  0x29   :  { %877 = vmatmul.mubr.msk.f32.gmra.mrb[16].mxu1 %vm38_vm0, %v29_v11  ;;  %907 = vmatprep.mubr.msk.f32.mxu0 %vm38_vm0, %v30_v14 }
  0x2a   :  { %879 = vmatprep.mubr.msk.f32.mxu1 %vm38_vm0, %v30_v14 }
  0x2c   :  { %908 = vmatmul.mubr.msk.f32.gmra.mrb[18].mxu0 %vm38_vm0, %v31_v16 }
  0x2d   :  { %880 = vmatmul.mubr.msk.f32.gmra.mrb[18].mxu1 %vm38_vm0, %v31_v16  ;;  %910 = vmatprep.mubr.msk.f32.mxu0 %vm38_vm0, %v32_v18 }
  0x2e   :  { %882 = vmatprep.mubr.msk.f32.mxu1 %vm38_vm0, %v32_v18 }
  0x30   :  { %911 = vmatmul.mubr.msk.f32.gmra.mrb[20].mxu0 %vm38_vm0, %v33_v20 }
  0x31   :  { %883 = vmatmul.mubr.msk.f32.gmra.mrb[20].mxu1 %vm38_vm0, %v33_v20  ;;  %913 = vmatprep.mubr.msk.f32.mxu0 %vm38_vm0, %v34_v22 }
  0x32   :  { %885 = vmatprep.mubr.msk.f32.mxu1 %vm38_vm0, %v34_v22 }
  0x34   :  { %914 = vmatmul.mubr.msk.f32.gmra.mrb[22].mxu0 %vm38_vm0, %v35_v24 }
  0x35   :  { %886 = vmatmul.mubr.msk.f32.gmra.mrb[22].mxu1 %vm38_vm0, %v35_v24 }
  0xdb   :  { %v838_v25 = vpop.f32.mrb[0].mxu0 }
  0xdc   :  { %v850_v26 = vpop.f32.mrb[0].mxu1  ;;  %v153_v27 = vpop.f32.mrb[1].mxu0 }
  0xdd   :  { %v193_v28 = vpop.f32.mrb[1].mxu1  ;;  %v734_v29 = vpack.c.bf16 %v838_v25, %v153_v27 }
  0xde   :  { %v754_v30 = vpack.c.bf16 %v850_v26, %v193_v28 }
  0xdf   :  { %735 = vst [vmem:[%s1235_s4] sm:$0xff] %v734_v29   ;;  %v841_v31 = vpop.f32.mrb[2].mxu0 }
  0xe0   :  { %774 = vst [vmem:[%s1235_s4 + $0x20] sm:$0xff] %v754_v30   ;;  %v853_v32 = vpop.f32.mrb[2].mxu1  ;;  %v163_v33 = vpop.f32.mrb[3].mxu0 }
  0xe1   :  { %v203_v34 = vpop.f32.mrb[3].mxu1  ;;  %v739_v35 = vpack.c.bf16 %v841_v31, %v163_v33 }
  0xe2   :  { %v759_v36 = vpack.c.bf16 %v853_v32, %v203_v34 }
  0xe3   :  { %771 = vst [vmem:[%s1235_s4 + $0x8] sm:$0xff] %v739_v35   ;;  %v844_v37 = vpop.f32.mrb[4].mxu0 }
  0xe4   :  { %775 = vst [vmem:[%s1235_s4 + $0x28] sm:$0xff] %v759_v36   ;;  %v856_v38 = vpop.f32.mrb[4].mxu1  ;;  %v173_v39 = vpop.f32.mrb[5].mxu0 }
  0xe5   :  { %v213_v40 = vpop.f32.mrb[5].mxu1  ;;  %v744_v41 = vpack.c.bf16 %v844_v37, %v173_v39 }
  0xe6   :  { %v764_v42 = vpack.c.bf16 %v856_v38, %v213_v40 }
  0xe7   :  { %772 = vst [vmem:[%s1235_s4 + $0x10] sm:$0xff] %v744_v41   ;;  %v847_v43 = vpop.f32.mrb[6].mxu0 }
  0xe8   :  { %776 = vst [vmem:[%s1235_s4 + $0x30] sm:$0xff] %v764_v42   ;;  %v859_v44 = vpop.f32.mrb[6].mxu1  ;;  %v183_v45 = vpop.f32.mrb[7].mxu0 }
  0xe9   :  { %v223_v46 = vpop.f32.mrb[7].mxu1  ;;  %v749_v47 = vpack.c.bf16 %v847_v43, %v183_v45 }
  0xea   :  { %v769_v48 = vpack.c.bf16 %v859_v44, %v223_v46 }
  0xeb   :  { %773 = vst [vmem:[%s1235_s4 + $0x18] sm:$0xff] %v749_v47   ;;  %v894_v50 = vpop.f32.mrb[8].mxu0 }
  0xec   :  { %777 = vst [vmem:[%s1235_s4 + $0x38] sm:$0xff] %v769_v48   ;;  %v866_v49 = vpop.f32.mrb[8].mxu1  ;;  %624 = vst.msk [vmem:[%s1237_s6 + $0x8] sm:$0xff] %vm459_vm1, %v894_v50  ;;  %v544_v52 = vpop.f32.mrb[9].mxu0 }
  0xed   :  { %461 = vst.msk [vmem:[%s1236_s5 + $0x8] sm:$0xff] %vm459_vm1, %v866_v49  ;;  %v380_v51 = vpop.f32.mrb[9].mxu1  ;;  %623 = vst.msk [vmem:[%s1237_s6] sm:$0xff] %vm459_vm1, %v544_v52 }
  0xee   :  { %460 = vst.msk [vmem:[%s1236_s5] sm:$0xff] %vm459_vm1, %v380_v51 }
  0xef   :  { %v897_v54 = vpop.f32.mrb[10].mxu0 }
  0xf0   :  { %v869_v53 = vpop.f32.mrb[10].mxu1  ;;  %626 = vst.msk [vmem:[%s1237_s6 + $0x18] sm:$0xff] %vm459_vm1, %v897_v54  ;;  %v554_v56 = vpop.f32.mrb[11].mxu0 }
  0xf1   :  { %463 = vst.msk [vmem:[%s1236_s5 + $0x18] sm:$0xff] %vm459_vm1, %v869_v53  ;;  %v390_v55 = vpop.f32.mrb[11].mxu1  ;;  %625 = vst.msk [vmem:[%s1237_s6 + $0x10] sm:$0xff] %vm459_vm1, %v554_v56 }
  0xf2   :  { %462 = vst.msk [vmem:[%s1236_s5 + $0x10] sm:$0xff] %vm459_vm1, %v390_v55 }
  0xf3   :  { %v900_v58 = vpop.f32.mrb[12].mxu0 }
  0xf4   :  { %v872_v57 = vpop.f32.mrb[12].mxu1  ;;  %628 = vst.msk [vmem:[%s1237_s6 + $0x28] sm:$0xff] %vm459_vm1, %v900_v58  ;;  %v564_v60 = vpop.f32.mrb[13].mxu0 }
  0xf5   :  { %465 = vst.msk [vmem:[%s1236_s5 + $0x28] sm:$0xff] %vm459_vm1, %v872_v57  ;;  %v400_v59 = vpop.f32.mrb[13].mxu1  ;;  %627 = vst.msk [vmem:[%s1237_s6 + $0x20] sm:$0xff] %vm459_vm1, %v564_v60 }
  0xf6   :  { %464 = vst.msk [vmem:[%s1236_s5 + $0x20] sm:$0xff] %vm459_vm1, %v400_v59 }
  0xf7   :  { %v903_v62 = vpop.f32.mrb[14].mxu0 }
  0xf8   :  { %v875_v61 = vpop.f32.mrb[14].mxu1  ;;  %630 = vst.msk [vmem:[%s1237_s6 + $0x38] sm:$0xff] %vm459_vm1, %v903_v62  ;;  %v574_v0 = vpop.f32.mrb[15].mxu0 }
  0xf9   :  { %467 = vst.msk [vmem:[%s1236_s5 + $0x38] sm:$0xff] %vm459_vm1, %v875_v61  ;;  %v410_v63 = vpop.f32.mrb[15].mxu1  ;;  %629 = vst.msk [vmem:[%s1237_s6 + $0x30] sm:$0xff] %vm459_vm1, %v574_v0 }
  0xfa   :  { %466 = vst.msk [vmem:[%s1236_s5 + $0x30] sm:$0xff] %vm459_vm1, %v410_v63 }
  0xfb   :  { %v906_v2 = vpop.f32.mrb[16].mxu0 }
  0xfc   :  { %v878_v1 = vpop.f32.mrb[16].mxu1  ;;  %632 = vst.msk [vmem:[%s1237_s6 + $0x48] sm:$0xff] %vm459_vm1, %v906_v2  ;;  %v584_v4 = vpop.f32.mrb[17].mxu0 }
  0xfd   :  { %469 = vst.msk [vmem:[%s1236_s5 + $0x48] sm:$0xff] %vm459_vm1, %v878_v1  ;;  %v420_v3 = vpop.f32.mrb[17].mxu1  ;;  %631 = vst.msk [vmem:[%s1237_s6 + $0x40] sm:$0xff] %vm459_vm1, %v584_v4 }
  0xfe   :  { %468 = vst.msk [vmem:[%s1236_s5 + $0x40] sm:$0xff] %vm459_vm1, %v420_v3 }
  0xff   :  { %v909_v6 = vpop.f32.mrb[18].mxu0 }
 0x100   :  { %v881_v5 = vpop.f32.mrb[18].mxu1  ;;  %634 = vst.msk [vmem:[%s1237_s6 + $0x58] sm:$0xff] %vm459_vm1, %v909_v6  ;;  %v594_v8 = vpop.f32.mrb[19].mxu0 }
 0x101   :  { %471 = vst.msk [vmem:[%s1236_s5 + $0x58] sm:$0xff] %vm459_vm1, %v881_v5  ;;  %v430_v7 = vpop.f32.mrb[19].mxu1  ;;  %633 = vst.msk [vmem:[%s1237_s6 + $0x50] sm:$0xff] %vm459_vm1, %v594_v8 }
 0x102   :  { %470 = vst.msk [vmem:[%s1236_s5 + $0x50] sm:$0xff] %vm459_vm1, %v430_v7 }
 0x103   :  { %v912_v10 = vpop.f32.mrb[20].mxu0 }
 0x104   :  { %v884_v9 = vpop.f32.mrb[20].mxu1  ;;  %636 = vst.msk [vmem:[%s1237_s6 + $0x68] sm:$0xff] %vm459_vm1, %v912_v10  ;;  %v604_v12 = vpop.f32.mrb[21].mxu0 }
 0x105   :  { %473 = vst.msk [vmem:[%s1236_s5 + $0x68] sm:$0xff] %vm459_vm1, %v884_v9  ;;  %v440_v11 = vpop.f32.mrb[21].mxu1  ;;  %635 = vst.msk [vmem:[%s1237_s6 + $0x60] sm:$0xff] %vm459_vm1, %v604_v12 }
 0x106   :  { %472 = vst.msk [vmem:[%s1236_s5 + $0x60] sm:$0xff] %vm459_vm1, %v440_v11 }
 0x107   :  { %v915_v14 = vpop.f32.mrb[22].mxu0 }
 0x108   :  { %v887_v13 = vpop.f32.mrb[22].mxu1  ;;  %638 = vst.msk [vmem:[%s1237_s6 + $0x78] sm:$0xff] %vm459_vm1, %v915_v14  ;;  %v614_v16 = vpop.f32.mrb[23].mxu0 }
 0x109   :  { %475 = vst.msk [vmem:[%s1236_s5 + $0x78] sm:$0xff] %vm459_vm1, %v887_v13  ;;  %v450_v15 = vpop.f32.mrb[23].mxu1  ;;  %637 = vst.msk [vmem:[%s1237_s6 + $0x70] sm:$0xff] %vm459_vm1, %v614_v16 }
 0x10a   :  { %474 = vst.msk [vmem:[%s1236_s5 + $0x70] sm:$0xff] %vm459_vm1, %v450_v15 }

// kernel: gat_forward.6
= control target key start
LH: loop header
LB: loop body
LE: loop exit
PB: predicated region body
PF: predicated region fallthrough
CT: control target
= control target key end

     0   :  { %vm40_vm0 = vcmask 261120   ;;  %vm298_vm1 = vcmask 125952   ;;  %vm464_vm2 = vcmask 7168   ;;  %s1286_s1 = inlined_call_operand.vmem [shape: f32[32,16], index: 1, kind: input, shape index: {}]   ;;  %s1287_s0 = inlined_call_operand.vmem [shape: f32[128,32], index: 0, kind: input, shape index: {}]   ;;  %s1288_s2 = inlined_call_operand.vmem [shape: f32[32,1], index: 2, kind: input, shape index: {}]   ;;  %s1289_s3 = inlined_call_operand.vmem [shape: f32[32,1], index: 3, kind: input, shape index: {}]   ;;  %s1290_s4 = inlined_call_operand.vmem [shape: bf16[128,16], index: 4, kind: output, shape index: {0}]   ;;  %s1291_s5 = inlined_call_operand.vmem [shape: f32[128,1], index: 5, kind: output, shape index: {1}]   ;;  %s1292_s6 = inlined_call_operand.vmem [shape: f32[128,1], index: 6, kind: output, shape index: {2}]  }
   0x1   :  { %v36_v0 = vld [vmem:[%s1286_s1] sm:$0xff]  ;;  %v37_v1 = vld [vmem:[%s1286_s1 + $0x8] sm:$0xff]  ;;  %v38_v2 = vld [vmem:[%s1286_s1 + $0x10] sm:$0xff] }
   0x2   :  { %v894_v3 = vpack.c.bf16 %v37_v1, %v36_v0  ;;  %v39_v4 = vld [vmem:[%s1286_s1 + $0x18] sm:$0xff]  ;;  %v20_v5 = vld [vmem:[%s1287_s0] sm:$0xff]  ;;  %v316_v9 = vld [vmem:[%s1288_s2 + $0x8] sm:$0xff] }
   0x3   :  { %v975_v6 = vld [vmem:[%s1287_s0 + $0x40] sm:$0xff]  ;;  %v898_v7 = vpack.c.bf16 %v39_v4, %v38_v2  ;;  %806 = vmatprep.mubr.msk.f32.mxu0 %vm40_vm0, %v20_v5  ;;  %v482_v11 = vld [vmem:[%s1289_s3 + $0x8] sm:$0xff]  ;;  %v317_v14 = vld [vmem:[%s1288_s2 + $0x10] sm:$0xff] }
   0x4   :  { %818 = vmatprep.mubr.msk.f32.mxu1 %vm40_vm0, %v975_v6  ;;  %v315_v8 = vld [vmem:[%s1288_s2] sm:$0xff]  ;;  %895 = vmatprep.subr.bf16.mxu0 %v894_v3  ;;  %v318_v15 = vld [vmem:[%s1288_s2 + $0x18] sm:$0xff]  ;;  %v483_v16 = vld [vmem:[%s1289_s3 + $0x10] sm:$0xff] }
   0x5   :  { %918 = vmatprep.subr.bf16.mxu1 %v894_v3  ;;  %v481_v10 = vld [vmem:[%s1289_s3] sm:$0xff]  ;;  %897 = vmatpush3.bf16.msra.mxu0 %v894_v3  ;;  %v902_v12 = vpack.c.bf16 %v316_v9, %v315_v8  ;;  %v484_v17 = vld [vmem:[%s1289_s3 + $0x18] sm:$0xff]  ;;  %v21_v18 = vld [vmem:[%s1287_s0 + $0x8] sm:$0xff]  ;;  %v906_v22 = vpack.c.bf16 %v318_v15, %v317_v14 }
   0x6   :  { %920 = vmatpush3.bf16.msra.mxu1 %v894_v3  ;;  %899 = vmatprep.subr.bf16.mxu0 %v898_v7  ;;  %v910_v13 = vpack.c.bf16 %v482_v11, %v481_v10  ;;  %v29_v19 = vld [vmem:[%s1287_s0 + $0x48] sm:$0xff]  ;;  %v22_v20 = vld [vmem:[%s1287_s0 + $0x10] sm:$0xff]  ;;  %v914_v23 = vpack.c.bf16 %v484_v17, %v483_v16  ;;  %v23_v24 = vld [vmem:[%s1287_s0 + $0x18] sm:$0xff] }
   0x7   :  { %919 = vmatprep.subr.bf16.mxu1 %v898_v7  ;;  %v30_v21 = vld [vmem:[%s1287_s0 + $0x50] sm:$0xff]  ;;  %v31_v25 = vld [vmem:[%s1287_s0 + $0x58] sm:$0xff]  ;;  %v24_v26 = vld [vmem:[%s1287_s0 + $0x20] sm:$0xff] }
   0x8   :  { %v32_v27 = vld [vmem:[%s1287_s0 + $0x60] sm:$0xff]  ;;  %v25_v28 = vld [vmem:[%s1287_s0 + $0x28] sm:$0xff]  ;;  %v26_v30 = vld [vmem:[%s1287_s0 + $0x30] sm:$0xff] }
   0x9   :  { %901 = vmatpush3.bf16.msra.mxu0 %v898_v7  ;;  %v33_v29 = vld [vmem:[%s1287_s0 + $0x68] sm:$0xff]  ;;  %v34_v31 = vld [vmem:[%s1287_s0 + $0x70] sm:$0xff]  ;;  %v27_v32 = vld [vmem:[%s1287_s0 + $0x38] sm:$0xff] }
   0xa   :  { %921 = vmatpush3.bf16.msra.mxu1 %v898_v7  ;;  %911 = vmatprep.subr.bf16.mxu0 %v910_v13  ;;  %v35_v33 = vld [vmem:[%s1287_s0 + $0x78] sm:$0xff] }
   0xb   :  { %903 = vmatprep.subr.bf16.mxu1 %v902_v12 }
   0xc   :  { %807 = vmatmul.mubr.msk.f32.vlgmr.msra.gmra.mrb[0].mxu0 %vm40_vm0, %v21_v18 }
   0xd   :  { %819 = vmatmul.mubr.msk.f32.vlgmr.msra.gmra.mrb[0].mxu1 %vm40_vm0, %v29_v19  ;;  %913 = vmatpush3.bf16.msra.mxu0 %v910_v13 }
   0xe   :  { %905 = vmatpush3.bf16.msra.mxu1 %v902_v12  ;;  %809 = vmatprep.mubr.msk.f32.mxu0 %vm40_vm0, %v22_v20 }
   0xf   :  { %821 = vmatprep.mubr.msk.f32.mxu1 %vm40_vm0, %v30_v21  ;;  %907 = vmatprep.subr.bf16.mxu1 %v906_v22 }
  0x10   :  { %915 = vmatprep.subr.bf16.mxu0 %v914_v23  ;;  %810 = vmatmul.mubr.msk.f32.gmra.mrb[2].mxu0 %vm40_vm0, %v23_v24 }
  0x11   :  { %822 = vmatmul.mubr.msk.f32.gmra.mrb[2].mxu1 %vm40_vm0, %v31_v25  ;;  %812 = vmatprep.mubr.msk.f32.mxu0 %vm40_vm0, %v24_v26 }
  0x12   :  { %824 = vmatprep.mubr.msk.f32.mxu1 %vm40_vm0, %v32_v27  ;;  %909 = vmatpush3.bf16.msra.mxu1 %v906_v22 }
  0x13   :  { %917 = vmatpush3.bf16.msra.mxu0 %v914_v23 }
  0x14   :  { %813 = vmatmul.mubr.msk.f32.gmra.mrb[4].mxu0 %vm40_vm0, %v25_v28 }
  0x15   :  { %825 = vmatmul.mubr.msk.f32.gmra.mrb[4].mxu1 %vm40_vm0, %v33_v29  ;;  %815 = vmatprep.mubr.msk.f32.mxu0 %vm40_vm0, %v26_v30 }
  0x16   :  { %827 = vmatprep.mubr.msk.f32.mxu1 %vm40_vm0, %v34_v31 }
  0x18   :  { %816 = vmatmul.mubr.msk.f32.gmra.mrb[6].mxu0 %vm40_vm0, %v27_v32 }
  0x19   :  { %828 = vmatmul.mubr.msk.f32.gmra.mrb[6].mxu1 %vm40_vm0, %v35_v33  ;;  %870 = vmatprep.mubr.msk.f32.mxu0 %vm40_vm0, %v20_v5 }
  0x1a   :  { %838 = vmatprep.mubr.msk.f32.mxu1 %vm40_vm0, %v20_v5 }
  0x1c   :  { %871 = vmatmul.mubr.msk.f32.vlgmr.msra.gmra.mrb[8].mxu0 %vm40_vm0, %v21_v18 }
  0x1d   :  { %839 = vmatmul.mubr.msk.f32.vlgmr.msra.gmra.mrb[8].mxu1 %vm40_vm0, %v21_v18  ;;  %873 = vmatprep.mubr.msk.f32.mxu0 %vm40_vm0, %v22_v20 }
  0x1e   :  { %841 = vmatprep.mubr.msk.f32.mxu1 %vm40_vm0, %v22_v20 }
  0x20   :  { %874 = vmatmul.mubr.msk.f32.gmra.mrb[10].mxu0 %vm40_vm0, %v23_v24 }
  0x21   :  { %842 = vmatmul.mubr.msk.f32.gmra.mrb[10].mxu1 %vm40_vm0, %v23_v24  ;;  %876 = vmatprep.mubr.msk.f32.mxu0 %vm40_vm0, %v24_v26 }
  0x22   :  { %844 = vmatprep.mubr.msk.f32.mxu1 %vm40_vm0, %v24_v26 }
  0x24   :  { %877 = vmatmul.mubr.msk.f32.gmra.mrb[12].mxu0 %vm40_vm0, %v25_v28 }
  0x25   :  { %845 = vmatmul.mubr.msk.f32.gmra.mrb[12].mxu1 %vm40_vm0, %v25_v28  ;;  %879 = vmatprep.mubr.msk.f32.mxu0 %vm40_vm0, %v26_v30 }
  0x26   :  { %847 = vmatprep.mubr.msk.f32.mxu1 %vm40_vm0, %v26_v30 }
  0x28   :  { %880 = vmatmul.mubr.msk.f32.gmra.mrb[14].mxu0 %vm40_vm0, %v27_v32 }
  0x29   :  { %848 = vmatmul.mubr.msk.f32.gmra.mrb[14].mxu1 %vm40_vm0, %v27_v32  ;;  %882 = vmatprep.mubr.msk.f32.mxu0 %vm40_vm0, %v975_v6 }
  0x2a   :  { %850 = vmatprep.mubr.msk.f32.mxu1 %vm40_vm0, %v975_v6 }
  0x2c   :  { %883 = vmatmul.mubr.msk.f32.gmra.mrb[16].mxu0 %vm40_vm0, %v29_v19 }
  0x2d   :  { %851 = vmatmul.mubr.msk.f32.gmra.mrb[16].mxu1 %vm40_vm0, %v29_v19  ;;  %885 = vmatprep.mubr.msk.f32.mxu0 %vm40_vm0, %v30_v21 }
  0x2e   :  { %853 = vmatprep.mubr.msk.f32.mxu1 %vm40_vm0, %v30_v21 }
  0x30   :  { %886 = vmatmul.mubr.msk.f32.gmra.mrb[18].mxu0 %vm40_vm0, %v31_v25 }
  0x31   :  { %854 = vmatmul.mubr.msk.f32.gmra.mrb[18].mxu1 %vm40_vm0, %v31_v25  ;;  %888 = vmatprep.mubr.msk.f32.mxu0 %vm40_vm0, %v32_v27 }
  0x32   :  { %856 = vmatprep.mubr.msk.f32.mxu1 %vm40_vm0, %v32_v27 }
  0x34   :  { %889 = vmatmul.mubr.msk.f32.gmra.mrb[20].mxu0 %vm40_vm0, %v33_v29 }
  0x35   :  { %857 = vmatmul.mubr.msk.f32.gmra.mrb[20].mxu1 %vm40_vm0, %v33_v29  ;;  %891 = vmatprep.mubr.msk.f32.mxu0 %vm40_vm0, %v34_v31 }
  0x36   :  { %859 = vmatprep.mubr.msk.f32.mxu1 %vm40_vm0, %v34_v31 }
  0x38   :  { %892 = vmatmul.mubr.msk.f32.gmra.mrb[22].mxu0 %vm40_vm0, %v35_v33 }
  0x39   :  { %860 = vmatmul.mubr.msk.f32.gmra.mrb[22].mxu1 %vm40_vm0, %v35_v33 }
  0xdf   :  { %v808_v34 = vpop.f32.mrb[0].mxu0 }
  0xe0   :  { %v820_v35 = vpop.f32.mrb[0].mxu1  ;;  %v723_v36 = vpack.c.bf16 %v808_v34, %v808_v34  ;;  %v155_v38 = vpop.f32.mrb[1].mxu0 }
  0xe1   :  { %v731_v37 = vpack.c.bf16 %v820_v35, %v820_v35  ;;  %v195_v39 = vpop.f32.mrb[1].mxu1  ;;  %v722_v40 = vpack.c.bf16 %v155_v38, %v155_v38 }
  0xe2   :  { %v730_v41 = vpack.c.bf16 %v195_v39, %v195_v39  ;;  %300 = vst.msk [vmem:[%s1290_s4 + $0x4] sm:$0xf] %vm298_vm1, %v723_v36 }
  0xe3   :  { %308 = vst.msk [vmem:[%s1290_s4 + $0x24] sm:$0xf] %vm298_vm1, %v731_v37  ;;  %299 = vst.msk [vmem:[%s1290_s4] sm:$0xf] %vm298_vm1, %v722_v40  ;;  %v811_v42 = vpop.f32.mrb[2].mxu0 }
  0xe4   :  { %307 = vst.msk [vmem:[%s1290_s4 + $0x20] sm:$0xf] %vm298_vm1, %v730_v41  ;;  %v823_v43 = vpop.f32.mrb[2].mxu1  ;;  %v725_v44 = vpack.c.bf16 %v811_v42, %v811_v42  ;;  %v165_v46 = vpop.f32.mrb[3].mxu0 }
  0xe5   :  { %v733_v45 = vpack.c.bf16 %v823_v43, %v823_v43  ;;  %v205_v47 = vpop.f32.mrb[3].mxu1  ;;  %v724_v48 = vpack.c.bf16 %v165_v46, %v165_v46 }
  0xe6   :  { %v732_v49 = vpack.c.bf16 %v205_v47, %v205_v47  ;;  %302 = vst.msk [vmem:[%s1290_s4 + $0xc] sm:$0xf] %vm298_vm1, %v725_v44 }
  0xe7   :  { %310 = vst.msk [vmem:[%s1290_s4 + $0x2c] sm:$0xf] %vm298_vm1, %v733_v45  ;;  %301 = vst.msk [vmem:[%s1290_s4 + $0x8] sm:$0xf] %vm298_vm1, %v724_v48  ;;  %v814_v50 = vpop.f32.mrb[4].mxu0 }
  0xe8   :  { %309 = vst.msk [vmem:[%s1290_s4 + $0x28] sm:$0xf] %vm298_vm1, %v732_v49  ;;  %v826_v51 = vpop.f32.mrb[4].mxu1  ;;  %v727_v52 = vpack.c.bf16 %v814_v50, %v814_v50  ;;  %v175_v54 = vpop.f32.mrb[5].mxu0 }
  0xe9   :  { %v735_v53 = vpack.c.bf16 %v826_v51, %v826_v51  ;;  %v215_v55 = vpop.f32.mrb[5].mxu1  ;;  %v726_v56 = vpack.c.bf16 %v175_v54, %v175_v54 }
  0xea   :  { %v734_v57 = vpack.c.bf16 %v215_v55, %v215_v55  ;;  %304 = vst.msk [vmem:[%s1290_s4 + $0x14] sm:$0xf] %vm298_vm1, %v727_v52 }
  0xeb   :  { %312 = vst.msk [vmem:[%s1290_s4 + $0x34] sm:$0xf] %vm298_vm1, %v735_v53  ;;  %303 = vst.msk [vmem:[%s1290_s4 + $0x10] sm:$0xf] %vm298_vm1, %v726_v56  ;;  %v817_v58 = vpop.f32.mrb[6].mxu0 }
  0xec   :  { %311 = vst.msk [vmem:[%s1290_s4 + $0x30] sm:$0xf] %vm298_vm1, %v734_v57  ;;  %v829_v59 = vpop.f32.mrb[6].mxu1  ;;  %v729_v60 = vpack.c.bf16 %v817_v58, %v817_v58  ;;  %v185_v62 = vpop.f32.mrb[7].mxu0 }
  0xed   :  { %v737_v61 = vpack.c.bf16 %v829_v59, %v829_v59  ;;  %v225_v63 = vpop.f32.mrb[7].mxu1  ;;  %v728_v0 = vpack.c.bf16 %v185_v62, %v185_v62 }
  0xee   :  { %v736_v1 = vpack.c.bf16 %v225_v63, %v225_v63  ;;  %306 = vst.msk [vmem:[%s1290_s4 + $0x1c] sm:$0xf] %vm298_vm1, %v729_v60 }
  0xef   :  { %314 = vst.msk [vmem:[%s1290_s4 + $0x3c] sm:$0xf] %vm298_vm1, %v737_v61  ;;  %305 = vst.msk [vmem:[%s1290_s4 + $0x18] sm:$0xf] %vm298_vm1, %v728_v0  ;;  %v872_v3 = vpop.f32.mrb[8].mxu0 }
  0xf0   :  { %313 = vst.msk [vmem:[%s1290_s4 + $0x38] sm:$0xf] %vm298_vm1, %v736_v1  ;;  %v840_v2 = vpop.f32.mrb[8].mxu1  ;;  %v551_v5 = vpop.f32.mrb[9].mxu0 }
  0xf1   :  { %466 = vst.msk [vmem:[%s1291_s5 + $0x8] sm:$0xff] %vm464_vm2, %v840_v2  ;;  %631 = vst.msk [vmem:[%s1292_s6 + $0x8] sm:$0xff] %vm464_vm2, %v872_v3  ;;  %v385_v4 = vpop.f32.mrb[9].mxu1 }
  0xf2   :  { %465 = vst.msk [vmem:[%s1291_s5] sm:$0xff] %vm464_vm2, %v385_v4  ;;  %630 = vst.msk [vmem:[%s1292_s6] sm:$0xff] %vm464_vm2, %v551_v5 }
  0xf3   :  { %v875_v7 = vpop.f32.mrb[10].mxu0 }
  0xf4   :  { %v843_v6 = vpop.f32.mrb[10].mxu1  ;;  %633 = vst.msk [vmem:[%s1292_s6 + $0x18] sm:$0xff] %vm464_vm2, %v875_v7  ;;  %v561_v9 = vpop.f32.mrb[11].mxu0 }
  0xf5   :  { %468 = vst.msk [vmem:[%s1291_s5 + $0x18] sm:$0xff] %vm464_vm2, %v843_v6  ;;  %v395_v8 = vpop.f32.mrb[11].mxu1  ;;  %632 = vst.msk [vmem:[%s1292_s6 + $0x10] sm:$0xff] %vm464_vm2, %v561_v9 }
  0xf6   :  { %467 = vst.msk [vmem:[%s1291_s5 + $0x10] sm:$0xff] %vm464_vm2, %v395_v8 }
  0xf7   :  { %v878_v11 = vpop.f32.mrb[12].mxu0 }
  0xf8   :  { %v846_v10 = vpop.f32.mrb[12].mxu1  ;;  %635 = vst.msk [vmem:[%s1292_s6 + $0x28] sm:$0xff] %vm464_vm2, %v878_v11  ;;  %v571_v13 = vpop.f32.mrb[13].mxu0 }
  0xf9   :  { %470 = vst.msk [vmem:[%s1291_s5 + $0x28] sm:$0xff] %vm464_vm2, %v846_v10  ;;  %v405_v12 = vpop.f32.mrb[13].mxu1  ;;  %634 = vst.msk [vmem:[%s1292_s6 + $0x20] sm:$0xff] %vm464_vm2, %v571_v13 }
  0xfa   :  { %469 = vst.msk [vmem:[%s1291_s5 + $0x20] sm:$0xff] %vm464_vm2, %v405_v12 }
  0xfb   :  { %v881_v15 = vpop.f32.mrb[14].mxu0 }
  0xfc   :  { %v849_v14 = vpop.f32.mrb[14].mxu1  ;;  %637 = vst.msk [vmem:[%s1292_s6 + $0x38] sm:$0xff] %vm464_vm2, %v881_v15  ;;  %v581_v17 = vpop.f32.mrb[15].mxu0 }
  0xfd   :  { %472 = vst.msk [vmem:[%s1291_s5 + $0x38] sm:$0xff] %vm464_vm2, %v849_v14  ;;  %v415_v16 = vpop.f32.mrb[15].mxu1  ;;  %636 = vst.msk [vmem:[%s1292_s6 + $0x30] sm:$0xff] %vm464_vm2, %v581_v17 }
  0xfe   :  { %471 = vst.msk [vmem:[%s1291_s5 + $0x30] sm:$0xff] %vm464_vm2, %v415_v16 }
  0xff   :  { %v884_v19 = vpop.f32.mrb[16].mxu0 }
 0x100   :  { %v852_v18 = vpop.f32.mrb[16].mxu1  ;;  %639 = vst.msk [vmem:[%s1292_s6 + $0x48] sm:$0xff] %vm464_vm2, %v884_v19  ;;  %v591_v21 = vpop.f32.mrb[17].mxu0 }
 0x101   :  { %474 = vst.msk [vmem:[%s1291_s5 + $0x48] sm:$0xff] %vm464_vm2, %v852_v18  ;;  %v425_v20 = vpop.f32.mrb[17].mxu1  ;;  %638 = vst.msk [vmem:[%s1292_s6 + $0x40] sm:$0xff] %vm464_vm2, %v591_v21 }
 0x102   :  { %473 = vst.msk [vmem:[%s1291_s5 + $0x40] sm:$0xff] %vm464_vm2, %v425_v20 }
 0x103   :  { %v887_v23 = vpop.f32.mrb[18].mxu0 }
 0x104   :  { %v855_v22 = vpop.f32.mrb[18].mxu1  ;;  %641 = vst.msk [vmem:[%s1292_s6 + $0x58] sm:$0xff] %vm464_vm2, %v887_v23  ;;  %v601_v25 = vpop.f32.mrb[19].mxu0 }
 0x105   :  { %476 = vst.msk [vmem:[%s1291_s5 + $0x58] sm:$0xff] %vm464_vm2, %v855_v22  ;;  %v435_v24 = vpop.f32.mrb[19].mxu1  ;;  %640 = vst.msk [vmem:[%s1292_s6 + $0x50] sm:$0xff] %vm464_vm2, %v601_v25 }
 0x106   :  { %475 = vst.msk [vmem:[%s1291_s5 + $0x50] sm:$0xff] %vm464_vm2, %v435_v24 }
 0x107   :  { %v890_v27 = vpop.f32.mrb[20].mxu0 }
 0x108   :  { %v858_v26 = vpop.f32.mrb[20].mxu1  ;;  %643 = vst.msk [vmem:[%s1292_s6 + $0x68] sm:$0xff] %vm464_vm2, %v890_v27  ;;  %v611_v29 = vpop.f32.mrb[21].mxu0 }
 0x109   :  { %478 = vst.msk [vmem:[%s1291_s5 + $0x68] sm:$0xff] %vm464_vm2, %v858_v26  ;;  %v445_v28 = vpop.f32.mrb[21].mxu1  ;;  %642 = vst.msk [vmem:[%s1292_s6 + $0x60] sm:$0xff] %vm464_vm2, %v611_v29 }
 0x10a   :  { %477 = vst.msk [vmem:[%s1291_s5 + $0x60] sm:$0xff] %vm464_vm2, %v445_v28 }
 0x10b   :  { %v893_v31 = vpop.f32.mrb[22].mxu0 }
 0x10c   :  { %v861_v30 = vpop.f32.mrb[22].mxu1  ;;  %645 = vst.msk [vmem:[%s1292_s6 + $0x78] sm:$0xff] %vm464_vm2, %v893_v31  ;;  %v621_v33 = vpop.f32.mrb[23].mxu0 }
 0x10d   :  { %480 = vst.msk [vmem:[%s1291_s5 + $0x78] sm:$0xff] %vm464_vm2, %v861_v30  ;;  %v455_v32 = vpop.f32.mrb[23].mxu1  ;;  %644 = vst.msk [vmem:[%s1292_s6 + $0x70] sm:$0xff] %vm464_vm2, %v621_v33 }
 0x10e   :  { %479 = vst.msk [vmem:[%s1291_s5 + $0x70] sm:$0xff] %vm464_vm2, %v455_v32 }

// kernel: gat_forward.7
= control target key start
LH: loop header
LB: loop body
LE: loop exit
PB: predicated region body
PF: predicated region fallthrough
CT: control target
= control target key end

     0   :  { %v762_v0 = vmov 0   ;;  %s1078_s2 = inlined_call_operand.vmem [shape: f32[128,1], index: 2, kind: input, shape index: {}]   ;;  %s1079_s0 = inlined_call_operand.vmem [shape: bf16[128,16], index: 0, kind: input, shape index: {}]   ;;  %s1080_s4 = inlined_call_operand.vmem [shape: s8[128,128], index: 4, kind: input, shape index: {}]   ;;  %s1081_s1 = inlined_call_operand.vmem [shape: f32[1,128], index: 1, kind: input, shape index: {}]   ;;  %s1082_s3 = inlined_call_operand.vmem [shape: f32[1,16], index: 3, kind: input, shape index: {}]   ;;  %s1083_s5 = inlined_call_operand.vmem [shape: f32[128,16], index: 5, kind: output, shape index: {}]  }
   0x1   :  { %689 = vset.pattern.permute.xlu1 %v762_v0  ;;  %688 = vset.pattern.permute.xlu0 %v762_v0  ;;  %v46_v1 = vld [vmem:[%s1078_s2 + $0x40] sm:$0xff]  ;;  %v47_v3 = vld [vmem:[%s1078_s2 + $0x48] sm:$0xff]  ;;  %v41_v5 = vld [vmem:[%s1078_s2 + $0x18] sm:$0xff] }
   0x2   :  { %v38_v2 = vld [vmem:[%s1078_s2] sm:$0xff]  ;;  %148 = vperm.xlu1 %689, %v46_v1   ;;  %v39_v4 = vld [vmem:[%s1078_s2 + $0x8] sm:$0xff]  ;;  %v40_v6 = vld [vmem:[%s1078_s2 + $0x10] sm:$0xff] }
   0x3   :  { %108 = vperm.xlu0 %688, %v38_v2   ;;  %v49_v7 = vld [vmem:[%s1078_s2 + $0x58] sm:$0xff]  ;;  %v48_v8 = vld [vmem:[%s1078_s2 + $0x50] sm:$0xff]  ;;  %v43_v9 = vld [vmem:[%s1078_s2 + $0x28] sm:$0xff] }
   0x4   :  { %v42_v10 = vld [vmem:[%s1078_s2 + $0x20] sm:$0xff]  ;;  %v51_v11 = vld [vmem:[%s1078_s2 + $0x68] sm:$0xff]  ;;  %v45_v13 = vld [vmem:[%s1078_s2 + $0x38] sm:$0xff] }
   0x5   :  { %v50_v12 = vld [vmem:[%s1078_s2 + $0x60] sm:$0xff]  ;;  %v44_v14 = vld [vmem:[%s1078_s2 + $0x30] sm:$0xff]  ;;  %v53_v15 = vld [vmem:[%s1078_s2 + $0x78] sm:$0xff] }
   0x6   :  { %153 = vperm.xlu1 %689, %v47_v3   ;;  %v52_v16 = vld [vmem:[%s1078_s2 + $0x70] sm:$0xff]  ;;  %v690_v17 = vld [vmem:[%s1079_s0] sm:$0xff]   ;;  %v865_v48 = vld [vmem:[%s1080_s4 + $0x8] sm:$0xff] }
   0x7   :  { %113 = vperm.xlu0 %688, %v39_v4   ;;  %639 = vmatprep.subr.bf16.mxu0 %v690_v17  ;;  %v54_v18 = vld [vmem:[%s1080_s4] sm:$0xff]  ;;  %v56_v20 = vld [vmem:[%s1080_s4 + $0x10] sm:$0xff]  ;;  %v62_v59 = vunpack.c.0.s8 %v865_v48  ;;  %v882_v63 = vld [vmem:[%s1080_s4 + $0x18] sm:$0xff]  ;;  %v63_v3 = vunpack.c.1.s8 %v865_v48 }
   0x8   :  { %671 = vmatprep.subr.bf16.mxu1 %v690_v17  ;;  %640 = vmatpush3.bf16.msra.mxu0 %v690_v17  ;;  %v58_v19 = vunpack.c.0.s8 %v54_v18  ;;  %v853_v21 = vld [vmem:[%s1081_s1] ss:$0 sm:$0xff]  ;;  %v59_v22 = vunpack.c.1.s8 %v54_v18  ;;  %v66_v23 = vunpack.c.0.s8 %v56_v20  ;;  %v67_v27 = vunpack.c.1.s8 %v56_v20 }
   0x9   :  { %679 = vmatpush3.bf16.msra.mxu1 %v690_v17  ;;  %v60_v32 = vunpack.c.2.s8 %v54_v18  ;;  %v61_v38 = vunpack.c.3.s8 %v54_v18  ;;  %v68_v42 = vunpack.c.2.s8 %v56_v20  ;;  %v69_v52 = vunpack.c.3.s8 %v56_v20 }
   0xa   :  { %123 = vperm.xlu1 %689, %v41_v5   ;;  %v74_v24 = vcvt.s32.f32 %v58_v19  ;;  %v75_v30 = vcvt.s32.f32 %v59_v22  ;;  %v82_v31 = vcvt.s32.f32 %v66_v23  ;;  %v83_v37 = vcvt.s32.f32 %v67_v27 }
   0xb   :  { %118 = vperm.xlu0 %688, %v40_v6   ;;  %v76_v44 = vcvt.s32.f32 %v60_v32  ;;  %v77_v51 = vcvt.s32.f32 %v61_v38  ;;  %v84_v56 = vcvt.s32.f32 %v68_v42  ;;  %v85_v2 = vcvt.s32.f32 %v69_v52 }
   0xc   :  { %vm90_vm0 = vcmp.gt.f32.partialorder %v74_v24, 0.0  ;;  %vm91_vm3 = vcmp.gt.f32.partialorder %v75_v30, 0.0  ;;  %vm98_vm4 = vcmp.gt.f32.partialorder %v82_v31, 0.0  ;;  %vm99_vm6 = vcmp.gt.f32.partialorder %v83_v37, 0.0 }
   0xd   :  { %vm92_vm8 = vcmp.gt.f32.partialorder %v76_v44, 0.0  ;;  %vm93_vm10 = vcmp.gt.f32.partialorder %v77_v51, 0.0  ;;  %vm100_vm12 = vcmp.gt.f32.partialorder %v84_v56, 0.0  ;;  %vm101_vm14 = vcmp.gt.f32.partialorder %v85_v2, 0.0  ;;  %v692_v51 = vld [vmem:[%s1079_s0 + $0x10] sm:$0xff]  }
   0xe   :  { %163 = vperm.xlu1 %689, %v49_v7   ;;  %v71_v17 = vunpack.c.1.s8 %v882_v63  ;;  %v64_v22 = vunpack.c.2.s8 %v865_v48  ;;  %v65_v32 = vunpack.c.3.s8 %v865_v48 }
   0xf   :  { %158 = vperm.xlu0 %688, %v48_v8  }
  0x10   :  { %v87_v31 = vcvt.s32.f32 %v71_v17  ;;  %v80_v37 = vcvt.s32.f32 %v64_v22  ;;  %v696_v17 = vld [vmem:[%s1079_s0 + $0x30] sm:$0xff]  }
  0x12   :  { %133 = vperm.xlu1 %689, %v43_v9   ;;  %v78_v9 = vcvt.s32.f32 %v62_v59 }
  0x13   :  { %128 = vperm.xlu0 %688, %v42_v10   ;;  %v70_v10 = vunpack.c.0.s8 %v882_v63 }
  0x16   :  { %173 = vperm.xlu1 %689, %v51_v11  }
  0x17   :  { %168 = vperm.xlu0 %688, %v50_v12  }
  0x1a   :  { %143 = vperm.xlu1 %689, %v45_v13  }
  0x1b   :  { %138 = vperm.xlu0 %688, %v44_v14  }
  0x1e   :  { %183 = vperm.xlu1 %689, %v53_v15  }
  0x1f   :  { %178 = vperm.xlu0 %688, %v52_v16   ;;  %v79_v16 = vcvt.s32.f32 %v63_v3 }
  0x81   :  { %v149_v25 = vpop.permute.xlu1 %148 }
  0x82   :  { %v109_v26 = vpop.permute.xlu0 %108  ;;  %v200_v28 = vadd.f32 %v853_v21, %v149_v25  ;;  %v86_v25 = vcvt.s32.f32 %v70_v10 }
  0x83   :  { %v192_v29 = vadd.f32 %v853_v21, %v109_v26 }
  0x84   :  { %v232_v33 = vmul.f32 0.2, %v200_v28  ;;  %vm216_vm2 = vcmp.gt.f32.partialorder %v200_v28, 0.0 }
  0x85   :  { %v224_v34 = vmul.f32 0.2, %v192_v29  ;;  %vm208_vm1 = vcmp.gt.f32.partialorder %v192_v29, 0.0  ;;  %v154_v35 = vpop.permute.xlu1 %153 }
  0x86   :  { %v114_v36 = vpop.permute.xlu0 %113  ;;  %v201_v39 = vadd.f32 %v853_v21, %v154_v35  ;;  %v248_v47 = vsel %vm216_vm2, %v200_v28, %v232_v33  ;;  %vm95_vm2 = vcmp.gt.f32.partialorder %v79_v16, 0.0  ;;  %v691_v33 = vld [vmem:[%s1079_s0 + $0x8] sm:$0xff]  }
  0x87   :  { %v193_v40 = vadd.f32 %v853_v21, %v114_v36  ;;  %v240_v41 = vsel %vm208_vm1, %v192_v29, %v224_v34  ;;  %v873_v58 = vsel %vm98_vm4, %v248_v47, -1e+30  ;;  %vm102_vm4 = vcmp.gt.f32.partialorder %v86_v25, 0.0  ;;  %641 = vmatprep.subr.bf16.mxu0 %v691_v33  ;;  %672 = vmatprep.subr.bf16.mxu1 %v691_v33 }
  0x88   :  { %v859_v43 = vsel %vm90_vm0, %v240_v41, -1e+30  ;;  %v233_v45 = vmul.f32 0.2, %v201_v39  ;;  %vm217_vm7 = vcmp.gt.f32.partialorder %v201_v39, 0.0  ;;  %vm94_vm0 = vcmp.gt.f32.partialorder %v78_v9, 0.0  ;;  %642 = vmatpush3.bf16.msra.mxu0 %v691_v33  ;;  %680 = vmatpush3.bf16.msra.mxu1 %v691_v33 }
  0x89   :  { %v225_v46 = vmul.f32 0.2, %v193_v40  ;;  %272 = vmax.xlane.f32.xlu0 %v859_v43  ;;  %vm209_vm5 = vcmp.gt.f32.partialorder %v193_v40, 0.0  ;;  %v124_v49 = vpop.permute.xlu1 %123  ;;  %v81_v47 = vcvt.s32.f32 %v65_v32  ;;  %643 = vmatprep.subr.bf16.mxu0 %v692_v51 }
  0x8a   :  { %v119_v50 = vpop.permute.xlu0 %118  ;;  %v195_v53 = vadd.f32 %v853_v21, %v124_v49  ;;  %v249_v62 = vsel %vm217_vm7, %v201_v39, %v233_v45  ;;  %673 = vmatprep.subr.bf16.mxu1 %v692_v51 }
  0x8b   :  { %v194_v54 = vadd.f32 %v853_v21, %v119_v50  ;;  %v241_v55 = vsel %vm209_vm5, %v193_v40, %v225_v46  ;;  %v891_v8 = vsel %vm99_vm6, %v249_v62, -1e+30  ;;  %v72_v40 = vunpack.c.2.s8 %v882_v63 }
  0x8c   :  { %v870_v57 = vsel %vm91_vm3, %v241_v55, -1e+30  ;;  %v227_v60 = vmul.f32 0.2, %v195_v53  ;;  %vm211_vm11 = vcmp.gt.f32.partialorder %v195_v53, 0.0  ;;  %vm103_vm6 = vcmp.gt.f32.partialorder %v87_v31, 0.0  ;;  %644 = vmatpush3.bf16.msra.mxu0 %v692_v51  ;;  %681 = vmatpush3.bf16.msra.mxu1 %v692_v51 }
  0x8d   :  { %v226_v61 = vmul.f32 0.2, %v194_v54  ;;  %274 = vmax.xlane.f32.xlu1 %v870_v57  ;;  %288 = vmax.xlane.f32.xlu0 %v873_v58  ;;  %vm210_vm9 = vcmp.gt.f32.partialorder %v194_v54, 0.0  ;;  %v164_v0 = vpop.permute.xlu1 %163  ;;  %v73_v55 = vunpack.c.3.s8 %v882_v63  ;;  %v693_v63 = vld [vmem:[%s1079_s0 + $0x18] sm:$0xff]  }
  0x8e   :  { %v159_v1 = vpop.permute.xlu0 %158  ;;  %v203_v4 = vadd.f32 %v853_v21, %v164_v0  ;;  %v243_v13 = vsel %vm211_vm11, %v195_v53, %v227_v60  ;;  %vm97_vm11 = vcmp.gt.f32.partialorder %v81_v47, 0.0  ;;  %645 = vmatprep.subr.bf16.mxu0 %v693_v63  ;;  %674 = vmatprep.subr.bf16.mxu1 %v693_v63 }
  0x8f   :  { %v202_v5 = vadd.f32 %v853_v21, %v159_v1  ;;  %v242_v6 = vsel %vm210_vm9, %v194_v54, %v226_v61  ;;  %v905_v24 = vsel %vm93_vm10, %v243_v13, -1e+30  ;;  %v88_v54 = vcvt.s32.f32 %v72_v40 }
  0x90   :  { %v888_v7 = vsel %vm92_vm8, %v242_v6, -1e+30  ;;  %v235_v11 = vmul.f32 0.2, %v203_v4  ;;  %vm219_vm15 = vcmp.gt.f32.partialorder %v203_v4, 0.0  ;;  %vm96_vm8 = vcmp.gt.f32.partialorder %v80_v37, 0.0  ;;  %646 = vmatpush3.bf16.msra.mxu0 %v693_v63  ;;  %682 = vmatpush3.bf16.msra.mxu1 %v693_v63 }
  0x91   :  { %v234_v12 = vmul.f32 0.2, %v202_v5  ;;  %276 = vmax.xlane.f32.xlu1 %v888_v7  ;;  %290 = vmax.xlane.f32.xlu0 %v891_v8  ;;  %vm218_vm13 = vcmp.gt.f32.partialorder %v202_v5, 0.0  ;;  %v134_v14 = vpop.permute.xlu1 %133 }
  0x92   :  { %v129_v15 = vpop.permute.xlu0 %128  ;;  %v197_v18 = vadd.f32 %v853_v21, %v134_v14  ;;  %v251_v28 = vsel %vm219_vm15, %v203_v4, %v235_v11  ;;  %v694_v11 = vld [vmem:[%s1079_s0 + $0x20] sm:$0xff]  }
  0x93   :  { %v196_v19 = vadd.f32 %v853_v21, %v129_v15  ;;  %v250_v20 = vsel %vm218_vm13, %v202_v5, %v234_v12  ;;  %v920_v39 = vsel %vm101_vm14, %v251_v28, -1e+30  ;;  %v89_v5 = vcvt.s32.f32 %v73_v55  ;;  %647 = vmatprep.subr.bf16.mxu0 %v694_v11  ;;  %675 = vmatprep.subr.bf16.mxu1 %v694_v11  ;;  %v695_v15 = vld [vmem:[%s1079_s0 + $0x28] sm:$0xff]  }
  0x94   :  { %v902_v23 = vsel %vm100_vm12, %v250_v20, -1e+30  ;;  %v229_v26 = vmul.f32 0.2, %v197_v18  ;;  %vm213_vm3 = vcmp.gt.f32.partialorder %v197_v18, 0.0  ;;  %vm104_vm12 = vcmp.gt.f32.partialorder %v88_v54, 0.0  ;;  %648 = vmatpush3.bf16.msra.mxu0 %v694_v11  ;;  %683 = vmatpush3.bf16.msra.mxu1 %v694_v11 }
  0x95   :  { %v228_v27 = vmul.f32 0.2, %v196_v19  ;;  %292 = vmax.xlane.f32.xlu1 %v902_v23  ;;  %278 = vmax.xlane.f32.xlu0 %v905_v24  ;;  %vm212_vm1 = vcmp.gt.f32.partialorder %v196_v19, 0.0  ;;  %v174_v29 = vpop.permute.xlu1 %173  ;;  %vm105_vm15 = vcmp.gt.f32.partialorder %v89_v5, 0.0 }
  0x96   :  { %v169_v30 = vpop.permute.xlu0 %168  ;;  %v205_v34 = vadd.f32 %v853_v21, %v174_v29  ;;  %v245_v44 = vsel %vm213_vm3, %v197_v18, %v229_v26  ;;  %649 = vmatprep.subr.bf16.mxu0 %v695_v15  ;;  %676 = vmatprep.subr.bf16.mxu1 %v695_v15  ;;  %v697_v18 = vld [vmem:[%s1079_s0 + $0x38] sm:$0xff]  }
  0x97   :  { %v204_v35 = vadd.f32 %v853_v21, %v169_v30  ;;  %v244_v36 = vsel %vm212_vm1, %v196_v19, %v228_v27  ;;  %v935_v53 = vsel %vm95_vm2, %v245_v44, -1e+30 }
  0x98   :  { %v917_v38 = vsel %vm94_vm0, %v244_v36, -1e+30  ;;  %v237_v41 = vmul.f32 0.2, %v205_v34  ;;  %vm221_vm7 = vcmp.gt.f32.partialorder %v205_v34, 0.0  ;;  %650 = vmatpush3.bf16.msra.mxu0 %v695_v15  ;;  %684 = vmatpush3.bf16.msra.mxu1 %v695_v15  ;;  %vm592_vm0 = vcmask 130048  }
  0x99   :  { %v236_v42 = vmul.f32 0.2, %v204_v35  ;;  %280 = vmax.xlane.f32.xlu1 %v917_v38  ;;  %294 = vmax.xlane.f32.xlu0 %v920_v39  ;;  %vm220_vm5 = vcmp.gt.f32.partialorder %v204_v35, 0.0  ;;  %v144_v45 = vpop.permute.xlu1 %143 }
  0x9a   :  { %v139_v46 = vpop.permute.xlu0 %138  ;;  %v199_v48 = vadd.f32 %v853_v21, %v144_v45  ;;  %v253_v60 = vsel %vm221_vm7, %v205_v34, %v237_v41  ;;  %651 = vmatprep.subr.bf16.mxu0 %v696_v17  ;;  %677 = vmatprep.subr.bf16.mxu1 %v696_v17 }
  0x9b   :  { %v198_v49 = vadd.f32 %v853_v21, %v139_v46  ;;  %v252_v50 = vsel %vm220_vm5, %v204_v35, %v236_v42  ;;  %v950_v4 = vsel %vm103_vm6, %v253_v60, -1e+30 }
  0x9c   :  { %v932_v52 = vsel %vm102_vm4, %v252_v50, -1e+30  ;;  %v231_v56 = vmul.f32 0.2, %v199_v48  ;;  %vm215_vm10 = vcmp.gt.f32.partialorder %v199_v48, 0.0  ;;  %652 = vmatpush3.bf16.msra.mxu0 %v696_v17  ;;  %685 = vmatpush3.bf16.msra.mxu1 %v696_v17 }
  0x9d   :  { %v230_v59 = vmul.f32 0.2, %v198_v49  ;;  %296 = vmax.xlane.f32.xlu1 %v932_v52  ;;  %282 = vmax.xlane.f32.xlu0 %v935_v53  ;;  %vm214_vm9 = vcmp.gt.f32.partialorder %v198_v49, 0.0  ;;  %v184_v61 = vpop.permute.xlu1 %183 }
  0x9e   :  { %v179_v62 = vpop.permute.xlu0 %178  ;;  %v207_v0 = vadd.f32 %v853_v21, %v184_v61  ;;  %653 = vmatprep.subr.bf16.mxu0 %v697_v18  ;;  %678 = vmatprep.subr.bf16.mxu1 %v697_v18 }
  0x9f   :  { %v206_v1 = vadd.f32 %v853_v21, %v179_v62  ;;  %v246_v2 = vsel %vm214_vm9, %v198_v49, %v230_v59  ;;  %v247_v21 = vsel %vm215_vm10, %v199_v48, %v231_v56 }
  0xa0   :  { %v947_v3 = vsel %vm96_vm8, %v246_v2, -1e+30  ;;  %v239_v6 = vmul.f32 0.2, %v207_v0  ;;  %vm223_vm14 = vcmp.gt.f32.partialorder %v207_v0, 0.0  ;;  %654 = vmatpush3.bf16.msra.mxu0 %v697_v18  ;;  %686 = vmatpush3.bf16.msra.mxu1 %v697_v18 }
  0xa1   :  { %v238_v9 = vmul.f32 0.2, %v206_v1  ;;  %284 = vmax.xlane.f32.xlu1 %v947_v3  ;;  %298 = vmax.xlane.f32.xlu0 %v950_v4  ;;  %vm222_vm13 = vcmp.gt.f32.partialorder %v206_v1, 0.0  ;;  %v961_v13 = vsel %vm97_vm11, %v247_v21, -1e+30 }
  0xa2   :  { %v255_v14 = vsel %vm223_vm14, %v207_v0, %v239_v6 }
  0xa3   :  { %v254_v10 = vsel %vm222_vm13, %v206_v1, %v238_v9  ;;  %v968_v16 = vsel %vm105_vm15, %v255_v14, -1e+30 }
  0xa4   :  { %v958_v12 = vsel %vm104_vm12, %v254_v10, -1e+30 }
  0xa5   :  { %300 = vmax.xlane.f32.xlu1 %v958_v12  ;;  %286 = vmax.xlane.f32.xlu0 %v961_v13 }
  0xa9   :  { %302 = vmax.xlane.f32.xlu0 %v968_v16 }
 0x116   :  { %v273_v19 = vpop.xlane.xlu0 %272 }
 0x117   :  { %v304_v20 = vsub.f32 %v859_v43, %v273_v19 }
 0x119   :  { %v320_v22 = vmul.f32 1.442695, %v304_v20 }
 0x11a   :  { %v275_v25 = vpop.xlane.xlu1 %274  ;;  %v289_v26 = vpop.xlane.xlu0 %288 }
 0x11b   :  { %698 = vpow2.f32 %v320_v22  ;;  %v305_v27 = vsub.f32 %v870_v57, %v275_v25  ;;  %v312_v28 = vsub.f32 %v873_v58, %v289_v26 }
 0x11d   :  { %v322_v29 = vmul.f32 1.442695, %v305_v27  ;;  %v336_v30 = vmul.f32 1.442695, %v312_v28 }
 0x11e   :  { %v277_v31 = vpop.xlane.xlu1 %276  ;;  %v291_v32 = vpop.xlane.xlu0 %290 }
 0x11f   :  { %700 = vpow2.f32 %v322_v29  ;;  %v306_v33 = vsub.f32 %v888_v7, %v277_v31  ;;  %v313_v34 = vsub.f32 %v891_v8, %v291_v32 }
 0x120   :  { %702 = vpow2.f32 %v336_v30 }
 0x121   :  { %v324_v35 = vmul.f32 1.442695, %v306_v33  ;;  %v338_v36 = vmul.f32 1.442695, %v313_v34 }
 0x122   :  { %v293_v43 = vpop.xlane.xlu1 %292  ;;  %v279_v37 = vpop.xlane.xlu0 %278 }
 0x123   :  { %704 = vpow2.f32 %v324_v35  ;;  %v314_v40 = vsub.f32 %v902_v23, %v293_v43  ;;  %v307_v57 = vsub.f32 %v905_v24, %v279_v37 }
 0x124   :  { %706 = vpow2.f32 %v338_v36 }
 0x125   :  { %v699_v58 = vpop.eup %698  ;;  %v326_v41 = vmul.f32 1.442695, %v307_v57  ;;  %v340_v42 = vmul.f32 1.442695, %v314_v40 }
 0x126   :  { %v281_v44 = vpop.xlane.xlu1 %280  ;;  %352 = vadd.xlane.f32.xlu1 %v699_v58  ;;  %v295_v45 = vpop.xlane.xlu0 %294 }
 0x127   :  { %v308_v7 = vsub.f32 %v917_v38, %v281_v44  ;;  %v315_v8 = vsub.f32 %v920_v39, %v295_v45  ;;  %708 = vpow2.f32 %v326_v41  ;;  %v996_v45 = vld [vmem:[%s1082_s3] ss:$0 sm:$0xff] }
 0x128   :  { %710 = vpow2.f32 %v340_v42 }
 0x129   :  { %v701_v46 = vpop.eup %700  ;;  %v328_v47 = vmul.f32 1.442695, %v308_v7  ;;  %v342_v48 = vmul.f32 1.442695, %v315_v8 }
 0x12a   :  { %v297_v49 = vpop.xlane.xlu1 %296  ;;  %354 = vadd.xlane.f32.xlu0 %v701_v46  ;;  %v283_v23 = vpop.xlane.xlu0 %282  ;;  %v384_v24 = vpack.c.bf16 %v701_v46, %v699_v58 }
 0x12b   :  { %712 = vpow2.f32 %v328_v47  ;;  %v316_v50 = vsub.f32 %v932_v52, %v297_v49  ;;  %v309_v51 = vsub.f32 %v935_v53, %v283_v23  ;;  %v703_v54 = vpop.eup %702 }
 0x12c   :  { %714 = vpow2.f32 %v342_v48  ;;  %655 = vmatprep.mubr.bf16.mxu0 %v384_v24 }
 0x12d   :  { %v705_v38 = vpop.eup %704  ;;  %v330_v55 = vmul.f32 1.442695, %v309_v51  ;;  %v344_v56 = vmul.f32 1.442695, %v316_v50 }
 0x12e   :  { %v707_v39 = vpop.eup %706  ;;  %v285_v59 = vpop.xlane.xlu1 %284  ;;  %356 = vadd.xlane.f32.xlu1 %v705_v38 }
 0x12f   :  { %v299_v60 = vpop.xlane.xlu0 %298  ;;  %v310_v61 = vsub.f32 %v947_v3, %v285_v59  ;;  %v388_v0 = vpack.c.bf16 %v707_v39, %v703_v54  ;;  %716 = vpow2.f32 %v330_v55 }
 0x130   :  { %v317_v62 = vsub.f32 %v950_v4, %v299_v60  ;;  %718 = vpow2.f32 %v344_v56 }
 0x131   :  { %v332_v1 = vmul.f32 1.442695, %v310_v61  ;;  %663 = vmatprep.mubr.bf16.mxu1 %v388_v0  ;;  %v709_v53 = vpop.eup %708 }
 0x132   :  { %v346_v52 = vmul.f32 1.442695, %v317_v62  ;;  %v301_v2 = vpop.xlane.xlu1 %300  ;;  %358 = vadd.xlane.f32.xlu0 %v709_v53  ;;  %v385_v9 = vpack.c.bf16 %v709_v53, %v705_v38  ;;  %v711_v21 = vpop.eup %710 }
 0x133   :  { %v287_v63 = vpop.xlane.xlu0 %286  ;;  %720 = vpow2.f32 %v332_v1  ;;  %v318_v5 = vsub.f32 %v958_v12, %v301_v2 }
 0x134   :  { %v311_v6 = vsub.f32 %v961_v13, %v287_v63  ;;  %722 = vpow2.f32 %v346_v52  ;;  %656 = vmatmul.mubr.bf16.vlgmr.msra.gmra.mrb[0].mxu0 %v385_v9 }
 0x135   :  { %v713_v3 = vpop.eup %712  ;;  %v348_v11 = vmul.f32 1.442695, %v318_v5 }
 0x136   :  { %v334_v4 = vmul.f32 1.442695, %v311_v6  ;;  %v715_v10 = vpop.eup %714  ;;  %360 = vadd.xlane.f32.xlu1 %v713_v3 }
 0x137   :  { %v303_v14 = vpop.xlane.xlu0 %302  ;;  %v389_v17 = vpack.c.bf16 %v715_v10, %v711_v21 }
 0x138   :  { %v319_v15 = vsub.f32 %v968_v16, %v303_v14  ;;  %724 = vpow2.f32 %v334_v4 }
 0x139   :  { %664 = vmatmul.mubr.bf16.vlgmr.msra.gmra.mrb[0].mxu1 %v389_v17  ;;  %v717_v12 = vpop.eup %716  ;;  %726 = vpow2.f32 %v348_v11 }
 0x13a   :  { %v350_v18 = vmul.f32 1.442695, %v319_v15  ;;  %362 = vadd.xlane.f32.xlu0 %v717_v12  ;;  %v386_v13 = vpack.c.bf16 %v717_v12, %v713_v3  ;;  %v719_v19 = vpop.eup %718 }
 0x13c   :  { %728 = vpow2.f32 %v350_v18  ;;  %659 = vmatprep.mubr.bf16.mxu0 %v386_v13 }
 0x13d   :  { %v721_v20 = vpop.eup %720 }
 0x13e   :  { %v723_v22 = vpop.eup %722  ;;  %364 = vadd.xlane.f32.xlu1 %v721_v20 }
 0x13f   :  { %v390_v25 = vpack.c.bf16 %v723_v22, %v719_v19 }
 0x141   :  { %667 = vmatprep.mubr.bf16.mxu1 %v390_v25 }
 0x142   :  { %v725_v26 = vpop.eup %724  ;;  %368 = vadd.xlane.f32.xlu1 %v703_v54 }
 0x143   :  { %366 = vadd.xlane.f32.xlu0 %v725_v26  ;;  %v387_v16 = vpack.c.bf16 %v725_v26, %v721_v20  ;;  %v727_v27 = vpop.eup %726 }
 0x145   :  { %660 = vmatmul.mubr.bf16.gmra.mrb[4].mxu0 %v387_v16 }
 0x146   :  { %v729_v28 = vpop.eup %728  ;;  %372 = vadd.xlane.f32.xlu1 %v711_v21 }
 0x147   :  { %v391_v29 = vpack.c.bf16 %v729_v28, %v727_v27  ;;  %370 = vadd.xlane.f32.xlu0 %v707_v39 }
 0x149   :  { %668 = vmatmul.mubr.bf16.gmra.mrb[4].mxu1 %v391_v29 }
 0x14a   :  { %376 = vadd.xlane.f32.xlu1 %v719_v19 }
 0x14b   :  { %374 = vadd.xlane.f32.xlu0 %v715_v10 }
 0x14e   :  { %380 = vadd.xlane.f32.xlu1 %v727_v27 }
 0x14f   :  { %378 = vadd.xlane.f32.xlu0 %v723_v22 }
 0x153   :  { %382 = vadd.xlane.f32.xlu0 %v729_v28 }
 0x1b3   :  { %v353_v30 = vpop.xlane.xlu1 %352 }
 0x1b7   :  { %v355_v31 = vpop.xlane.xlu0 %354 }
 0x1bb   :  { %v357_v32 = vpop.xlane.xlu1 %356 }
 0x1bc   :  { %730 = vrcp.f32 %v357_v32 }
 0x1bd   :  { %732 = vrcp.f32 %v353_v30 }
 0x1bf   :  { %v359_v33 = vpop.xlane.xlu0 %358 }
 0x1c0   :  { %734 = vrcp.f32 %v359_v33 }
 0x1c1   :  { %736 = vrcp.f32 %v355_v31 }
 0x1c3   :  { %v361_v34 = vpop.xlane.xlu1 %360 }
 0x1c6   :  { %v731_v41 = vpop.eup %730 }
 0x1c7   :  { %v363_v35 = vpop.xlane.xlu0 %362  ;;  %v733_v7 = vpop.eup %732 }
 0x1ca   :  { %v735_v47 = vpop.eup %734 }
 0x1cb   :  { %v365_v36 = vpop.xlane.xlu1 %364  ;;  %v737_v24 = vpop.eup %736 }
 0x1cf   :  { %v369_v37 = vpop.xlane.xlu1 %368 }
 0x1d0   :  { %v367_v43 = vpop.xlane.xlu0 %366 }
 0x1d3   :  { %v373_v57 = vpop.xlane.xlu1 %372 }
 0x1d4   :  { %v371_v40 = vpop.xlane.xlu0 %370  ;;  %738 = vrcp.f32 %v373_v57 }
 0x1d5   :  { %740 = vrcp.f32 %v369_v37 }
 0x1d7   :  { %v377_v42 = vpop.xlane.xlu1 %376 }
 0x1d8   :  { %v375_v58 = vpop.xlane.xlu0 %374 }
 0x1d9   :  { %742 = vrcp.f32 %v375_v58 }
 0x1da   :  { %744 = vrcp.f32 %v371_v40 }
 0x1db   :  { %746 = vrcp.f32 %v361_v34  ;;  %v381_v1 = vpop.xlane.xlu1 %380 }
 0x1dc   :  { %v379_v48 = vpop.xlane.xlu0 %378  ;;  %748 = vrcp.f32 %v365_v36 }
 0x1dd   :  { %750 = vrcp.f32 %v363_v35 }
 0x1de   :  { %v739_v38 = vpop.eup %738  ;;  %752 = vrcp.f32 %v367_v43 }
 0x1df   :  { %v741_v59 = vpop.eup %740  ;;  %754 = vrcp.f32 %v381_v1 }
 0x1e0   :  { %v383_v21 = vpop.xlane.xlu0 %382  ;;  %756 = vrcp.f32 %v377_v42 }
 0x1e1   :  { %758 = vrcp.f32 %v383_v21 }
 0x1e2   :  { %760 = vrcp.f32 %v379_v48 }
 0x1e3   :  { %v743_v0 = vpop.eup %742 }
 0x1e4   :  { %v745_v63 = vpop.eup %744 }
 0x1e5   :  { %v747_v14 = vpop.eup %746 }
 0x1e6   :  { %v749_v15 = vpop.eup %748 }
 0x1e7   :  { %v751_v18 = vpop.eup %750 }
 0x1e8   :  { %v753_v19 = vpop.eup %752 }
 0x1e9   :  { %v755_v25 = vpop.eup %754 }
 0x1ea   :  { %v757_v29 = vpop.eup %756 }
 0x1eb   :  { %v759_v34 = vpop.eup %758 }
 0x1ec   :  { %v761_v37 = vpop.eup %760 }
 0x207   :  { %v657_v44 = vpop.f32.mrb[0].mxu0 }
 0x208   :  { %v555_v8 = vmul.f32 %v731_v41, %v657_v44  ;;  %v474_v46 = vpop.f32.mrb[1].mxu0 }
 0x209   :  { %v553_v49 = vmul.f32 %v733_v7, %v474_v46  ;;  %v658_v23 = vpop.f32.mrb[2].mxu0 }
 0x20a   :  { %v578_v50 = vadd.f32 %v996_v45, %v555_v8  ;;  %v556_v51 = vmul.f32 %v735_v47, %v658_v23  ;;  %v477_v54 = vpop.f32.mrb[3].mxu0 }
 0x20b   :  { %v576_v55 = vadd.f32 %v996_v45, %v553_v49  ;;  %v554_v39 = vmul.f32 %v737_v24, %v477_v54 }
 0x20c   :  { %v665_v56 = vpop.f32.mrb[0].mxu1  ;;  %595 = vst.msk [vmem:[%s1083_s5 + $0x10] sm:$0xff] %vm592_vm0, %v578_v50  ;;  %v579_v60 = vadd.f32 %v996_v45, %v556_v51 }
 0x20d   :  { %v563_v61 = vmul.f32 %v739_v38, %v665_v56  ;;  %v506_v62 = vpop.f32.mrb[1].mxu1  ;;  %593 = vst.msk [vmem:[%s1083_s5] sm:$0xff] %vm592_vm0, %v576_v55  ;;  %v577_v52 = vadd.f32 %v996_v45, %v554_v39 }
 0x20e   :  { %v561_v53 = vmul.f32 %v741_v59, %v506_v62  ;;  %v666_v2 = vpop.f32.mrb[2].mxu1  ;;  %596 = vst.msk [vmem:[%s1083_s5 + $0x18] sm:$0xff] %vm592_vm0, %v579_v60 }
 0x20f   :  { %v586_v5 = vadd.f32 %v996_v45, %v563_v61  ;;  %v564_v6 = vmul.f32 %v743_v0, %v666_v2  ;;  %v509_v9 = vpop.f32.mrb[3].mxu1  ;;  %594 = vst.msk [vmem:[%s1083_s5 + $0x8] sm:$0xff] %vm592_vm0, %v577_v52 }
 0x210   :  { %v584_v3 = vadd.f32 %v996_v45, %v561_v53  ;;  %v562_v4 = vmul.f32 %v745_v63, %v509_v9 }
 0x211   :  { %603 = vst.msk [vmem:[%s1083_s5 + $0x50] sm:$0xff] %vm592_vm0, %v586_v5  ;;  %v587_v10 = vadd.f32 %v996_v45, %v564_v6 }
 0x212   :  { %601 = vst.msk [vmem:[%s1083_s5 + $0x40] sm:$0xff] %vm592_vm0, %v584_v3  ;;  %v585_v11 = vadd.f32 %v996_v45, %v562_v4 }
 0x213   :  { %604 = vst.msk [vmem:[%s1083_s5 + $0x58] sm:$0xff] %vm592_vm0, %v587_v10 }
 0x214   :  { %602 = vst.msk [vmem:[%s1083_s5 + $0x48] sm:$0xff] %vm592_vm0, %v585_v11 }
 0x218   :  { %v661_v17 = vpop.f32.mrb[4].mxu0 }
 0x219   :  { %v559_v12 = vmul.f32 %v749_v15, %v661_v17  ;;  %v490_v13 = vpop.f32.mrb[5].mxu0 }
 0x21a   :  { %v557_v20 = vmul.f32 %v747_v14, %v490_v13  ;;  %v662_v22 = vpop.f32.mrb[6].mxu0 }
 0x21b   :  { %v582_v26 = vadd.f32 %v996_v45, %v559_v12  ;;  %v560_v16 = vmul.f32 %v753_v19, %v662_v22  ;;  %v493_v27 = vpop.f32.mrb[7].mxu0 }
 0x21c   :  { %v669_v28 = vpop.f32.mrb[4].mxu1  ;;  %v580_v30 = vadd.f32 %v996_v45, %v557_v20  ;;  %v558_v31 = vmul.f32 %v751_v18, %v493_v27 }
 0x21d   :  { %v567_v32 = vmul.f32 %v755_v25, %v669_v28  ;;  %v522_v33 = vpop.f32.mrb[5].mxu1  ;;  %599 = vst.msk [vmem:[%s1083_s5 + $0x30] sm:$0xff] %vm592_vm0, %v582_v26  ;;  %v583_v35 = vadd.f32 %v996_v45, %v560_v16 }
 0x21e   :  { %v565_v36 = vmul.f32 %v757_v29, %v522_v33  ;;  %v670_v43 = vpop.f32.mrb[6].mxu1  ;;  %597 = vst.msk [vmem:[%s1083_s5 + $0x20] sm:$0xff] %vm592_vm0, %v580_v30  ;;  %v581_v40 = vadd.f32 %v996_v45, %v558_v31 }
 0x21f   :  { %v590_v57 = vadd.f32 %v996_v45, %v567_v32  ;;  %v568_v58 = vmul.f32 %v759_v34, %v670_v43  ;;  %v525_v41 = vpop.f32.mrb[7].mxu1  ;;  %600 = vst.msk [vmem:[%s1083_s5 + $0x38] sm:$0xff] %vm592_vm0, %v583_v35 }
 0x220   :  { %v588_v42 = vadd.f32 %v996_v45, %v565_v36  ;;  %v566_v44 = vmul.f32 %v761_v37, %v525_v41  ;;  %598 = vst.msk [vmem:[%s1083_s5 + $0x28] sm:$0xff] %vm592_vm0, %v581_v40 }
 0x221   :  { %607 = vst.msk [vmem:[%s1083_s5 + $0x70] sm:$0xff] %vm592_vm0, %v590_v57  ;;  %v591_v7 = vadd.f32 %v996_v45, %v568_v58 }
 0x222   :  { %605 = vst.msk [vmem:[%s1083_s5 + $0x60] sm:$0xff] %vm592_vm0, %v588_v42  ;;  %v589_v8 = vadd.f32 %v996_v45, %v566_v44 }
 0x223   :  { %608 = vst.msk [vmem:[%s1083_s5 + $0x78] sm:$0xff] %vm592_vm0, %v591_v7 }
 0x224   :  { %606 = vst.msk [vmem:[%s1083_s5 + $0x68] sm:$0xff] %vm592_vm0, %v589_v8 }

// kernel: gat_forward.5
= control target key start
LH: loop header
LB: loop body
LE: loop exit
PB: predicated region body
PF: predicated region fallthrough
CT: control target
= control target key end

     0   :  { %v2449_v0 = vmov 0   ;;  %v2450_v17 = vmov 1   ;;  %v186_v18 = vlaneseq  ;;  %s2453_s24 = smov 96   ;;  %s2455_s28 = smov 32   ;;  %s3986_s2 = inlined_call_operand.vmem [shape: f32[128,4], index: 2, kind: input, shape index: {}]   ;;  %s3987_s4 = inlined_call_operand.vmem [shape: s8[128,128], index: 4, kind: input, shape index: {}]   ;;  %s3988_s1 = inlined_call_operand.vmem [shape: f32[4,128], index: 1, kind: input, shape index: {}]   ;;  %s3989_s0 = inlined_call_operand.vmem [shape: bf16[128,128], index: 0, kind: input, shape index: {}]   ;;  %s3990_s3 = inlined_call_operand.vmem [shape: f32[1,32], index: 3, kind: input, shape index: {}]   ;;  %s3991_s5 = inlined_call_operand.vmem [shape: f32[128,32], index: 5, kind: output, shape index: {}]  }
   0x1   :  { %2162 = vset.pattern.permute.xlu0 %v2449_v0  ;;  %v2489_v1 = vld [vmem:[%s3986_s2] sm:$0xff]  ;;  %2163 = vset.pattern.permute.xlu1 %v2449_v0  ;;  %v2494_v2 = vld [vmem:[%s3986_s2 + $0x10] sm:$0xff]  ;;  %v2501_v3 = vld [vmem:[%s3986_s2 + $0x8] sm:$0xff] }
   0x2   :  { %108 = vperm.xlu0 %2162, %v2489_v1   ;;  %118 = vperm.xlu1 %2163, %v2494_v2   ;;  %v2506_v4 = vld [vmem:[%s3986_s2 + $0x18] sm:$0xff]  ;;  %v2513_v5 = vld [vmem:[%s3986_s2 + $0x20] sm:$0xff]  ;;  %v2518_v6 = vld [vmem:[%s3986_s2 + $0x28] sm:$0xff]  ;;  %v2591_v19 = vshrl.u32 %v186_v18, 7 }
   0x3   :  { %v2525_v7 = vld [vmem:[%s3986_s2 + $0x30] sm:$0xff]  ;;  %v2530_v8 = vld [vmem:[%s3986_s2 + $0x38] sm:$0xff]  ;;  %v2537_v9 = vld [vmem:[%s3986_s2 + $0x40] sm:$0xff] }
   0x4   :  { %v2542_v10 = vld [vmem:[%s3986_s2 + $0x48] sm:$0xff]  ;;  %v2549_v11 = vld [vmem:[%s3986_s2 + $0x50] sm:$0xff]  ;;  %v2554_v12 = vld [vmem:[%s3986_s2 + $0x58] sm:$0xff]  ;;  %4023 = vst [vmem:[#allocation2_spill] sm:$0xff] %v2591_v19  ;;  %v188_v21 = vsub.s32 0, %v2591_v19 }
   0x5   :  { %v2561_v13 = vld [vmem:[%s3986_s2 + $0x60] sm:$0xff]  ;;  %v2566_v14 = vld [vmem:[%s3986_s2 + $0x68] sm:$0xff]  ;;  %v2573_v15 = vld [vmem:[%s3986_s2 + $0x70] sm:$0xff] }
   0x6   :  { %113 = vperm.xlu0 %2162, %v2501_v3   ;;  %123 = vperm.xlu1 %2163, %v2506_v4   ;;  %v2578_v16 = vld [vmem:[%s3986_s2 + $0x78] sm:$0xff]  ;;  %v54_v20 = vld [vmem:[%s3987_s4] sm:$0xff]  ;;  %v55_v27 = vld [vmem:[%s3987_s4 + $0x8] sm:$0xff]  ;;  %s2454_s2 = smov 64  }
   0x7   :  { %v2600_v22 = vld [vmem:[%s3988_s1] sm:$0xf]  ;;  %v58_v23 = vunpack.c.0.s8 %v54_v20  ;;  %v59_v24 = vunpack.c.1.s8 %v54_v20  ;;  %v60_v25 = vunpack.c.2.s8 %v54_v20  ;;  %v61_v29 = vunpack.c.3.s8 %v54_v20  ;;  %v2628_v50 = vld [vmem:[%s3987_s4 + $0x10] sm:$0xff] }
   0x8   :  { %v2603_v26 = vrot.slane %v2600_v22, %v188_v21  ;;  %v62_v34 = vunpack.c.0.s8 %v55_v27  ;;  %v64_v38 = vunpack.c.2.s8 %v55_v27  ;;  %v63_v39 = vunpack.c.1.s8 %v55_v27 }
   0x9   :  { %v2608_v28 = vcvt.s32.f32 %v58_v23  ;;  %v2610_v32 = vcvt.s32.f32 %v59_v24  ;;  %v2612_v33 = vcvt.s32.f32 %v60_v25  ;;  %v2617_v37 = vcvt.s32.f32 %v61_v29  ;;  %v2669_v29 = vld [vmem:[%s3989_s0] sm:$0xff]  }
   0xa   :  { %128 = vperm.xlu0 %2162, %v2513_v5   ;;  %133 = vperm.xlu1 %2163, %v2518_v6   ;;  %v2621_v44 = vcvt.s32.f32 %v62_v34  ;;  %v65_v45 = vunpack.c.3.s8 %v55_v27  ;;  %v2635_v52 = vcvt.s32.f32 %v64_v38  ;;  %v2637_v53 = vcvt.s32.f32 %v63_v39 }
   0xb   :  { %vm90_vm0 = vcmp.gt.f32.partialorder %v2608_v28, 0.0  ;;  %vm91_vm3 = vcmp.gt.f32.partialorder %v2610_v32, 0.0  ;;  %vm92_vm4 = vcmp.gt.f32.partialorder %v2612_v33, 0.0  ;;  %vm93_vm5 = vcmp.gt.f32.partialorder %v2617_v37, 0.0  ;;  %2027 = vmatprep.subr.bf16.mxu0 %v2669_v29 }
   0xc   :  { %vm94_vm8 = vcmp.gt.f32.partialorder %v2621_v44, 0.0  ;;  %v66_v59 = vunpack.c.0.s8 %v2628_v50  ;;  %v2646_v60 = vcvt.s32.f32 %v65_v45  ;;  %vm96_vm9 = vcmp.gt.f32.partialorder %v2635_v52, 0.0  ;;  %2028 = vmatpush3.bf16.msra.mxu0 %v2669_v29 }
   0xd   :  { %vm95_vm10 = vcmp.gt.f32.partialorder %v2637_v53, 0.0  ;;  %v67_v27 = vunpack.c.1.s8 %v2628_v50 }
   0xe   :  { %138 = vperm.xlu0 %2162, %v2525_v7   ;;  %143 = vperm.xlu1 %2163, %v2530_v8   ;;  %v2662_v25 = vcvt.s32.f32 %v66_v59  ;;  %vm97_vm13 = vcmp.gt.f32.partialorder %v2646_v60, 0.0 }
  0x12   :  { %148 = vperm.xlu0 %2162, %v2537_v9   ;;  %153 = vperm.xlu1 %2163, %v2542_v10  }
  0x16   :  { %158 = vperm.xlu0 %2162, %v2549_v11   ;;  %163 = vperm.xlu1 %2163, %v2554_v12  }
  0x1a   :  { %168 = vperm.xlu0 %2162, %v2561_v13   ;;  %173 = vperm.xlu1 %2163, %v2566_v14  }
  0x1e   :  { %178 = vperm.xlu0 %2162, %v2573_v15   ;;  %183 = vperm.xlu1 %2163, %v2578_v16  }
  0x22   :  { %2164 = vset.pattern.permute.xlu1 %v2450_v17  ;;  %2165 = vset.pattern.permute.xlu0 %v2450_v17 }
  0x23   :  { %568 = vperm.xlu1 %2164, %v2489_v1   ;;  %572 = vperm.xlu0 %2165, %v2501_v3  }
  0x27   :  { %576 = vperm.xlu1 %2164, %v2494_v2  }
  0x2b   :  { %580 = vperm.xlu1 %2164, %v2506_v4  }
  0x2f   :  { %584 = vperm.xlu1 %2164, %v2513_v5  }
  0x33   :  { %588 = vperm.xlu1 %2164, %v2518_v6  }
  0x37   :  { %592 = vperm.xlu1 %2164, %v2525_v7  }
  0x3b   :  { %596 = vperm.xlu1 %2164, %v2530_v8  }
  0x3f   :  { %600 = vperm.xlu1 %2164, %v2537_v9  }
  0x81   :  { %v109_v30 = vpop.permute.xlu0 %108  ;;  %v119_v31 = vpop.permute.xlu1 %118 }
  0x82   :  { %v190_v35 = vadd.f32 %v2603_v26, %v109_v30  ;;  %v192_v36 = vadd.f32 %v2603_v26, %v119_v31 }
  0x84   :  { %vm206_vm1 = vcmp.gt.f32.partialorder %v190_v35, 0.0  ;;  %v222_v40 = vmul.f32 0.2, %v190_v35  ;;  %vm208_vm2 = vcmp.gt.f32.partialorder %v192_v36, 0.0  ;;  %v224_v41 = vmul.f32 0.2, %v192_v36 }
  0x85   :  { %v114_v42 = vpop.permute.xlu0 %113  ;;  %v124_v43 = vpop.permute.xlu1 %123 }
  0x86   :  { %v191_v46 = vadd.f32 %v2603_v26, %v114_v42  ;;  %v238_v47 = vsel %vm206_vm1, %v190_v35, %v222_v40  ;;  %v193_v48 = vadd.f32 %v2603_v26, %v124_v43  ;;  %v240_v49 = vsel %vm208_vm2, %v192_v36, %v224_v41  ;;  %v2676_v36 = vld [vmem:[%s3987_s4 + $0x18] sm:$0xff] }
  0x87   :  { %v2632_v51 = vsel %vm90_vm0, %v238_v47, -1e+30  ;;  %v2642_v57 = vsel %vm92_vm4, %v240_v49, -1e+30  ;;  %v68_v40 = vunpack.c.2.s8 %v2628_v50  ;;  %vm98_vm1 = vcmp.gt.f32.partialorder %v2662_v25, 0.0  ;;  %v2446_v25 = vld [vmem:[%s3989_s0 + $0x28] sm:$0xff]  }
  0x88   :  { %270 = vmax.xlane.f32.xlu0 %v2632_v51  ;;  %vm207_vm6 = vcmp.gt.f32.partialorder %v191_v46, 0.0  ;;  %v223_v54 = vmul.f32 0.2, %v191_v46  ;;  %vm209_vm7 = vcmp.gt.f32.partialorder %v193_v48, 0.0  ;;  %v225_v55 = vmul.f32 0.2, %v193_v48 }
  0x89   :  { %v129_v56 = vpop.permute.xlu0 %128  ;;  %v134_v58 = vpop.permute.xlu1 %133  ;;  %v69_v47 = vunpack.c.3.s8 %v2628_v50  ;;  %v2710_v59 = vcvt.s32.f32 %v68_v40 }
  0x8a   :  { %v194_v61 = vadd.f32 %v2603_v26, %v129_v56  ;;  %v239_v62 = vsel %vm207_vm6, %v191_v46, %v223_v54  ;;  %v195_v63 = vadd.f32 %v2603_v26, %v134_v58  ;;  %v241_v0 = vsel %vm209_vm7, %v193_v48, %v225_v55  ;;  %v2698_v48 = vld [vmem:[%s3989_s0 + $0x8] sm:$0xff]  }
  0x8b   :  { %v2652_v17 = vsel %vm91_vm3, %v239_v62, -1e+30  ;;  %v2656_v18 = vsel %vm93_vm5, %v241_v0, -1e+30  ;;  %v2691_v46 = vcvt.s32.f32 %v67_v27  ;;  %4024 = vst [vmem:[#allocation3_spill] sm:$0xff] %v2710_v59  ;;  %2029 = vmatprep.subr.bf16.mxu0 %v2698_v48 }
  0x8c   :  { %272 = vmax.xlane.f32.xlu1 %v2652_v17  ;;  %274 = vmax.xlane.f32.xlu0 %v2642_v57  ;;  %vm210_vm11 = vcmp.gt.f32.partialorder %v194_v61, 0.0  ;;  %v226_v20 = vmul.f32 0.2, %v194_v61  ;;  %vm211_vm12 = vcmp.gt.f32.partialorder %v195_v63, 0.0  ;;  %v227_v21 = vmul.f32 0.2, %v195_v63 }
  0x8d   :  { %v139_v23 = vpop.permute.xlu0 %138  ;;  %v144_v24 = vpop.permute.xlu1 %143  ;;  %vm99_vm7 = vcmp.gt.f32.partialorder %v2691_v46, 0.0  ;;  %2030 = vmatpush3.bf16.msra.mxu0 %v2698_v48 }
  0x8e   :  { %v196_v30 = vadd.f32 %v2603_v26, %v139_v23  ;;  %v242_v31 = vsel %vm210_vm11, %v194_v61, %v226_v20  ;;  %v197_v34 = vadd.f32 %v2603_v26, %v144_v24  ;;  %v243_v35 = vsel %vm211_vm12, %v195_v63, %v227_v21  ;;  %v2724_v24 = vld [vmem:[%s3989_s0 + $0x10] sm:$0xff]  }
  0x8f   :  { %v2680_v38 = vsel %vm94_vm8, %v242_v31, -1e+30  ;;  %v2684_v39 = vsel %vm95_vm10, %v243_v35, -1e+30  ;;  %v70_v61 = vunpack.c.0.s8 %v2676_v36  ;;  %v2717_v21 = vcvt.s32.f32 %v69_v47  ;;  %2031 = vmatprep.subr.bf16.mxu0 %v2724_v24 }
  0x90   :  { %278 = vmax.xlane.f32.xlu1 %v2680_v38  ;;  %276 = vmax.xlane.f32.xlu0 %v2656_v18  ;;  %vm212_vm14 = vcmp.gt.f32.partialorder %v196_v30, 0.0  ;;  %v228_v41 = vmul.f32 0.2, %v196_v30  ;;  %vm213_vm15 = vcmp.gt.f32.partialorder %v197_v34, 0.0  ;;  %v229_v42 = vmul.f32 0.2, %v197_v34 }
  0x91   :  { %v149_v43 = vpop.permute.xlu0 %148  ;;  %v154_v45 = vpop.permute.xlu1 %153  ;;  %4025 = vst [vmem:[#allocation4_spill] sm:$0xff] %v2717_v21  ;;  %v71_v23 = vunpack.c.1.s8 %v2676_v36  ;;  %vm4020_vm11 = vcmp.gt.f32.partialorder %v2710_v59, 0.0  ;;  %v2733_v40 = vcvt.s32.f32 %v70_v61  ;;  %2032 = vmatpush3.bf16.msra.mxu0 %v2724_v24 }
  0x92   :  { %v198_v49 = vadd.f32 %v2603_v26, %v149_v43  ;;  %v244_v54 = vsel %vm212_vm14, %v196_v30, %v228_v41  ;;  %v199_v55 = vadd.f32 %v2603_v26, %v154_v45  ;;  %v245_v56 = vsel %vm213_vm15, %v197_v34, %v229_v42 }
  0x93   :  { %v2704_v58 = vsel %vm96_vm9, %v244_v54, -1e+30  ;;  %v2708_v50 = vsel %vm97_vm13, %v245_v56, -1e+30  ;;  %4026 = vst [vmem:[#allocation5_spill] sm:$0xff] %v2733_v40  ;;  %v72_v41 = vunpack.c.2.s8 %v2676_v36  ;;  %vm3992_vm15 = vcmp.gt.f32.partialorder %v2717_v21, 0.0 }
  0x94   :  { %282 = vmax.xlane.f32.xlu1 %v2704_v58  ;;  %280 = vmax.xlane.f32.xlu0 %v2684_v39  ;;  %vm214_vm2 = vcmp.gt.f32.partialorder %v198_v49, 0.0  ;;  %v230_v62 = vmul.f32 0.2, %v198_v49  ;;  %vm215_vm6 = vcmp.gt.f32.partialorder %v199_v55, 0.0  ;;  %v231_v63 = vmul.f32 0.2, %v199_v55 }
  0x95   :  { %v159_v0 = vpop.permute.xlu0 %158  ;;  %v164_v20 = vpop.permute.xlu1 %163  ;;  %v2744_v54 = vcvt.s32.f32 %v71_v23 }
  0x96   :  { %v200_v27 = vadd.f32 %v2603_v26, %v159_v0  ;;  %v246_v30 = vsel %vm214_vm2, %v198_v49, %v230_v62  ;;  %v201_v31 = vadd.f32 %v2603_v26, %v164_v20  ;;  %v247_v34 = vsel %vm215_vm6, %v199_v55, %v231_v63  ;;  %v2753_v0 = vld [vmem:[%s3989_s0 + $0x18] sm:$0xff]  }
  0x97   :  { %v2730_v35 = vsel %vm98_vm1, %v246_v30, -1e+30  ;;  %v2741_v47 = vsel %vm99_vm7, %v247_v34, -1e+30  ;;  %4027 = vst [vmem:[#allocation6_spill] sm:$0xff] %v2744_v54  ;;  %v73_v55 = vunpack.c.3.s8 %v2676_v36  ;;  %vm3993_vm2 = vcmp.gt.f32.partialorder %v2733_v40, 0.0  ;;  %2033 = vmatprep.subr.bf16.mxu0 %v2753_v0 }
  0x98   :  { %286 = vmax.xlane.f32.xlu1 %v2730_v35  ;;  %284 = vmax.xlane.f32.xlu0 %v2708_v50  ;;  %vm216_vm12 = vcmp.gt.f32.partialorder %v200_v27, 0.0  ;;  %v232_v42 = vmul.f32 0.2, %v200_v27  ;;  %vm217_vm14 = vcmp.gt.f32.partialorder %v201_v31, 0.0  ;;  %v233_v43 = vmul.f32 0.2, %v201_v31 }
  0x99   :  { %v169_v45 = vpop.permute.xlu0 %168  ;;  %v174_v49 = vpop.permute.xlu1 %173  ;;  %v2760_v36 = vcvt.s32.f32 %v72_v41  ;;  %2034 = vmatpush3.bf16.msra.mxu0 %v2753_v0 }
  0x9a   :  { %v202_v56 = vadd.f32 %v2603_v26, %v169_v45  ;;  %v248_v61 = vsel %vm216_vm12, %v200_v27, %v232_v42  ;;  %v203_v62 = vadd.f32 %v2603_v26, %v174_v49  ;;  %v249_v63 = vsel %vm217_vm14, %v201_v31, %v233_v43 }
  0x9b   :  { %v2757_v20 = vsel %vm4020_vm11, %v248_v61, -1e+30  ;;  %4028 = vst [vmem:[#allocation7_spill] sm:$0xff] %v2760_v36  ;;  %v2766_v31 = vsel %vm3992_vm15, %v249_v63, -1e+30  ;;  %vm4013_vm14 = vcmp.gt.f32.partialorder %v2744_v54, 0.0  ;;  %v2769_v42 = vcvt.s32.f32 %v73_v55 }
  0x9c   :  { %290 = vmax.xlane.f32.xlu1 %v2757_v20  ;;  %288 = vmax.xlane.f32.xlu0 %v2741_v47  ;;  %vm218_vm6 = vcmp.gt.f32.partialorder %v202_v56, 0.0  ;;  %v234_v23 = vmul.f32 0.2, %v202_v56  ;;  %vm219_vm12 = vcmp.gt.f32.partialorder %v203_v62, 0.0  ;;  %v235_v27 = vmul.f32 0.2, %v203_v62 }
  0x9d   :  { %v179_v30 = vpop.permute.xlu0 %178  ;;  %v184_v34 = vpop.permute.xlu1 %183  ;;  %4029 = vst [vmem:[#allocation8_spill] sm:$0xff] %v2769_v42  ;;  %v2778_v61 = vld [vmem:[%s3989_s0 + $0x20] sm:$0xff]   ;;  %vm104_vm15 = vcmp.gt.f32.partialorder %v2760_v36, 0.0 }
  0x9e   :  { %v204_v41 = vadd.f32 %v2603_v26, %v179_v30  ;;  %v250_v43 = vsel %vm218_vm6, %v202_v56, %v234_v23  ;;  %v205_v45 = vadd.f32 %v2603_v26, %v184_v34  ;;  %v251_v49 = vsel %vm219_vm12, %v203_v62, %v235_v27  ;;  %4030 = vst [vmem:[#allocation9_spill] sm:$0xff] %v2778_v61  ;;  %v2797_v27 = vld [vmem:[%s3989_s0 + $0x28] sm:$0xff]  }
  0x9f   :  { %v2782_v63 = vsel %vm3993_vm2, %v250_v43, -1e+30  ;;  %v2789_v56 = vsel %vm4013_vm14, %v251_v49, -1e+30  ;;  %2035 = vmatprep.subr.bf16.mxu0 %v2778_v61  ;;  %vm4012_vm2 = vcmp.gt.f32.partialorder %v2769_v42, 0.0  ;;  %4031 = vst [vmem:[#allocation10_spill] sm:$0xff] %v2797_v27 }
  0xa0   :  { %294 = vmax.xlane.f32.xlu1 %v2782_v63  ;;  %292 = vmax.xlane.f32.xlu0 %v2766_v31  ;;  %vm220_vm6 = vcmp.gt.f32.partialorder %v204_v41, 0.0  ;;  %v236_v26 = vmul.f32 0.2, %v204_v41  ;;  %vm221_vm12 = vcmp.gt.f32.partialorder %v205_v45, 0.0  ;;  %v237_v55 = vmul.f32 0.2, %v205_v45 }
  0xa1   :  { %2036 = vmatpush3.bf16.msra.mxu0 %v2778_v61  ;;  %v2822_v43 = vld [vmem:[%s3989_s0 + $0x38] sm:$0xff]  }
  0xa2   :  { %v252_v62 = vsel %vm220_vm6, %v204_v41, %v236_v26  ;;  %v253_v23 = vsel %vm221_vm12, %v205_v45, %v237_v55  ;;  %2037 = vmatprep.subr.bf16.mxu0 %v2797_v27  ;;  %v2814_v41 = vld [vmem:[%s3989_s0 + $0x30] sm:$0xff]   ;;  %4033 = vst [vmem:[#allocation12_spill] sm:$0xff] %v2822_v43  ;;  %v4006_v45 = vmov 2   ;;  %v569_v49 = vpop.permute.xlu1 %568  ;;  %v633_v55 = vsub.s32 1, %v2591_v19 }
  0xa3   :  { %v2801_v30 = vsel %vm104_vm15, %v252_v62, -1e+30  ;;  %v2807_v34 = vsel %vm4012_vm2, %v253_v23, -1e+30  ;;  %4032 = vst [vmem:[#allocation11_spill] sm:$0xff] %v2814_v41  ;;  %v573_v23 = vpop.permute.xlu0 %572 }
  0xa4   :  { %298 = vmax.xlane.f32.xlu1 %v2801_v30  ;;  %296 = vmax.xlane.f32.xlu0 %v2789_v56  ;;  %v2837_v62 = vrot.slane %v2600_v22, %v633_v55 }
  0xa5   :  { %2038 = vmatpush3.bf16.msra.mxu0 %v2797_v27 }
  0xa6   :  { %2039 = vmatprep.subr.bf16.mxu0 %v2814_v41  ;;  %v577_v26 = vpop.permute.xlu1 %576 }
  0xa7   :  { %v637_v40 = vadd.f32 %v2837_v62, %v577_v26 }
  0xa8   :  { %300 = vmax.xlane.f32.xlu0 %v2807_v34 }
  0xa9   :  { %2040 = vmatpush3.bf16.msra.mxu0 %v2814_v41  ;;  %v635_v41 = vadd.f32 %v2837_v62, %v569_v49  ;;  %v669_v61 = vmul.f32 0.2, %v637_v40  ;;  %vm653_vm14 = vcmp.gt.f32.partialorder %v637_v40, 0.0 }
  0xaa   :  { %2041 = vmatprep.subr.bf16.mxu0 %v2822_v43  ;;  %v581_v42 = vpop.permute.xlu1 %580 }
  0xab   :  { %vm651_vm12 = vcmp.gt.f32.partialorder %v635_v41, 0.0  ;;  %v638_v19 = vadd.f32 %v2837_v62, %v581_v42  ;;  %v685_v42 = vsel %vm653_vm14, %v637_v40, %v669_v61 }
  0xad   :  { %2042 = vmatpush3.bf16.msra.mxu0 %v2822_v43  ;;  %v636_v43 = vadd.f32 %v2837_v62, %v573_v23 }
  0xae   :  { %v585_v54 = vpop.permute.xlu1 %584 }
  0xaf   :  { %v668_v36 = vmul.f32 0.2, %v636_v43  ;;  %v639_v21 = vadd.f32 %v2837_v62, %v585_v54  ;;  %vm652_vm6 = vcmp.gt.f32.partialorder %v636_v43, 0.0 }
  0xb1   :  { %v684_v27 = vsel %vm652_vm6, %v636_v43, %v668_v36  ;;  %v671_v55 = vmul.f32 0.2, %v639_v21  ;;  %vm655_vm2 = vcmp.gt.f32.partialorder %v639_v21, 0.0  ;;  %vm654_vm6 = vcmp.gt.f32.partialorder %v638_v19, 0.0 }
  0xb2   :  { %v589_v23 = vpop.permute.xlu1 %588  ;;  %v2846_v49 = vsel %vm91_vm3, %v684_v27, -1e+30  ;;  %v2861_v27 = vsel %vm92_vm4, %v685_v42, -1e+30  ;;  %v4036_v42 = vmov 2  }
  0xb3   :  { %v640_v54 = vadd.f32 %v2837_v62, %v589_v23  ;;  %v687_v36 = vsel %vm655_vm2, %v639_v21, %v671_v55  ;;  %4035 = vst [vmem:[#allocation14_spill] sm:$0xff] %v2861_v27 }
  0xb4   :  { %v2857_v43 = vsel %vm94_vm8, %v687_v36, -1e+30 }
  0xb5   :  { %604 = vperm.xlu1 %2164, %v2542_v10   ;;  %4034 = vst [vmem:[#allocation13_spill] sm:$0xff] %v2857_v43 }
  0xb6   :  { %v2881_v55 = vpop.permute.xlu1 %592 }
  0xb9   :  { %612 = vperm.xlu1 %2164, %v2554_v12  }
  0xba   :  { %v2885_v23 = vpop.permute.xlu1 %596 }
  0xbd   :  { %620 = vperm.xlu1 %2164, %v2566_v14  }
  0xbe   :  { %608 = vperm.xlu0 %2165, %v2549_v11  }
  0xc1   :  { %628 = vperm.xlu1 %2164, %v2578_v16  }
  0xc2   :  { %616 = vperm.xlu0 %2165, %v2561_v13  }
  0xc5   :  { %2166 = vset.pattern.permute.xlu1 %v4006_v45 }
  0xc6   :  { %624 = vperm.xlu0 %2165, %v2573_v15  }
  0xca   :  { %2167 = vset.pattern.permute.xlu0 %v4006_v45  ;;  %v667_v45 = vmul.f32 0.2, %v635_v41 }
  0xcc   :  { %v683_v22 = vsel %vm651_vm12, %v635_v41, %v667_v45  ;;  %v670_v41 = vmul.f32 0.2, %v638_v19  ;;  %vm656_vm12 = vcmp.gt.f32.partialorder %v640_v54, 0.0 }
  0xcd   :  { %v2850_v26 = vsel %vm90_vm0, %v683_v22, -1e+30  ;;  %v672_v22 = vmul.f32 0.2, %v640_v54 }
  0xce   :  { %v686_v45 = vsel %vm654_vm6, %v638_v19, %v670_v41  ;;  %v4014_v19 = vmov 3  }
  0xcf   :  { %v2867_v21 = vsel %vm93_vm5, %v686_v45, -1e+30  ;;  %v688_v40 = vsel %vm656_vm12, %v640_v54, %v672_v22  ;;  %v2891_v54 = vpop.permute.xlu1 %600 }
  0xd0   :  { %v2872_v61 = vsel %vm95_vm10, %v688_v40, -1e+30 }
  0xe5   :  { %717 = vmax.xlane.f32.xlu1 %v2846_v49  ;;  %715 = vmax.xlane.f32.xlu0 %v2850_v26 }
  0xe9   :  { %723 = vmax.xlane.f32.xlu1 %v2857_v43  ;;  %719 = vmax.xlane.f32.xlu0 %v2861_v27 }
  0xed   :  { %721 = vmax.xlane.f32.xlu0 %v2867_v21 }
  0xf1   :  { %725 = vmax.xlane.f32.xlu0 %v2872_v61 }
  0xfa   :  { %1005 = vperm.xlu1 %2166, %v2489_v1  }
  0xfe   :  { %1013 = vperm.xlu1 %2166, %v2494_v2  }
 0x102   :  { %1017 = vperm.xlu1 %2166, %v2506_v4  }
 0x106   :  { %2168 = vset.pattern.permute.xlu1 %v4014_v19 }
 0x107   :  { %1442 = vperm.xlu1 %2168, %v2489_v1   ;;  %1009 = vperm.xlu0 %2167, %v2501_v3  }
 0x10b   :  { %1446 = vperm.xlu1 %2168, %v2501_v3   ;;  %1025 = vperm.xlu0 %2167, %v2518_v6  }
 0x10f   :  { %1450 = vperm.xlu1 %2168, %v2494_v2   ;;  %1033 = vperm.xlu0 %2167, %v2530_v8  }
 0x113   :  { %1454 = vperm.xlu1 %2168, %v2506_v4   ;;  %1037 = vperm.xlu0 %2167, %v2537_v9  }
 0x115   :  { %v271_v1 = vpop.xlane.xlu0 %270 }
 0x116   :  { %v302_v36 = vsub.f32 %v2632_v51, %v271_v1 }
 0x117   :  { %2169 = vset.pattern.permute.xlu1 %v4036_v42  ;;  %1049 = vperm.xlu0 %2167, %v2554_v12  }
 0x118   :  { %1021 = vperm.xlu1 %2169, %v2513_v5   ;;  %v318_v3 = vmul.f32 1.442695, %v302_v36  ;;  %v4037_v36 = vmov 3  }
 0x119   :  { %v273_v41 = vpop.xlane.xlu1 %272  ;;  %v275_v2 = vpop.xlane.xlu0 %274 }
 0x11a   :  { %v303_v45 = vsub.f32 %v2652_v17, %v273_v41  ;;  %v304_v4 = vsub.f32 %v2642_v57, %v275_v2  ;;  %2184 = vpow2.f32 %v318_v3 }
 0x11c   :  { %v320_v22 = vmul.f32 1.442695, %v303_v45  ;;  %1029 = vperm.xlu1 %2169, %v2525_v7   ;;  %v322_v51 = vmul.f32 1.442695, %v304_v4 }
 0x11d   :  { %v279_v40 = vpop.xlane.xlu1 %278  ;;  %v277_v19 = vpop.xlane.xlu0 %276 }
 0x11e   :  { %2186 = vpow2.f32 %v320_v22  ;;  %v306_v1 = vsub.f32 %v2680_v38, %v279_v40  ;;  %v305_v43 = vsub.f32 %v2656_v18, %v277_v19 }
 0x11f   :  { %2188 = vpow2.f32 %v322_v51 }
 0x120   :  { %v324_v27 = vmul.f32 1.442695, %v305_v43  ;;  %2170 = vset.pattern.permute.xlu1 %v4037_v36  ;;  %v326_v57 = vmul.f32 1.442695, %v306_v1 }
 0x121   :  { %1458 = vperm.xlu1 %2170, %v2513_v5   ;;  %v283_v17 = vpop.xlane.xlu1 %282  ;;  %v281_v41 = vpop.xlane.xlu0 %280 }
 0x122   :  { %v308_v2 = vsub.f32 %v2704_v58, %v283_v17  ;;  %v307_v3 = vsub.f32 %v2684_v39, %v281_v41  ;;  %2190 = vpow2.f32 %v324_v27 }
 0x123   :  { %2192 = vpow2.f32 %v326_v57 }
 0x124   :  { %v328_v45 = vmul.f32 1.442695, %v307_v3  ;;  %v330_v18 = vmul.f32 1.442695, %v308_v2  ;;  %v2909_v19 = vpop.eup %2184 }
 0x125   :  { %1466 = vperm.xlu1 %2170, %v2525_v7   ;;  %v287_v38 = vpop.xlane.xlu1 %286  ;;  %v285_v4 = vpop.xlane.xlu0 %284 }
 0x126   :  { %v310_v43 = vsub.f32 %v2730_v35, %v287_v38  ;;  %v309_v5 = vsub.f32 %v2708_v50, %v285_v4  ;;  %2194 = vpow2.f32 %v328_v45 }
 0x127   :  { %2196 = vpow2.f32 %v330_v18 }
 0x128   :  { %v2187_v22 = vpop.eup %2186  ;;  %v332_v40 = vmul.f32 1.442695, %v309_v5  ;;  %v334_v7 = vmul.f32 1.442695, %v310_v43 }
 0x129   :  { %1470 = vperm.xlu1 %2170, %v2530_v8   ;;  %v291_v39 = vpop.xlane.xlu1 %290  ;;  %v289_v58 = vpop.xlane.xlu0 %288  ;;  %v382_v27 = vpack.c.bf16 %v2187_v22, %v2909_v19 }
 0x12a   :  { %v312_v51 = vsub.f32 %v2757_v20, %v291_v39  ;;  %v311_v1 = vsub.f32 %v2741_v47, %v289_v58  ;;  %2198 = vpow2.f32 %v332_v40  ;;  %v2915_v50 = vpop.eup %2188 }
 0x12b   :  { %2043 = vmatprep.mubr.bf16.mxu0 %v382_v27  ;;  %2200 = vpow2.f32 %v334_v7 }
 0x12c   :  { %v336_v35 = vmul.f32 1.442695, %v311_v1  ;;  %v2191_v17 = vpop.eup %2190  ;;  %v338_v41 = vmul.f32 1.442695, %v312_v51 }
 0x12d   :  { %2171 = vset.pattern.permute.xlu1 %v4036_v42  ;;  %v295_v8 = vpop.xlane.xlu1 %294  ;;  %v293_v57 = vpop.xlane.xlu0 %292  ;;  %v383_v47 = vpack.c.bf16 %v2191_v17, %v2915_v50 }
 0x12e   :  { %v314_v2 = vsub.f32 %v2782_v63, %v295_v8  ;;  %v313_v3 = vsub.f32 %v2766_v31, %v293_v57  ;;  %1041 = vperm.xlu1 %2171, %v2542_v10   ;;  %2202 = vpow2.f32 %v336_v35  ;;  %v2193_v20 = vpop.eup %2192 }
 0x12f   :  { %2044 = vmatmul.mubr.bf16.vlgmr.msra.gmra.mrb[0].mxu0 %v383_v47  ;;  %2204 = vpow2.f32 %v338_v41 }
 0x130   :  { %v340_v45 = vmul.f32 1.442695, %v313_v3  ;;  %v2195_v38 = vpop.eup %2194  ;;  %v342_v43 = vmul.f32 1.442695, %v314_v2 }
 0x131   :  { %v299_v4 = vpop.xlane.xlu1 %298  ;;  %v297_v18 = vpop.xlane.xlu0 %296  ;;  %v384_v31 = vpack.c.bf16 %v2195_v38, %v2193_v20 }
 0x132   :  { %v316_v5 = vsub.f32 %v2801_v30, %v299_v4  ;;  %v315_v40 = vsub.f32 %v2789_v56, %v297_v18  ;;  %1045 = vperm.xlu1 %2171, %v2549_v11   ;;  %2206 = vpow2.f32 %v340_v45  ;;  %v2197_v63 = vpop.eup %2196 }
 0x133   :  { %2047 = vmatprep.mubr.bf16.mxu0 %v384_v31  ;;  %2208 = vpow2.f32 %v342_v43 }
 0x134   :  { %v344_v39 = vmul.f32 1.442695, %v315_v40  ;;  %v2199_v58 = vpop.eup %2198  ;;  %v346_v27 = vmul.f32 1.442695, %v316_v5 }
 0x135   :  { %v301_v7 = vpop.xlane.xlu0 %300  ;;  %v385_v1 = vpack.c.bf16 %v2199_v58, %v2197_v63  ;;  %v2201_v30 = vpop.eup %2200 }
 0x136   :  { %v317_v51 = vsub.f32 %v2807_v34, %v301_v7  ;;  %352 = vadd.xlane.f32.xlu0 %v2187_v22  ;;  %2172 = vset.pattern.permute.xlu1 %v4037_v36  ;;  %2210 = vpow2.f32 %v344_v39 }
 0x137   :  { %2048 = vmatmul.mubr.bf16.gmra.mrb[4].mxu0 %v385_v1  ;;  %2212 = vpow2.f32 %v346_v27 }
 0x138   :  { %v348_v56 = vmul.f32 1.442695, %v317_v51  ;;  %v2203_v35 = vpop.eup %2202 }
 0x139   :  { %v386_v41 = vpack.c.bf16 %v2203_v35, %v2201_v30  ;;  %v2205_v8 = vpop.eup %2204 }
 0x13a   :  { %2214 = vpow2.f32 %v348_v56  ;;  %356 = vadd.xlane.f32.xlu0 %v2191_v17  ;;  %v2929_v17 = vpop.permute.xlu1 %604 }
 0x13b   :  { %2051 = vmatprep.mubr.bf16.mxu0 %v386_v41 }
 0x13c   :  { %v2207_v57 = vpop.eup %2206 }
 0x13d   :  { %v387_v2 = vpack.c.bf16 %v2207_v57, %v2205_v8  ;;  %v2209_v3 = vpop.eup %2208  ;;  %v2933_v18 = vpop.permute.xlu0 %608 }
 0x13e   :  { %360 = vadd.xlane.f32.xlu0 %v2195_v38  ;;  %v2931_v38 = vpop.permute.xlu1 %612 }
 0x13f   :  { %2052 = vmatmul.mubr.bf16.gmra.mrb[8].mxu0 %v387_v2  ;;  %v643_v2 = vadd.f32 %v2837_v62, %v2891_v54 }
 0x140   :  { %v2211_v34 = vpop.eup %2210 }
 0x141   :  { %v388_v22 = vpack.c.bf16 %v2211_v34, %v2209_v3  ;;  %v2213_v47 = vpop.eup %2212  ;;  %v2937_v5 = vpop.permute.xlu0 %616  ;;  %vm659_vm6 = vcmp.gt.f32.partialorder %v643_v2, 0.0 }
 0x142   :  { %364 = vadd.xlane.f32.xlu0 %v2199_v58  ;;  %v2935_v43 = vpop.permute.xlu1 %620 }
 0x143   :  { %2055 = vmatprep.mubr.bf16.mxu0 %v388_v22  ;;  %v675_v22 = vmul.f32 0.2, %v643_v2 }
 0x144   :  { %v2215_v45 = vpop.eup %2214 }
 0x145   :  { %v389_v4 = vpack.c.bf16 %v2215_v45, %v2213_v47 }
 0x146   :  { %368 = vadd.xlane.f32.xlu0 %v2203_v35 }
 0x147   :  { %2056 = vmatmul.mubr.bf16.gmra.mrb[12].mxu0 %v389_v4 }
 0x14a   :  { %372 = vadd.xlane.f32.xlu0 %v2207_v57 }
 0x14e   :  { %376 = vadd.xlane.f32.xlu0 %v2211_v34 }
 0x152   :  { %380 = vadd.xlane.f32.xlu0 %v2215_v45 }
 0x156   :  { %350 = vadd.xlane.f32.xlu1 %v2909_v19  ;;  %v2941_v19 = vpop.permute.xlu1 %628 }
 0x15a   :  { %354 = vadd.xlane.f32.xlu1 %v2915_v50  ;;  %v2943_v50 = vpop.permute.xlu0 %624 }
 0x15e   :  { %358 = vadd.xlane.f32.xlu1 %v2193_v20 }
 0x162   :  { %362 = vadd.xlane.f32.xlu1 %v2197_v63 }
 0x166   :  { %366 = vadd.xlane.f32.xlu1 %v2201_v30 }
 0x168   :  { %1053 = vperm.xlu0 %2167, %v2561_v13  }
 0x16a   :  { %370 = vadd.xlane.f32.xlu1 %v2205_v8 }
 0x16c   :  { %1065 = vperm.xlu0 %2167, %v2578_v16  }
 0x16e   :  { %374 = vadd.xlane.f32.xlu1 %v2209_v3 }
 0x170   :  { %2174 = vset.pattern.permute.xlu0 %v4037_v36 }
 0x171   :  { %1462 = vperm.xlu0 %2174, %v2518_v6  }
 0x172   :  { %v718_v20 = vpop.xlane.xlu1 %717  ;;  %378 = vadd.xlane.f32.xlu1 %v2213_v47  ;;  %v716_v40 = vpop.xlane.xlu0 %715 }
 0x173   :  { %v748_v31 = vsub.f32 %v2846_v49, %v718_v20  ;;  %v747_v63 = vsub.f32 %v2850_v26, %v716_v40  ;;  %v645_v20 = vadd.f32 %v2837_v62, %v2933_v18  ;;  %v691_v40 = vsel %vm659_vm6, %v643_v2, %v675_v22 }
 0x175   :  { %v765_v39 = vmul.f32 1.442695, %v748_v31  ;;  %v763_v58 = vmul.f32 1.442695, %v747_v63  ;;  %1478 = vperm.xlu0 %2174, %v2542_v10  }
 0x176   :  { %v2963_v26 = vpop.xlane.xlu1 %723 }
 0x177   :  { %2216 = vpow2.f32 %v765_v39 }
 0x178   :  { %2218 = vpow2.f32 %v763_v58  ;;  %v677_v58 = vmul.f32 0.2, %v645_v20 }
 0x179   :  { %1494 = vperm.xlu0 %2174, %v2566_v14  }
 0x17a   :  { %v2968_v27 = vpop.permute.xlu1 %1005 }
 0x17d   :  { %835 = vrot.lane.b32.xlu0 %v2669_v29, %s2453_s24 }
 0x17e   :  { %v2975_v7 = vpop.permute.xlu1 %1013 }
 0x181   :  { %v2953_v6 = vpop.eup %2216  ;;  %839 = vrot.lane.b32.xlu0 %v2724_v24, %s2453_s24  ;;  %v642_v24 = vadd.f32 %v2837_v62, %v2885_v23 }
 0x182   :  { %4038 = vst [vmem:[#allocation15_spill] sm:$0xff] %v2953_v6  ;;  %v2957_v49 = vpop.eup %2218 }
 0x183   :  { %4039 = vst [vmem:[#allocation16_spill] sm:$0xff] %v2957_v49  ;;  %1474 = vperm.xlu1 %2172, %v2537_v9   ;;  %v827_v10 = vpack.c.bf16 %v2953_v6, %v2957_v49  ;;  %v2973_v9 = vpop.xlane.xlu0 %719  ;;  %vm658_vm2 = vcmp.gt.f32.partialorder %v642_v24, 0.0 }
 0x185   :  { %2075 = vmatprep.mubr.bf16.mxu1 %v827_v10 }
 0x187   :  { %1482 = vperm.xlu1 %2172, %v2549_v11   ;;  %v674_v11 = vmul.f32 0.2, %v642_v24 }
 0x18b   :  { %1486 = vperm.xlu1 %2172, %v2554_v12   ;;  %v2979_v12 = vpop.xlane.xlu0 %721 }
 0x18c   :  { %v750_v33 = vsub.f32 %v2867_v21, %v2979_v12 }
 0x18f   :  { %2173 = vset.pattern.permute.xlu1 %v4036_v42  ;;  %v2981_v42 = vpop.permute.xlu1 %1017  ;;  %v2989_v51 = vpop.xlane.xlu0 %725 }
 0x190   :  { %1057 = vperm.xlu1 %2173, %v2566_v14   ;;  %v690_v14 = vsel %vm658_vm2, %v642_v24, %v674_v11  ;;  %vm661_vm2 = vcmp.gt.f32.partialorder %v645_v20, 0.0 }
 0x191   :  { %v2986_v23 = vsel %vm97_vm13, %v690_v14, -1e+30  ;;  %v693_v24 = vsel %vm661_vm2, %v645_v20, %v677_v58 }
 0x194   :  { %1061 = vperm.xlu1 %2173, %v2573_v15  }
 0x198   :  { %2175 = vset.pattern.permute.xlu1 %v4037_v36  ;;  %v2992_v36 = vpop.permute.xlu1 %1442 }
 0x199   :  { %1490 = vperm.xlu1 %2175, %v2561_v13   ;;  %v2996_v13 = vpop.permute.xlu0 %1009 }
 0x19c   :  { %v2998_v1 = vpop.permute.xlu1 %1446 }
 0x19d   :  { %1498 = vperm.xlu1 %2175, %v2573_v15   ;;  %v3000_v15 = vpop.permute.xlu0 %1025 }
 0x1a0   :  { %729 = vmax.xlane.f32.xlu0 %v2986_v23  ;;  %v3002_v30 = vpop.permute.xlu1 %1450 }
 0x1a1   :  { %1502 = vperm.xlu1 %2175, %v2578_v16   ;;  %v3004_v56 = vpop.permute.xlu0 %1033 }
 0x1a4   :  { %v3006_v35 = vpop.permute.xlu1 %1454 }
 0x1a5   :  { %837 = vrot.lane.b32.xlu1 %v2698_v48, %s2453_s24  ;;  %v3010_v16 = vpop.permute.xlu0 %1037  ;;  %v641_v48 = vadd.f32 %v2837_v62, %v2881_v55 }
 0x1a7   :  { %v673_v57 = vmul.f32 0.2, %v641_v48  ;;  %vm657_vm14 = vcmp.gt.f32.partialorder %v641_v48, 0.0 }
 0x1a8   :  { %v3012_v41 = vpop.permute.xlu1 %1021 }
 0x1a9   :  { %v3016_v8 = vpop.permute.xlu0 %1049  ;;  %v689_v47 = vsel %vm657_vm14, %v641_v48, %v673_v57  ;;  %v3059_v48 = vsel %vm4020_vm11, %v693_v24, -1e+30  ;;  %v4053_v24 = vld [vmem:[#allocation10_spill] sm:$0xff] }
 0x1aa   :  { %v3032_v4 = vsel %vm96_vm9, %v689_v47, -1e+30  ;;  %v4047_v47 = vld [vmem:[#allocation9_spill] sm:$0xff] }
 0x1ac   :  { %v3020_v3 = vpop.permute.xlu1 %1029 }
 0x1b0   :  { %v3026_v45 = vpop.permute.xlu1 %1458 }
 0x1b4   :  { %v3043_v63 = vpop.permute.xlu1 %1466 }
 0x1b6   :  { %841 = vrot.lane.b32.xlu0 %v2753_v0, %s2453_s24  ;;  %v644_v0 = vadd.f32 %v2837_v62, %v2929_v17  ;;  %v3041_v17 = vsel %vm98_vm1, %v691_v40, -1e+30 }
 0x1b8   :  { %v676_v54 = vmul.f32 0.2, %v644_v0  ;;  %vm660_vm12 = vcmp.gt.f32.partialorder %v644_v0, 0.0  ;;  %v3053_v11 = vpop.permute.xlu1 %1470 }
 0x1ba   :  { %v692_v39 = vsel %vm660_vm12, %v644_v0, %v676_v54 }
 0x1bb   :  { %v3050_v18 = vsel %vm99_vm7, %v692_v39, -1e+30 }
 0x1bc   :  { %v3064_v2 = vpop.permute.xlu1 %1041 }
 0x1c0   :  { %v3068_v0 = vpop.permute.xlu1 %1045 }
 0x1c3   :  { %v3022_v34 = vpop.xlane.xlu0 %352 }
 0x1c4   :  { %4040 = vst [vmem:[#allocation17_spill] sm:$0xff] %v3022_v34 }
 0x1c7   :  { %v3028_v55 = vpop.xlane.xlu0 %356 }
 0x1c8   :  { %4041 = vst [vmem:[#allocation18_spill] sm:$0xff] %v3028_v55 }
 0x1c9   :  { %727 = vmax.xlane.f32.xlu1 %v3032_v4 }
 0x1cb   :  { %v3037_v31 = vpop.xlane.xlu0 %360 }
 0x1cc   :  { %4042 = vst [vmem:[#allocation19_spill] sm:$0xff] %v3037_v31  ;;  %v646_v31 = vadd.f32 %v2837_v62, %v2931_v38 }
 0x1cd   :  { %731 = vmax.xlane.f32.xlu1 %v3041_v17 }
 0x1ce   :  { %v678_v55 = vmul.f32 0.2, %v646_v31  ;;  %vm662_vm14 = vcmp.gt.f32.partialorder %v646_v31, 0.0 }
 0x1cf   :  { %v3046_v10 = vpop.xlane.xlu0 %364 }
 0x1d0   :  { %4043 = vst [vmem:[#allocation20_spill] sm:$0xff] %v3046_v10  ;;  %v694_v6 = vsel %vm662_vm14, %v646_v31, %v678_v55 }
 0x1d1   :  { %733 = vmax.xlane.f32.xlu1 %v3050_v18 }
 0x1d3   :  { %v3055_v14 = vpop.xlane.xlu0 %368 }
 0x1d4   :  { %4044 = vst [vmem:[#allocation21_spill] sm:$0xff] %v3055_v14 }
 0x1d5   :  { %735 = vmax.xlane.f32.xlu0 %v3059_v48 }
 0x1d7   :  { %v3062_v57 = vpop.xlane.xlu0 %372 }
 0x1d8   :  { %4045 = vst [vmem:[#allocation22_spill] sm:$0xff] %v3062_v57 }
 0x1db   :  { %v3066_v22 = vpop.xlane.xlu0 %376 }
 0x1dc   :  { %4046 = vst [vmem:[#allocation23_spill] sm:$0xff] %v3066_v22 }
 0x1df   :  { %v3072_v54 = vpop.xlane.xlu0 %380 }
 0x1e0   :  { %4048 = vst [vmem:[#allocation9_spill] sm:$0xff] %v3072_v54 }
 0x1e2   :  { %843 = vrot.lane.b32.xlu1 %v4047_v47, %s2453_s24 }
 0x1e3   :  { %v3074_v20 = vpop.xlane.xlu1 %350 }
 0x1e4   :  { %4049 = vst [vmem:[#allocation24_spill] sm:$0xff] %v3074_v20 }
 0x1e7   :  { %v3076_v40 = vpop.xlane.xlu1 %354  ;;  %v3078_v39 = vpop.permute.xlu0 %1053 }
 0x1e8   :  { %4050 = vst [vmem:[#allocation25_spill] sm:$0xff] %v3076_v40  ;;  %4051 = vst [vmem:[#allocation26_spill] sm:$0xff] %v3078_v39 }
 0x1eb   :  { %v3080_v58 = vpop.xlane.xlu1 %358  ;;  %845 = vrot.lane.b32.xlu0 %v4053_v24, %s2453_s24  ;;  %v3084_v34 = vpop.permute.xlu0 %1065 }
 0x1ec   :  { %4052 = vst [vmem:[#allocation27_spill] sm:$0xff] %v3080_v58  ;;  %4054 = vst [vmem:[#allocation10_spill] sm:$0xff] %v3084_v34 }
 0x1ef   :  { %v3086_v22 = vpop.xlane.xlu1 %362 }
 0x1f0   :  { %4055 = vst [vmem:[#allocation28_spill] sm:$0xff] %v3086_v22  ;;  %v3088_v57 = vpop.permute.xlu0 %1462  ;;  %v647_v22 = vadd.f32 %v2837_v62, %v2937_v5 }
 0x1f2   :  { %v679_v20 = vmul.f32 0.2, %v647_v22  ;;  %vm663_vm6 = vcmp.gt.f32.partialorder %v647_v22, 0.0 }
 0x1f3   :  { %v3090_v47 = vpop.xlane.xlu1 %366 }
 0x1f4   :  { %4056 = vst [vmem:[#allocation29_spill] sm:$0xff] %v3090_v47  ;;  %v3092_v54 = vpop.permute.xlu0 %1478  ;;  %v649_v47 = vadd.f32 %v2837_v62, %v2943_v50  ;;  %v4065_v50 = vld [vmem:[#allocation4_spill] sm:$0xff] }
 0x1f5   :  { %4057 = vst [vmem:[#allocation30_spill] sm:$0xff] %v3092_v54  ;;  %vm4066_vm2 = vcmp.gt.f32.partialorder %v4065_v50, 0.0 }
 0x1f6   :  { %v681_v38 = vmul.f32 0.2, %v649_v47  ;;  %vm665_vm12 = vcmp.gt.f32.partialorder %v649_v47, 0.0 }
 0x1f7   :  { %v3094_v14 = vpop.xlane.xlu1 %370 }
 0x1f8   :  { %4058 = vst [vmem:[#allocation31_spill] sm:$0xff] %v3094_v14  ;;  %v3096_v10 = vpop.permute.xlu0 %1494  ;;  %v648_v14 = vadd.f32 %v2837_v62, %v2935_v43  ;;  %v695_v43 = vsel %vm663_vm6, %v647_v22, %v679_v20  ;;  %v697_v55 = vsel %vm665_vm12, %v649_v47, %v681_v38  ;;  %v4075_v38 = vld [vmem:[#allocation6_spill] sm:$0xff] }
 0x1f9   :  { %4059 = vst [vmem:[#allocation32_spill] sm:$0xff] %v3096_v10 }
 0x1fa   :  { %vm664_vm14 = vcmp.gt.f32.partialorder %v648_v14, 0.0 }
 0x1fb   :  { %v3100_v58 = vpop.xlane.xlu1 %374 }
 0x1fc   :  { %4060 = vst [vmem:[#allocation33_spill] sm:$0xff] %v3100_v58  ;;  %v836_v24 = vpop.permute.xlu0 %835 }
 0x1fd   :  { %2059 = vmatprep.subr.bf16.mxu1 %v836_v24 }
 0x1fe   :  { %2060 = vmatpush3.bf16.msra.mxu1 %v836_v24  ;;  %v3120_v24 = vsel %vm4066_vm2, %v694_v6, -1e+30 }
 0x1ff   :  { %v3106_v40 = vpop.xlane.xlu1 %378 }
 0x200   :  { %4061 = vst [vmem:[#allocation34_spill] sm:$0xff] %v3106_v40  ;;  %v680_v40 = vmul.f32 0.2, %v648_v14 }
 0x202   :  { %v3110_v58 = vpop.f32.mrb[0].mxu0  ;;  %v696_v6 = vsel %vm664_vm14, %v648_v14, %v680_v40 }
 0x203   :  { %4062 = vst [vmem:[#allocation35_spill] sm:$0xff] %v3110_v58  ;;  %v3112_v49 = vpop.permute.xlu1 %1474  ;;  %v3114_v5 = vpop.f32.mrb[1].mxu0  ;;  %v4069_v58 = vld [vmem:[#allocation5_spill] sm:$0xff] }
 0x204   :  { %4063 = vst [vmem:[#allocation36_spill] sm:$0xff] %v3114_v5  ;;  %v3116_v10 = vpop.f32.mrb[2].mxu0  ;;  %vm4070_vm11 = vcmp.gt.f32.partialorder %v4069_v58, 0.0 }
 0x205   :  { %4064 = vst [vmem:[#allocation37_spill] sm:$0xff] %v3116_v10  ;;  %v3122_v34 = vpop.f32.mrb[3].mxu0  ;;  %v3129_v39 = vsel %vm4070_vm11, %v695_v43, -1e+30  ;;  %v3133_v10 = vsel %vm104_vm15, %v697_v55, -1e+30 }
 0x206   :  { %4067 = vst [vmem:[#allocation4_spill] sm:$0xff] %v3122_v34  ;;  %737 = vmax.xlane.f32.xlu1 %v3120_v24  ;;  %vm4076_vm11 = vcmp.gt.f32.partialorder %v4075_v38, 0.0 }
 0x207   :  { %v3125_v31 = vpop.permute.xlu1 %1482  ;;  %v3147_v43 = vsel %vm4076_vm11, %v696_v6, -1e+30 }
 0x208   :  { %4068 = vst [vmem:[#allocation38_spill] sm:$0xff] %v3125_v31 }
 0x20a   :  { %739 = vmax.xlane.f32.xlu1 %v3129_v39  ;;  %743 = vmax.xlane.f32.xlu0 %v3133_v10  ;;  %v3137_v34 = vpop.f32.mrb[4].mxu0 }
 0x20b   :  { %4072 = vst [vmem:[#allocation39_spill] sm:$0xff] %v3137_v34  ;;  %v3139_v22 = vpop.permute.xlu1 %1486  ;;  %v3141_v20 = vpop.f32.mrb[5].mxu0 }
 0x20c   :  { %4073 = vst [vmem:[#allocation40_spill] sm:$0xff] %v3141_v20  ;;  %v3143_v47 = vpop.f32.mrb[6].mxu0 }
 0x20d   :  { %4074 = vst [vmem:[#allocation41_spill] sm:$0xff] %v3143_v47  ;;  %v3149_v5 = vpop.f32.mrb[7].mxu0 }
 0x20e   :  { %4077 = vst [vmem:[#allocation42_spill] sm:$0xff] %v3149_v5  ;;  %741 = vmax.xlane.f32.xlu1 %v3147_v43 }
 0x20f   :  { %v3152_v55 = vpop.permute.xlu1 %1057 }
 0x210   :  { %4078 = vst [vmem:[#allocation43_spill] sm:$0xff] %v3152_v55 }
 0x212   :  { %v3154_v31 = vpop.f32.mrb[8].mxu0 }
 0x213   :  { %4079 = vst [vmem:[#allocation44_spill] sm:$0xff] %v3154_v31  ;;  %v3156_v14 = vpop.permute.xlu1 %1061  ;;  %v3158_v40 = vpop.f32.mrb[9].mxu0  ;;  %v4090_v31 = vld [vmem:[#allocation11_spill] sm:$0xff] }
 0x214   :  { %4080 = vst [vmem:[#allocation45_spill] sm:$0xff] %v3156_v14  ;;  %4081 = vst [vmem:[#allocation46_spill] sm:$0xff] %v3158_v40  ;;  %v3160_v34 = vpop.f32.mrb[10].mxu0 }
 0x215   :  { %4082 = vst [vmem:[#allocation47_spill] sm:$0xff] %v3160_v34  ;;  %v3162_v20 = vpop.f32.mrb[11].mxu0  ;;  %v4092_v34 = vld [vmem:[#allocation12_spill] sm:$0xff] }
 0x216   :  { %4083 = vst [vmem:[#allocation48_spill] sm:$0xff] %v3162_v20 }
 0x218   :  { %v3164_v47 = vpop.permute.xlu1 %1490 }
 0x219   :  { %4084 = vst [vmem:[#allocation49_spill] sm:$0xff] %v3164_v47 }
 0x21a   :  { %v3166_v6 = vpop.f32.mrb[12].mxu0 }
 0x21b   :  { %4085 = vst [vmem:[#allocation50_spill] sm:$0xff] %v3166_v6  ;;  %v3168_v38 = vpop.f32.mrb[13].mxu0  ;;  %v840_v6 = vpop.permute.xlu0 %839 }
 0x21c   :  { %4086 = vst [vmem:[#allocation51_spill] sm:$0xff] %v3168_v38  ;;  %v3170_v5 = vpop.permute.xlu1 %1498  ;;  %v3172_v58 = vpop.f32.mrb[14].mxu0 }
 0x21d   :  { %4087 = vst [vmem:[#allocation52_spill] sm:$0xff] %v3170_v5  ;;  %4088 = vst [vmem:[#allocation53_spill] sm:$0xff] %v3172_v58  ;;  %v3174_v55 = vpop.f32.mrb[15].mxu0  ;;  %v4093_v58 = vld [vmem:[#allocation2_spill] sm:$0xff] }
 0x21e   :  { %4089 = vst [vmem:[#allocation54_spill] sm:$0xff] %v3174_v55  ;;  %v1070_v55 = vsub.s32 2, %v4093_v58 }
 0x21f   :  { %847 = vrot.lane.b32.xlu1 %v4090_v31, %s2453_s24 }
 0x220   :  { %v3178_v40 = vpop.permute.xlu1 %1502  ;;  %849 = vrot.lane.b32.xlu0 %v4092_v34, %s2453_s24  ;;  %v2440_v34 = vld [vmem:[%s3988_s1] sm:$0xf] }
 0x221   :  { %4091 = vst [vmem:[#allocation11_spill] sm:$0xff] %v3178_v40  ;;  %v3190_v40 = vrot.slane %v2440_v34, %v1070_v55 }
 0x224   :  { %v838_v20 = vpop.permute.xlu1 %837  ;;  %1272 = vrot.lane.b32.xlu0 %v2669_v29, %s2454_s2  ;;  %v1507_v29 = vsub.s32 3, %v4093_v58 }
 0x225   :  { %2061 = vmatprep.subr.bf16.mxu1 %v838_v20 }
 0x226   :  { %2062 = vmatpush3.bf16.msra.mxu1 %v838_v20  ;;  %v650_v20 = vadd.f32 %v2837_v62, %v2941_v19  ;;  %v3197_v5 = vrot.slane %v2440_v34, %v1507_v29  ;;  %v1073_v62 = vadd.f32 %v3190_v40, %v2996_v13 }
 0x227   :  { %2063 = vmatprep.subr.bf16.mxu1 %v840_v6 }
 0x228   :  { %v682_v14 = vmul.f32 0.2, %v650_v20  ;;  %v1512_v59 = vadd.f32 %v3197_v5, %v3006_v35  ;;  %vm666_vm6 = vcmp.gt.f32.partialorder %v650_v20, 0.0  ;;  %v1074_v35 = vadd.f32 %v3190_v40, %v2975_v7 }
 0x229   :  { %v1509_v7 = vadd.f32 %v3197_v5, %v2992_v36  ;;  %v1510_v37 = vadd.f32 %v3197_v5, %v2998_v1 }
 0x22a   :  { %2064 = vmatpush3.bf16.msra.mxu1 %v840_v6  ;;  %v1075_v6 = vadd.f32 %v3190_v40, %v2981_v42  ;;  %v698_v55 = vsel %vm666_vm6, %v650_v20, %v682_v14  ;;  %v1544_v54 = vmul.f32 0.2, %v1512_v59  ;;  %vm1528_vm14 = vcmp.gt.f32.partialorder %v1512_v59, 0.0  ;;  %v4094_v42 = vld [vmem:[#allocation8_spill] sm:$0xff] }
 0x22b   :  { %vm4095_vm11 = vcmp.gt.f32.partialorder %v4094_v42, 0.0  ;;  %v1105_v14 = vmul.f32 0.2, %v1073_v62  ;;  %vm1089_vm6 = vcmp.gt.f32.partialorder %v1073_v62, 0.0 }
 0x22c   :  { %v1107_v47 = vmul.f32 0.2, %v1075_v6  ;;  %vm1091_vm12 = vcmp.gt.f32.partialorder %v1075_v6, 0.0  ;;  %v3207_v34 = vsel %vm4095_vm11, %v698_v55, -1e+30 }
 0x22d   :  { %v3184_v38 = vpop.xlane.xlu0 %729  ;;  %v1121_v55 = vsel %vm1089_vm6, %v1073_v62, %v1105_v14 }
 0x22e   :  { %v1123_v19 = vsel %vm1091_vm12, %v1075_v6, %v1107_v47  ;;  %v1560_v47 = vsel %vm1528_vm14, %v1512_v59, %v1544_v54  ;;  %v1106_v6 = vmul.f32 0.2, %v1074_v35  ;;  %vm1090_vm12 = vcmp.gt.f32.partialorder %v1074_v35, 0.0 }
 0x22f   :  { %v3223_v20 = vsel %vm93_vm5, %v1560_v47, -1e+30  ;;  %v3231_v59 = vsel %vm91_vm3, %v1121_v55, -1e+30  ;;  %v1541_v54 = vmul.f32 0.2, %v1509_v7 }
 0x230   :  { %v2441_v47 = vld [vmem:[%s3989_s0 + $0x8] sm:$0xff]   ;;  %v2442_v55 = vld [vmem:[%s3989_s0] sm:$0xff]  }
 0x231   :  { %v842_v31 = vpop.permute.xlu0 %841 }
 0x232   :  { %2065 = vmatprep.subr.bf16.mxu1 %v842_v31 }
 0x233   :  { %2066 = vmatpush3.bf16.msra.mxu1 %v842_v31  ;;  %v1072_v31 = vadd.f32 %v3190_v40, %v2968_v27  ;;  %v3211_v27 = vsel %vm93_vm5, %v1123_v19, -1e+30  ;;  %vm1525_vm5 = vcmp.gt.f32.partialorder %v1509_v7, 0.0 }
 0x234   :  { %v1557_v62 = vsel %vm1525_vm5, %v1509_v7, %v1541_v54  ;;  %v1076_v54 = vadd.f32 %v3190_v40, %v3012_v41  ;;  %v1514_v41 = vadd.f32 %v3197_v5, %v3088_v57 }
 0x235   :  { %v1104_v58 = vmul.f32 0.2, %v1072_v31  ;;  %vm1088_vm2 = vcmp.gt.f32.partialorder %v1072_v31, 0.0  ;;  %v3243_v19 = vsel %vm90_vm0, %v1557_v62, -1e+30 }
 0x236   :  { %vm1530_vm6 = vcmp.gt.f32.partialorder %v1514_v41, 0.0 }
 0x237   :  { %v1120_v13 = vsel %vm1088_vm2, %v1072_v31, %v1104_v58  ;;  %v1122_v31 = vsel %vm1090_vm12, %v1074_v35, %v1106_v6  ;;  %v1542_v58 = vmul.f32 0.2, %v1510_v37  ;;  %vm1526_vm2 = vcmp.gt.f32.partialorder %v1510_v37, 0.0 }
 0x238   :  { %v3219_v29 = vsel %vm90_vm0, %v1120_v13, -1e+30  ;;  %v3238_v36 = vsel %vm92_vm4, %v1122_v31, -1e+30  ;;  %v1079_v31 = vadd.f32 %v3190_v40, %v3004_v56  ;;  %vm1092_vm0 = vcmp.gt.f32.partialorder %v1076_v54, 0.0 }
 0x239   :  { %v1558_v1 = vsel %vm1526_vm2, %v1510_v37, %v1542_v58  ;;  %v1108_v37 = vmul.f32 0.2, %v1076_v54  ;;  %v1513_v58 = vadd.f32 %v3197_v5, %v3026_v45  ;;  %vm4098_vm2 = vcmp.gt.f32.partialorder %v4065_v50, 0.0 }
 0x23a   :  { %v3250_v35 = vsel %vm91_vm3, %v1558_v1, -1e+30  ;;  %v1111_v62 = vmul.f32 0.2, %v1079_v31  ;;  %vm1095_vm3 = vcmp.gt.f32.partialorder %v1079_v31, 0.0 }
 0x23b   :  { %v1124_v1 = vsel %vm1092_vm0, %v1076_v54, %v1108_v37  ;;  %vm1529_vm14 = vcmp.gt.f32.partialorder %v1513_v58, 0.0  ;;  %v1077_v54 = vadd.f32 %v3190_v40, %v3000_v15  ;;  %v1546_v37 = vmul.f32 0.2, %v1514_v41 }
 0x23c   :  { %v1127_v56 = vsel %vm1095_vm3, %v1079_v31, %v1111_v62  ;;  %vm4099_vm3 = vmmov %vm4098_vm2 }
 0x23d   :  { %v3285_v45 = vsel %vm97_vm13, %v1127_v56, -1e+30  ;;  %v1109_v31 = vmul.f32 0.2, %v1077_v54  ;;  %vm1093_vm12 = vcmp.gt.f32.partialorder %v1077_v54, 0.0 }
 0x23f   :  { %v1125_v44 = vsel %vm1093_vm12, %v1077_v54, %v1109_v31  ;;  %v769_v54 = vmul.f32 1.442695, %v750_v33 }
 0x241   :  { %2220 = vpow2.f32 %v769_v54  ;;  %v3349_v54 = vld [vmem:[%s3989_s0 + $0x18] sm:$0xff]  }
 0x243   :  { %745 = vmax.xlane.f32.xlu1 %v3207_v34  ;;  %1158 = vmax.xlane.f32.xlu0 %v3211_v27 }
 0x247   :  { %1152 = vmax.xlane.f32.xlu1 %v3219_v29  ;;  %1595 = vmax.xlane.f32.xlu0 %v3223_v20 }
 0x24b   :  { %1154 = vmax.xlane.f32.xlu1 %v3231_v59 }
 0x24f   :  { %1156 = vmax.xlane.f32.xlu1 %v3238_v36 }
 0x253   :  { %1589 = vmax.xlane.f32.xlu1 %v3243_v19 }
 0x256   :  { %v3246_v14 = vpop.xlane.xlu1 %727 }
 0x257   :  { %1591 = vmax.xlane.f32.xlu1 %v3250_v35  ;;  %v753_v21 = vsub.f32 %v3032_v4, %v3246_v14 }
 0x259   :  { %v775_v33 = vmul.f32 1.442695, %v753_v21 }
 0x25a   :  { %v3253_v13 = vpop.xlane.xlu1 %731 }
 0x25d   :  { %1274 = vrot.lane.b32.xlu0 %v2441_v47, %s2454_s2 }
 0x25e   :  { %v3259_v28 = vpop.xlane.xlu1 %733 }
 0x261   :  { %1711 = vrot.lane.b32.xlu0 %v2441_v47, %s2455_s28  ;;  %v3276_v47 = vsel %vm94_vm8, %v1124_v1, -1e+30  ;;  %v1562_v1 = vsel %vm1530_vm6, %v1514_v41, %v1546_v37  ;;  %v4097_v37 = vld [vmem:[#allocation13_spill] sm:$0xff] }
 0x262   :  { %v844_v6 = vpop.permute.xlu1 %843  ;;  %v3262_v7 = vpop.xlane.xlu0 %735  ;;  %v3301_v15 = vsel %vm95_vm10, %v1562_v1, -1e+30 }
 0x263   :  { %2067 = vmatprep.subr.bf16.mxu1 %v844_v6  ;;  %v757_v14 = vsub.f32 %v3059_v48, %v3262_v7 }
 0x264   :  { %2068 = vmatpush3.bf16.msra.mxu1 %v844_v6  ;;  %v1511_v6 = vadd.f32 %v3197_v5, %v3002_v30 }
 0x265   :  { %v783_v7 = vmul.f32 1.442695, %v757_v14  ;;  %v1516_v14 = vadd.f32 %v3197_v5, %v3053_v11 }
 0x266   :  { %v846_v32 = vpop.permute.xlu0 %845  ;;  %vm1527_vm11 = vcmp.gt.f32.partialorder %v1511_v6, 0.0 }
 0x267   :  { %2069 = vmatprep.subr.bf16.mxu1 %v846_v32  ;;  %vm1532_vm5 = vcmp.gt.f32.partialorder %v1516_v14, 0.0 }
 0x268   :  { %1709 = vrot.lane.b32.xlu1 %v2442_v55, %s2455_s28  ;;  %2070 = vmatpush3.bf16.msra.mxu1 %v846_v32  ;;  %v1545_v32 = vmul.f32 0.2, %v1513_v58  ;;  %v1543_v55 = vmul.f32 0.2, %v1511_v6 }
 0x26a   :  { %v1561_v30 = vsel %vm1529_vm14, %v1513_v58, %v1545_v32  ;;  %v1559_v62 = vsel %vm1527_vm11, %v1511_v6, %v1543_v55  ;;  %v3307_v58 = vsel %vm95_vm10, %v1125_v44, -1e+30  ;;  %v752_v6 = vsub.f32 %v2872_v61, %v2989_v51  ;;  %v4096_v32 = vld [vmem:[#allocation14_spill] sm:$0xff] }
 0x26b   :  { %v3292_v57 = vsel %vm94_vm8, %v1561_v30, -1e+30  ;;  %v3297_v56 = vsel %vm92_vm4, %v1559_v62, -1e+30  ;;  %v749_v41 = vsub.f32 %v4096_v32, %v2973_v9  ;;  %v751_v30 = vsub.f32 %v4097_v37, %v2963_v26 }
 0x26c   :  { %v773_v31 = vmul.f32 1.442695, %v752_v6  ;;  %v756_v61 = vsub.f32 %v3050_v18, %v3259_v28  ;;  %v754_v9 = vsub.f32 %v2986_v23, %v3184_v38  ;;  %v755_v51 = vsub.f32 %v3041_v17, %v3253_v13  ;;  %v2443_v23 = vld [vmem:[%s3989_s0 + $0x10] sm:$0xff]   ;;  %v3335_v38 = vpop.eup %2220 }
 0x26d   :  { %v767_v53 = vmul.f32 1.442695, %v749_v41  ;;  %v771_v44 = vmul.f32 1.442695, %v751_v30 }
 0x26e   :  { %2222 = vpow2.f32 %v773_v31  ;;  %v781_v6 = vmul.f32 1.442695, %v756_v61  ;;  %v777_v32 = vmul.f32 1.442695, %v754_v9  ;;  %v779_v4 = vmul.f32 1.442695, %v755_v51 }
 0x26f   :  { %2224 = vpow2.f32 %v767_v53 }
 0x270   :  { %2226 = vpow2.f32 %v771_v44 }
 0x271   :  { %2228 = vpow2.f32 %v775_v33 }
 0x272   :  { %2230 = vpow2.f32 %v781_v6 }
 0x273   :  { %2232 = vpow2.f32 %v777_v32 }
 0x274   :  { %2234 = vpow2.f32 %v779_v4 }
 0x280   :  { %1160 = vmax.xlane.f32.xlu0 %v3276_v47 }
 0x284   :  { %1166 = vmax.xlane.f32.xlu0 %v3285_v45 }
 0x288   :  { %1597 = vmax.xlane.f32.xlu0 %v3292_v57 }
 0x28c   :  { %1593 = vmax.xlane.f32.xlu1 %v3297_v56  ;;  %1599 = vmax.xlane.f32.xlu0 %v3301_v15 }
 0x290   :  { %1162 = vmax.xlane.f32.xlu1 %v3307_v58 }
 0x293   :  { %v738_v55 = vpop.xlane.xlu1 %737 }
 0x294   :  { %v758_v18 = vsub.f32 %v3120_v24, %v738_v55  ;;  %v3339_v24 = vpop.eup %2222 }
 0x295   :  { %v3342_v28 = vpop.eup %2224 }
 0x296   :  { %v785_v55 = vmul.f32 1.442695, %v758_v18  ;;  %v828_v48 = vpack.c.bf16 %v3335_v38, %v3342_v28  ;;  %v1515_v18 = vadd.f32 %v3197_v5, %v3043_v63 }
 0x297   :  { %v740_v62 = vpop.xlane.xlu1 %739  ;;  %v3318_v1 = vpop.xlane.xlu0 %743 }
 0x298   :  { %v759_v13 = vsub.f32 %v3129_v39, %v740_v62  ;;  %2236 = vpow2.f32 %v785_v55  ;;  %vm1531_vm10 = vcmp.gt.f32.partialorder %v1515_v18, 0.0 }
 0x29a   :  { %v787_v31 = vmul.f32 1.442695, %v759_v13 }
 0x29b   :  { %v742_v26 = vpop.xlane.xlu1 %741  ;;  %v850_v12 = vpop.permute.xlu0 %849 }
 0x29c   :  { %v760_v17 = vsub.f32 %v3147_v43, %v742_v26  ;;  %v3344_v43 = vpop.eup %2226 }
 0x29d   :  { %v829_v39 = vpack.c.bf16 %v3339_v24, %v3344_v43  ;;  %v3357_v53 = vpop.eup %2228 }
 0x29e   :  { %v789_v30 = vmul.f32 1.442695, %v760_v17  ;;  %v3359_v62 = vpop.eup %2230  ;;  %v1547_v17 = vmul.f32 0.2, %v1515_v18 }
 0x29f   :  { %v848_v41 = vpop.permute.xlu1 %847  ;;  %v1273_v37 = vpop.permute.xlu0 %1272 }
 0x2a0   :  { %2071 = vmatprep.subr.bf16.mxu1 %v848_v41  ;;  %2091 = vmatprep.subr.bf16.mxu0 %v1273_v37  ;;  %2238 = vpow2.f32 %v789_v30  ;;  %v3361_v44 = vpop.eup %2232  ;;  %v1548_v30 = vmul.f32 0.2, %v1516_v14  ;;  %v1563_v63 = vsel %vm1531_vm10, %v1515_v18, %v1547_v17  ;;  %vm4110_vm10 = vcmp.gt.f32.partialorder %v4094_v42, 0.0 }
 0x2a1   :  { %1276 = vrot.lane.b32.xlu1 %v2443_v23, %s2454_s2  ;;  %2072 = vmatpush3.bf16.msra.mxu1 %v848_v41  ;;  %2240 = vpow2.f32 %v783_v7  ;;  %v3363_v21 = vpop.eup %2234  ;;  %v830_v61 = vpack.c.bf16 %v3361_v44, %v3357_v53  ;;  %v1078_v41 = vadd.f32 %v3190_v40, %v3020_v3  ;;  %v3401_v11 = vsel %vm96_vm9, %v1563_v63, -1e+30 }
 0x2a2   :  { %1713 = vrot.lane.b32.xlu0 %v2443_v23, %s2455_s28  ;;  %2073 = vmatprep.subr.bf16.mxu1 %v850_v12  ;;  %2242 = vpow2.f32 %v787_v31  ;;  %v831_v9 = vpack.c.bf16 %v3359_v62, %v3363_v21  ;;  %v3369_v26 = vpop.eup %2236  ;;  %v761_v7 = vsub.f32 %v3133_v10, %v3318_v1 }
 0x2a3   :  { %2092 = vmatpush3.bf16.msra.mxu0 %v1273_v37  ;;  %v1080_v37 = vadd.f32 %v3190_v40, %v3010_v16  ;;  %v1110_v4 = vmul.f32 0.2, %v1078_v41  ;;  %vm1094_vm4 = vcmp.gt.f32.partialorder %v1078_v41, 0.0 }
 0x2a4   :  { %v791_v31 = vmul.f32 1.442695, %v761_v7 }
 0x2a5   :  { %2074 = vmatpush3.bf16.msra.mxu1 %v850_v12  ;;  %v1112_v23 = vmul.f32 0.2, %v1080_v37  ;;  %vm1096_vm8 = vcmp.gt.f32.partialorder %v1080_v37, 0.0  ;;  %v1126_v13 = vsel %vm1094_vm4, %v1078_v41, %v1110_v4 }
 0x2a6   :  { %1278 = vrot.lane.b32.xlu0 %v3349_v54, %s2454_s2  ;;  %v3391_v3 = vsel %vm96_vm9, %v1126_v13, -1e+30  ;;  %2244 = vpow2.f32 %v791_v31 }
 0x2a7   :  { %v1128_v55 = vsel %vm1096_vm8, %v1080_v37, %v1112_v23 }
 0x2a8   :  { %2076 = vmatmul.mubr.bf16.vlgmr.msra.gmra.mrb[0].mxu1 %v828_v48  ;;  %v3395_v16 = vsel %vm98_vm1, %v1128_v55, -1e+30  ;;  %v1564_v48 = vsel %vm1532_vm5, %v1516_v14, %v1548_v30 }
 0x2a9   :  { %2079 = vmatprep.mubr.bf16.mxu1 %v829_v39  ;;  %v3408_v39 = vsel %vm97_vm13, %v1564_v48, -1e+30 }
 0x2aa   :  { %v3371_v12 = vpop.eup %2238 }
 0x2ab   :  { %v3373_v51 = vpop.eup %2240 }
 0x2ac   :  { %v3375_v33 = vpop.eup %2242  ;;  %v832_v6 = vpack.c.bf16 %v3369_v26, %v3373_v51 }
 0x2ad   :  { %v833_v32 = vpack.c.bf16 %v3371_v12, %v3375_v33 }
 0x2b0   :  { %2080 = vmatmul.mubr.bf16.gmra.mrb[4].mxu1 %v830_v61  ;;  %v3425_v14 = vpop.eup %2244 }
 0x2b1   :  { %2083 = vmatprep.mubr.bf16.mxu1 %v831_v9 }
 0x2b8   :  { %2084 = vmatmul.mubr.bf16.gmra.mrb[8].mxu1 %v832_v6 }
 0x2b9   :  { %2087 = vmatprep.mubr.bf16.mxu1 %v833_v32 }
 0x2c5   :  { %1164 = vmax.xlane.f32.xlu1 %v3391_v3  ;;  %1168 = vmax.xlane.f32.xlu0 %v3395_v16 }
 0x2c9   :  { %1601 = vmax.xlane.f32.xlu1 %v3401_v11 }
 0x2cd   :  { %1603 = vmax.xlane.f32.xlu1 %v3408_v39 }
 0x2d0   :  { %v746_v61 = vpop.xlane.xlu1 %745  ;;  %v1159_v9 = vpop.xlane.xlu0 %1158 }
 0x2d1   :  { %v762_v6 = vsub.f32 %v3207_v34, %v746_v61  ;;  %v1187_v10 = vsub.f32 %v3211_v27, %v1159_v9  ;;  %v3420_v34 = vld [vmem:[%s3989_s0 + $0x20] sm:$0xff]  }
 0x2d3   :  { %v793_v52 = vmul.f32 1.442695, %v762_v6  ;;  %v1206_v17 = vmul.f32 1.442695, %v1187_v10 }
 0x2d4   :  { %v1153_v32 = vpop.xlane.xlu1 %1152  ;;  %v3412_v41 = vpop.xlane.xlu0 %1595 }
 0x2d5   :  { %2246 = vpow2.f32 %v793_v52  ;;  %v1184_v37 = vsub.f32 %v3219_v29, %v1153_v32 }
 0x2d7   :  { %v1200_v60 = vmul.f32 1.442695, %v1184_v37  ;;  %v1083_v37 = vadd.f32 %v3190_v40, %v3016_v8 }
 0x2d8   :  { %v1155_v1 = vpop.xlane.xlu1 %1154  ;;  %v1275_v4 = vpop.permute.xlu0 %1274 }
 0x2d9   :  { %v1185_v18 = vsub.f32 %v3231_v59, %v1155_v1  ;;  %2093 = vmatprep.subr.bf16.mxu0 %v1275_v4  ;;  %2248 = vpow2.f32 %v1200_v60  ;;  %v1115_v60 = vmul.f32 0.2, %v1083_v37  ;;  %v1520_v1 = vadd.f32 %v3197_v5, %v3139_v22 }
 0x2da   :  { %2094 = vmatpush3.bf16.msra.mxu0 %v1275_v4  ;;  %vm1099_vm9 = vcmp.gt.f32.partialorder %v1083_v37, 0.0  ;;  %v1082_v22 = vadd.f32 %v3190_v40, %v3068_v0 }
 0x2db   :  { %v1202_v23 = vmul.f32 1.442695, %v1185_v18  ;;  %1280 = vrot.lane.b32.xlu0 %v3420_v34, %s2454_s2  ;;  %vm1536_vm13 = vcmp.gt.f32.partialorder %v1520_v1, 0.0 }
 0x2dc   :  { %v1157_v29 = vpop.xlane.xlu1 %1156  ;;  %vm1098_vm14 = vcmp.gt.f32.partialorder %v1082_v22, 0.0 }
 0x2dd   :  { %2250 = vpow2.f32 %v1202_v23  ;;  %v1186_v27 = vsub.f32 %v3238_v36, %v1157_v29  ;;  %v1081_v23 = vadd.f32 %v3190_v40, %v3064_v2  ;;  %v1131_v29 = vsel %vm1099_vm9, %v1083_v37, %v1115_v60 }
 0x2de   :  { %1715 = vrot.lane.b32.xlu1 %v3349_v54, %s2455_s28  ;;  %2252 = vpow2.f32 %v1206_v17  ;;  %v1552_v17 = vmul.f32 0.2, %v1520_v1  ;;  %v3461_v8 = vsel %vm4098_vm2, %v1131_v29, -1e+30  ;;  %v1114_v2 = vmul.f32 0.2, %v1082_v22 }
 0x2df   :  { %v3429_v59 = vpop.eup %2246  ;;  %v1204_v13 = vmul.f32 1.442695, %v1186_v27  ;;  %v1113_v27 = vmul.f32 0.2, %v1081_v23  ;;  %vm1097_vm0 = vcmp.gt.f32.partialorder %v1081_v23, 0.0 }
 0x2e0   :  { %v1590_v55 = vpop.xlane.xlu1 %1589  ;;  %v834_v30 = vpack.c.bf16 %v3429_v59, %v3425_v14  ;;  %v1130_v50 = vsel %vm1098_vm14, %v1082_v22, %v1114_v2 }
 0x2e1   :  { %2254 = vpow2.f32 %v1204_v13  ;;  %v1621_v63 = vsub.f32 %v3243_v19, %v1590_v55  ;;  %v1712_v19 = vpop.permute.xlu0 %1711  ;;  %v1568_v13 = vsel %vm1536_vm13, %v1520_v1, %v1552_v17 }
 0x2e2   :  { %2088 = vmatmul.mubr.bf16.gmra.mrb[12].mxu1 %v834_v30  ;;  %v3468_v55 = vsel %vm4099_vm3, %v1568_v13, -1e+30  ;;  %v1517_v30 = vadd.f32 %v3197_v5, %v3112_v49 }
 0x2e3   :  { %v1637_v48 = vmul.f32 1.442695, %v1621_v63  ;;  %v3435_v31 = vpop.eup %2248  ;;  %v1129_v63 = vsel %vm1097_vm0, %v1081_v23, %v1113_v27  ;;  %v1624_v23 = vsub.f32 %v3223_v20, %v3412_v41 }
 0x2e4   :  { %v1592_v7 = vpop.xlane.xlu1 %1591  ;;  %v1549_v0 = vmul.f32 0.2, %v1517_v30  ;;  %vm1533_vm11 = vcmp.gt.f32.partialorder %v1517_v30, 0.0 }
 0x2e5   :  { %v1622_v36 = vsub.f32 %v3250_v35, %v1592_v7  ;;  %2256 = vpow2.f32 %v1637_v48  ;;  %v3475_v48 = vsel %vm99_vm7, %v1129_v63, -1e+30  ;;  %v4100_v7 = vld [vmem:[#allocation30_spill] sm:$0xff]  ;;  %v1643_v27 = vmul.f32 1.442695, %v1624_v23 }
 0x2e6   :  { %v4103_v23 = vld [vmem:[#allocation26_spill] sm:$0xff] }
 0x2e7   :  { %v3437_v61 = vpop.eup %2250  ;;  %v1639_v54 = vmul.f32 1.442695, %v1622_v36  ;;  %v1518_v36 = vadd.f32 %v3197_v5, %v4100_v7 }
 0x2e8   :  { %v1710_v9 = vpop.permute.xlu1 %1709  ;;  %v1264_v6 = vpack.c.bf16 %v3437_v61, %v3435_v31  ;;  %v3441_v52 = vpop.eup %2252 }
 0x2e9   :  { %2258 = vpow2.f32 %v1639_v54  ;;  %2123 = vmatprep.subr.bf16.mxu1 %v1710_v9  ;;  %v4101_v54 = vld [vmem:[#allocation3_spill] sm:$0xff]  ;;  %v1550_v49 = vmul.f32 0.2, %v1518_v36  ;;  %vm1534_vm12 = vcmp.gt.f32.partialorder %v1518_v36, 0.0 }
 0x2ea   :  { %2107 = vmatprep.mubr.bf16.mxu0 %v1264_v6  ;;  %2124 = vmatpush3.bf16.msra.mxu1 %v1710_v9  ;;  %vm4102_vm6 = vcmp.gt.f32.partialorder %v4101_v54, 0.0  ;;  %v1565_v6 = vsel %vm1533_vm11, %v1517_v30, %v1549_v0  ;;  %2260 = vpow2.f32 %v1643_v27 }
 0x2eb   :  { %v3443_v32 = vpop.eup %2254  ;;  %2125 = vmatprep.subr.bf16.mxu1 %v1712_v19  ;;  %v3482_v9 = vsel %vm4102_vm6, %v1130_v50, -1e+30  ;;  %v1566_v37 = vsel %vm1534_vm12, %v1518_v36, %v1550_v49  ;;  %vm4113_vm0 = vmmov %vm4102_vm6 }
 0x2ec   :  { %v3492_v1 = vsel %vm99_vm7, %v1566_v37, -1e+30 }
 0x2ee   :  { %2126 = vmatpush3.bf16.msra.mxu1 %v1712_v19  ;;  %v3487_v19 = vsel %vm98_vm1, %v1565_v6, -1e+30 }
 0x2ef   :  { %v3449_v10 = vpop.eup %2256 }
 0x2f3   :  { %v3453_v4 = vpop.eup %2258 }
 0x2f4   :  { %v1701_v18 = vpack.c.bf16 %v3453_v4, %v3449_v10  ;;  %v3511_v50 = vpop.eup %2260 }
 0x2f6   :  { %2139 = vmatprep.mubr.bf16.mxu1 %v1701_v18 }
 0x2fa   :  { %1174 = vmax.xlane.f32.xlu0 %v3461_v8 }
 0x2fe   :  { %1611 = vmax.xlane.f32.xlu0 %v3468_v55 }
 0x302   :  { %1170 = vmax.xlane.f32.xlu1 %v3475_v48 }
 0x306   :  { %1172 = vmax.xlane.f32.xlu1 %v3482_v9 }
 0x30a   :  { %1605 = vmax.xlane.f32.xlu1 %v3487_v19 }
 0x30d   :  { %v1161_v60 = vpop.xlane.xlu0 %1160 }
 0x30e   :  { %1607 = vmax.xlane.f32.xlu1 %v3492_v1  ;;  %v1188_v46 = vsub.f32 %v3276_v47, %v1161_v60 }
 0x310   :  { %v1208_v0 = vmul.f32 1.442695, %v1188_v46  ;;  %v4104_v46 = vld [vmem:[#allocation10_spill] sm:$0xff] }
 0x311   :  { %v3495_v18 = vpop.xlane.xlu0 %1166 }
 0x312   :  { %v1191_v54 = vsub.f32 %v3285_v45, %v3495_v18 }
 0x314   :  { %1282 = vrot.lane.b32.xlu0 %v2446_v25, %s2454_s2 }
 0x315   :  { %v1598_v17 = vpop.xlane.xlu0 %1597 }
 0x316   :  { %v1625_v29 = vsub.f32 %v3292_v57, %v1598_v17 }
 0x318   :  { %1719 = vrot.lane.b32.xlu0 %v2446_v25, %s2455_s28  ;;  %v1645_v22 = vmul.f32 1.442695, %v1625_v29  ;;  %v1084_v25 = vadd.f32 %v3190_v40, %v4103_v23 }
 0x319   :  { %v1594_v13 = vpop.xlane.xlu1 %1593  ;;  %v1600_v2 = vpop.xlane.xlu0 %1599 }
 0x31a   :  { %v1623_v30 = vsub.f32 %v3297_v56, %v1594_v13  ;;  %v1626_v20 = vsub.f32 %v3301_v15, %v1600_v2  ;;  %2262 = vpow2.f32 %v1645_v22  ;;  %v1116_v27 = vmul.f32 0.2, %v1084_v25  ;;  %v4105_v2 = vld [vmem:[#allocation49_spill] sm:$0xff] }
 0x31b   :  { %v1087_v22 = vadd.f32 %v3190_v40, %v4104_v46  ;;  %vm1100_vm1 = vcmp.gt.f32.partialorder %v1084_v25, 0.0 }
 0x31c   :  { %v1641_v41 = vmul.f32 1.442695, %v1623_v30  ;;  %v1647_v63 = vmul.f32 1.442695, %v1626_v20  ;;  %v1521_v30 = vadd.f32 %v3197_v5, %v4105_v2  ;;  %v1132_v20 = vsel %vm1100_vm1, %v1084_v25, %v1116_v27  ;;  %v4111_v25 = vld [vmem:[#allocation43_spill] sm:$0xff]  ;;  %vm4123_vm1 = vmmov %vm4110_vm10 }
 0x31d   :  { %v1163_v7 = vpop.xlane.xlu1 %1162  ;;  %v1714_v36 = vpop.permute.xlu0 %1713  ;;  %v1119_v13 = vmul.f32 0.2, %v1087_v22  ;;  %vm1103_vm7 = vcmp.gt.f32.partialorder %v1087_v22, 0.0  ;;  %v1085_v27 = vadd.f32 %v3190_v40, %v4111_v25 }
 0x31e   :  { %2264 = vpow2.f32 %v1641_v41  ;;  %v1189_v57 = vsub.f32 %v3307_v58, %v1163_v7  ;;  %2127 = vmatprep.subr.bf16.mxu1 %v1714_v36  ;;  %v4106_v41 = vld [vmem:[#allocation5_spill] sm:$0xff]  ;;  %vm1537_vm8 = vcmp.gt.f32.partialorder %v1521_v30, 0.0 }
 0x31f   :  { %2266 = vpow2.f32 %v1647_v63  ;;  %1717 = vrot.lane.b32.xlu1 %v3420_v34, %s2455_s28  ;;  %2128 = vmatpush3.bf16.msra.mxu1 %v1714_v36  ;;  %vm4107_vm4 = vcmp.gt.f32.partialorder %v4106_v41, 0.0  ;;  %v1553_v36 = vmul.f32 0.2, %v1521_v30  ;;  %vm1101_vm2 = vcmp.gt.f32.partialorder %v1085_v27, 0.0 }
 0x320   :  { %v1210_v47 = vmul.f32 1.442695, %v1189_v57  ;;  %2268 = vpow2.f32 %v1208_v0  ;;  %v3537_v63 = vsel %vm4107_vm4, %v1132_v20, -1e+30  ;;  %v4108_v0 = vld [vmem:[#allocation38_spill] sm:$0xff]  ;;  %v4109_v57 = vld [vmem:[#allocation32_spill] sm:$0xff]  ;;  %vm4112_vm13 = vmmov %vm4107_vm4 }
 0x321   :  { %v1277_v56 = vpop.permute.xlu1 %1276  ;;  %v1279_v15 = vpop.permute.xlu0 %1278  ;;  %v1519_v7 = vadd.f32 %v3197_v5, %v4108_v0  ;;  %v1569_v2 = vsel %vm1537_vm8, %v1521_v30, %v1553_v36 }
 0x322   :  { %2270 = vpow2.f32 %v1210_v47  ;;  %2095 = vmatprep.subr.bf16.mxu0 %v1277_v56  ;;  %v1522_v47 = vadd.f32 %v3197_v5, %v4109_v57  ;;  %v3553_v20 = vsel %vm4112_vm13, %v1569_v2, -1e+30 }
 0x323   :  { %2096 = vmatpush3.bf16.msra.mxu0 %v1277_v56  ;;  %v1135_v56 = vsel %vm1103_vm7, %v1087_v22, %v1119_v13  ;;  %v1551_v23 = vmul.f32 0.2, %v1519_v7  ;;  %vm1535_vm5 = vcmp.gt.f32.partialorder %v1519_v7, 0.0  ;;  %v1117_v22 = vmul.f32 0.2, %v1085_v27 }
 0x324   :  { %2097 = vmatprep.subr.bf16.mxu0 %v1279_v15  ;;  %v3513_v49 = vpop.eup %2262  ;;  %v1554_v46 = vmul.f32 0.2, %v1522_v47  ;;  %vm1538_vm9 = vcmp.gt.f32.partialorder %v1522_v47, 0.0 }
 0x325   :  { %v1567_v13 = vsel %vm1535_vm5, %v1519_v7, %v1551_v23  ;;  %v1133_v30 = vsel %vm1101_vm2, %v1085_v27, %v1117_v22  ;;  %v1214_v7 = vmul.f32 1.442695, %v1191_v54  ;;  %v2447_v22 = vld [vmem:[%s3989_s0 + $0x30] sm:$0xff]  }
 0x326   :  { %v1570_v0 = vsel %vm1538_vm9, %v1522_v47, %v1554_v46  ;;  %v3558_v57 = vsel %vm4113_vm0, %v1567_v13, -1e+30 }
 0x327   :  { %2098 = vmatpush3.bf16.msra.mxu0 %v1279_v15  ;;  %v3546_v15 = vsel %vm4110_vm10, %v1135_v56, -1e+30  ;;  %v4114_v56 = vld [vmem:[#allocation6_spill] sm:$0xff]  ;;  %2272 = vpow2.f32 %v1214_v7 }
 0x328   :  { %v3515_v58 = vpop.eup %2264  ;;  %vm4115_vm3 = vcmp.gt.f32.partialorder %v4114_v56, 0.0  ;;  %v2448_v56 = vld [vmem:[%s3989_s0 + $0x38] sm:$0xff]  }
 0x329   :  { %v3517_v6 = vpop.eup %2266  ;;  %v3562_v25 = vsel %vm4115_vm3, %v1570_v0, -1e+30  ;;  %vm4116_vm14 = vmmov %vm4115_vm3 }
 0x32a   :  { %v3523_v60 = vpop.eup %2268  ;;  %v3568_v41 = vsel %vm4116_vm14, %v1133_v30, -1e+30 }
 0x32c   :  { %v3527_v17 = vpop.eup %2270 }
 0x331   :  { %v3587_v30 = vpop.eup %2272 }
 0x337   :  { %1176 = vmax.xlane.f32.xlu0 %v3537_v63 }
 0x33b   :  { %1182 = vmax.xlane.f32.xlu0 %v3546_v15 }
 0x33f   :  { %1613 = vmax.xlane.f32.xlu0 %v3553_v20 }
 0x343   :  { %1609 = vmax.xlane.f32.xlu1 %v3558_v57  ;;  %1615 = vmax.xlane.f32.xlu0 %v3562_v25 }
 0x347   :  { %1178 = vmax.xlane.f32.xlu1 %v3568_v41 }
 0x352   :  { %v1165_v36 = vpop.xlane.xlu1 %1164  ;;  %v3573_v47 = vpop.xlane.xlu0 %1168 }
 0x353   :  { %v1190_v23 = vsub.f32 %v3391_v3, %v1165_v36 }
 0x355   :  { %v1212_v46 = vmul.f32 1.442695, %v1190_v23 }
 0x356   :  { %v1602_v2 = vpop.xlane.xlu1 %1601  ;;  %v1281_v13 = vpop.permute.xlu0 %1280 }
 0x357   :  { %2274 = vpow2.f32 %v1212_v46  ;;  %v1627_v27 = vsub.f32 %v3401_v11, %v1602_v2  ;;  %2099 = vmatprep.subr.bf16.mxu0 %v1281_v13  ;;  %v4117_v46 = vld [vmem:[#allocation45_spill] sm:$0xff] }
 0x358   :  { %1284 = vrot.lane.b32.xlu1 %v2447_v22, %s2454_s2  ;;  %2100 = vmatpush3.bf16.msra.mxu0 %v1281_v13  ;;  %v1086_v2 = vadd.f32 %v3190_v40, %v4117_v46  ;;  %v4121_v40 = vld [vmem:[#allocation16_spill] sm:$0xff] }
 0x359   :  { %1721 = vrot.lane.b32.xlu0 %v2447_v22, %s2455_s28  ;;  %v1649_v45 = vmul.f32 1.442695, %v1627_v27  ;;  %v4118_v27 = vld [vmem:[#allocation52_spill] sm:$0xff] }
 0x35a   :  { %v1604_v18 = vpop.xlane.xlu1 %1603  ;;  %v1118_v13 = vmul.f32 0.2, %v1086_v2  ;;  %v1523_v22 = vadd.f32 %v3197_v5, %v4118_v27  ;;  %vm1102_vm11 = vcmp.gt.f32.partialorder %v1086_v2, 0.0 }
 0x35b   :  { %v1628_v3 = vsub.f32 %v3408_v39, %v1604_v18  ;;  %2276 = vpow2.f32 %v1649_v45  ;;  %v4119_v18 = vld [vmem:[#allocation11_spill] sm:$0xff] }
 0x35c   :  { %v1555_v45 = vmul.f32 0.2, %v1523_v22  ;;  %vm1539_vm6 = vcmp.gt.f32.partialorder %v1523_v22, 0.0 }
 0x35d   :  { %v1651_v0 = vmul.f32 1.442695, %v1628_v3  ;;  %1286 = vrot.lane.b32.xlu0 %v2448_v56, %s2454_s2  ;;  %v1524_v3 = vadd.f32 %v3197_v5, %v4119_v18 }
 0x35e   :  { %v1716_v11 = vpop.permute.xlu1 %1715  ;;  %v1571_v27 = vsel %vm1539_vm6, %v1523_v22, %v1555_v45 }
 0x35f   :  { %2278 = vpow2.f32 %v1651_v0  ;;  %2129 = vmatprep.subr.bf16.mxu1 %v1716_v11  ;;  %v1134_v0 = vsel %vm1102_vm11, %v1086_v2, %v1118_v13  ;;  %v1556_v23 = vmul.f32 0.2, %v1524_v3  ;;  %vm1540_vm12 = vcmp.gt.f32.partialorder %v1524_v3, 0.0 }
 0x360   :  { %2130 = vmatpush3.bf16.msra.mxu1 %v1716_v11  ;;  %v3609_v34 = vsel %vm104_vm15, %v1134_v0, -1e+30  ;;  %v3621_v2 = vsel %vm104_vm15, %v1571_v27, -1e+30  ;;  %vm1933_vm15 = vcmask 261120  }
 0x361   :  { %v3589_v54 = vpop.eup %2274  ;;  %v1572_v13 = vsel %vm1540_vm12, %v1524_v3, %v1556_v23 }
 0x362   :  { %v3629_v0 = vsel %vm4123_vm1, %v1572_v13, -1e+30 }
 0x365   :  { %v3593_v39 = vpop.eup %2276 }
 0x369   :  { %v3595_v36 = vpop.eup %2278 }
 0x37b   :  { %v3605_v11 = vpop.f32.mrb[0].mxu1 }
 0x37c   :  { %1180 = vmax.xlane.f32.xlu1 %v3609_v34  ;;  %795 = vadd.xlane.f32.xlu0 %v4121_v40  ;;  %v3613_v46 = vpop.f32.mrb[1].mxu1 }
 0x37d   :  { %v3615_v7 = vpop.f32.mrb[2].mxu1 }
 0x37e   :  { %v3617_v5 = vpop.f32.mrb[3].mxu1 }
 0x37f   :  { %4122 = vst [vmem:[#allocation12_spill] sm:$0xff] %v3617_v5 }
 0x380   :  { %1617 = vmax.xlane.f32.xlu1 %v3621_v2  ;;  %799 = vadd.xlane.f32.xlu0 %v3342_v28 }
 0x383   :  { %v3625_v18 = vpop.f32.mrb[4].mxu1 }
 0x384   :  { %1619 = vmax.xlane.f32.xlu1 %v3629_v0  ;;  %801 = vadd.xlane.f32.xlu0 %v3335_v38  ;;  %v3633_v22 = vpop.f32.mrb[5].mxu1 }
 0x385   :  { %v3635_v37 = vpop.f32.mrb[6].mxu1 }
 0x386   :  { %v3637_v45 = vpop.f32.mrb[7].mxu1 }
 0x387   :  { %v1175_v40 = vpop.xlane.xlu0 %1174 }
 0x388   :  { %803 = vadd.xlane.f32.xlu0 %v3344_v43 }
 0x38b   :  { %v3640_v28 = vpop.f32.mrb[8].mxu1  ;;  %v3642_v23 = vpop.xlane.xlu0 %1611 }
 0x38c   :  { %4124 = vst [vmem:[#allocation2_spill] sm:$0xff] %v3640_v28  ;;  %805 = vadd.xlane.f32.xlu0 %v3339_v24  ;;  %v3645_v42 = vpop.f32.mrb[9].mxu1 }
 0x38d   :  { %4125 = vst [vmem:[#allocation8_spill] sm:$0xff] %v3645_v42  ;;  %v3647_v3 = vpop.f32.mrb[10].mxu1 }
 0x38e   :  { %v3649_v38 = vpop.f32.mrb[11].mxu1 }
 0x38f   :  { %v1171_v27 = vpop.xlane.xlu1 %1170  ;;  %v1283_v13 = vpop.permute.xlu0 %1282 }
 0x390   :  { %807 = vadd.xlane.f32.xlu0 %v3357_v53  ;;  %2101 = vmatprep.subr.bf16.mxu0 %v1283_v13 }
 0x391   :  { %2102 = vmatpush3.bf16.msra.mxu0 %v1283_v13  ;;  %v1192_v13 = vsub.f32 %v3395_v16, %v3573_v47 }
 0x393   :  { %v1173_v29 = vpop.xlane.xlu1 %1172 }
 0x394   :  { %809 = vadd.xlane.f32.xlu0 %v3361_v44  ;;  %v1720_v44 = vpop.permute.xlu0 %1719 }
 0x395   :  { %1723 = vrot.lane.b32.xlu1 %v2448_v56, %s2455_s28 }
 0x397   :  { %v1606_v43 = vpop.xlane.xlu1 %1605 }
 0x398   :  { %v1629_v24 = vsub.f32 %v3487_v19, %v1606_v43  ;;  %813 = vadd.xlane.f32.xlu0 %v3359_v62  ;;  %v1193_v62 = vsub.f32 %v3475_v48, %v1171_v27  ;;  %v1632_v43 = vsub.f32 %v3468_v55, %v3642_v23 }
 0x39a   :  { %v1653_v35 = vmul.f32 1.442695, %v1629_v24 }
 0x39b   :  { %v1608_v28 = vpop.xlane.xlu1 %1607 }
 0x39c   :  { %v1630_v42 = vsub.f32 %v3492_v1, %v1608_v28  ;;  %817 = vadd.xlane.f32.xlu0 %v3369_v26  ;;  %2280 = vpow2.f32 %v1653_v35  ;;  %v1195_v26 = vsub.f32 %v3461_v8, %v1175_v40  ;;  %v1218_v35 = vmul.f32 1.442695, %v1193_v62  ;;  %v4126_v40 = vld [vmem:[#allocation15_spill] sm:$0xff] }
 0x39e   :  { %v1655_v5 = vmul.f32 1.442695, %v1630_v42  ;;  %v1222_v56 = vmul.f32 1.442695, %v1195_v26 }
 0x39f   :  { %v1718_v53 = vpop.permute.xlu1 %1717 }
 0x3a0   :  { %2282 = vpow2.f32 %v1655_v5  ;;  %821 = vadd.xlane.f32.xlu0 %v3371_v12  ;;  %2131 = vmatprep.subr.bf16.mxu1 %v1718_v53 }
 0x3a1   :  { %2132 = vmatpush3.bf16.msra.mxu1 %v1718_v53  ;;  %2284 = vpow2.f32 %v1218_v35  ;;  %v1216_v53 = vmul.f32 1.442695, %v1192_v13  ;;  %v4128_v13 = vpack.c.bf16 %v3527_v17, %v3523_v60 }
 0x3a2   :  { %2133 = vmatprep.subr.bf16.mxu1 %v1720_v44  ;;  %2286 = vpow2.f32 %v1222_v56 }
 0x3a3   :  { %2288 = vpow2.f32 %v1216_v53 }
 0x3a4   :  { %825 = vadd.xlane.f32.xlu0 %v3429_v59 }
 0x3a5   :  { %2134 = vmatpush3.bf16.msra.mxu1 %v1720_v44 }
 0x3a6   :  { %v3662_v19 = vpop.eup %2280 }
 0x3a8   :  { %1234 = vadd.xlane.f32.xlu0 %v3437_v61 }
 0x3aa   :  { %v3665_v1 = vpop.eup %2282 }
 0x3ab   :  { %v1705_v12 = vpack.c.bf16 %v3665_v1, %v3662_v19  ;;  %v3676_v8 = vpop.eup %2284 }
 0x3ac   :  { %1238 = vadd.xlane.f32.xlu0 %v3441_v52  ;;  %v3684_v28 = vpop.eup %2286 }
 0x3b0   :  { %1242 = vadd.xlane.f32.xlu0 %v3527_v17 }
 0x3b4   :  { %1246 = vadd.xlane.f32.xlu0 %v3587_v30 }
 0x3b5   :  { %v3672_v59 = vpop.f32.mrb[12].mxu1 }
 0x3b6   :  { %v3674_v61 = vpop.f32.mrb[13].mxu1 }
 0x3b7   :  { %v3678_v48 = vpop.f32.mrb[14].mxu1 }
 0x3b8   :  { %v3680_v5 = vpop.f32.mrb[15].mxu1  ;;  %1250 = vadd.xlane.f32.xlu0 %v3676_v8 }
 0x3b9   :  { %797 = vadd.xlane.f32.xlu1 %v4126_v40 }
 0x3bc   :  { %1254 = vadd.xlane.f32.xlu0 %v3684_v28 }
 0x3bd   :  { %811 = vadd.xlane.f32.xlu1 %v3363_v21  ;;  %v1194_v21 = vsub.f32 %v3482_v9, %v1173_v29 }
 0x3c1   :  { %815 = vadd.xlane.f32.xlu1 %v3373_v51  ;;  %v1659_v51 = vmul.f32 1.442695, %v1632_v43 }
 0x3c3   :  { %2290 = vpow2.f32 %v1659_v51 }
 0x3c4   :  { %v1177_v42 = vpop.xlane.xlu0 %1176 }
 0x3c5   :  { %819 = vadd.xlane.f32.xlu1 %v3375_v33  ;;  %v1196_v16 = vsub.f32 %v3537_v63, %v1177_v42  ;;  %v2289_v63 = vpop.eup %2288 }
 0x3c6   :  { %v1268_v51 = vpack.c.bf16 %v3676_v8, %v2289_v63 }
 0x3c7   :  { %v1224_v29 = vmul.f32 1.442695, %v1196_v16 }
 0x3c8   :  { %v1183_v27 = vpop.xlane.xlu0 %1182 }
 0x3c9   :  { %823 = vadd.xlane.f32.xlu1 %v3425_v14  ;;  %v1220_v14 = vmul.f32 1.442695, %v1194_v21 }
 0x3cc   :  { %v3695_v24 = vpop.xlane.xlu0 %1613 }
 0x3cd   :  { %1232 = vadd.xlane.f32.xlu1 %v3435_v31  ;;  %v1199_v31 = vsub.f32 %v3546_v15, %v1183_v27  ;;  %v3706_v15 = vpop.eup %2290  ;;  %v4127_v27 = vpack.c.bf16 %v3441_v52, %v3443_v32 }
 0x3cf   :  { %v1230_v56 = vmul.f32 1.442695, %v1199_v31 }
 0x3d0   :  { %v1610_v44 = vpop.xlane.xlu1 %1609  ;;  %v1616_v62 = vpop.xlane.xlu0 %1615 }
 0x3d1   :  { %v1631_v33 = vsub.f32 %v3558_v57, %v1610_v44  ;;  %1236 = vadd.xlane.f32.xlu1 %v3443_v32  ;;  %v4129_v44 = vpack.c.bf16 %v3587_v30, %v3589_v54  ;;  %v4130_v30 = vld [vmem:[#allocation24_spill] sm:$0xff] }
 0x3d3   :  { %v1657_v47 = vmul.f32 1.442695, %v1631_v33 }
 0x3d4   :  { %v1179_v55 = vpop.xlane.xlu1 %1178  ;;  %v1722_v23 = vpop.permute.xlu0 %1721 }
 0x3d5   :  { %2292 = vpow2.f32 %v1657_v47  ;;  %v1197_v9 = vsub.f32 %v3568_v41, %v1179_v55  ;;  %1240 = vadd.xlane.f32.xlu1 %v3523_v60  ;;  %2135 = vmatprep.subr.bf16.mxu1 %v1722_v23  ;;  %v1634_v60 = vsub.f32 %v3562_v25, %v1616_v62  ;;  %v4131_v62 = vld [vmem:[#allocation25_spill] sm:$0xff]  ;;  %v4132_v55 = vld [vmem:[#allocation18_spill] sm:$0xff] }
 0x3d6   :  { %2294 = vpow2.f32 %v1220_v14  ;;  %2136 = vmatpush3.bf16.msra.mxu1 %v1722_v23 }
 0x3d7   :  { %v1226_v57 = vmul.f32 1.442695, %v1197_v9  ;;  %v1663_v17 = vmul.f32 1.442695, %v1634_v60  ;;  %v4138_v60 = vpack.c.bf16 %v3517_v6, %v3513_v49 }
 0x3d8   :  { %v1285_v26 = vpop.permute.xlu1 %1284  ;;  %v1287_v35 = vpop.permute.xlu0 %1286 }
 0x3d9   :  { %2296 = vpow2.f32 %v1226_v57  ;;  %1244 = vadd.xlane.f32.xlu1 %v3589_v54  ;;  %2103 = vmatprep.subr.bf16.mxu0 %v1285_v26  ;;  %v4133_v57 = vld [vmem:[#allocation27_spill] sm:$0xff] }
 0x3da   :  { %2298 = vpow2.f32 %v1224_v29  ;;  %2104 = vmatpush3.bf16.msra.mxu0 %v1285_v26 }
 0x3db   :  { %2105 = vmatprep.subr.bf16.mxu0 %v1287_v35  ;;  %2300 = vpow2.f32 %v1230_v56 }
 0x3dc   :  { %2302 = vpow2.f32 %v1663_v17 }
 0x3dd   :  { %1248 = vadd.xlane.f32.xlu1 %v2289_v63  ;;  %2304 = vrcp.f32 %v4130_v30  ;;  %v4139_v30 = vld [vmem:[#allocation28_spill] sm:$0xff] }
 0x3de   :  { %2106 = vmatpush3.bf16.msra.mxu0 %v1287_v35  ;;  %v1633_v35 = vsub.f32 %v3553_v20, %v3695_v24  ;;  %v4136_v20 = vld [vmem:[#allocation35_spill] sm:$0xff] }
 0x3df   :  { %v3708_v41 = vpop.eup %2292 }
 0x3e0   :  { %v2295_v40 = vpop.eup %2294  ;;  %v1706_v42 = vpack.c.bf16 %v3706_v15, %v3708_v41 }
 0x3e1   :  { %1252 = vadd.xlane.f32.xlu1 %v2295_v40  ;;  %2108 = vmatmul.mubr.bf16.vlgmr.msra.gmra.mrb[16].mxu0 %v4127_v27  ;;  %v1269_v52 = vpack.c.bf16 %v3684_v28, %v2295_v40 }
 0x3e2   :  { %2111 = vmatprep.mubr.bf16.mxu0 %v4128_v13 }
 0x3e3   :  { %v2297_v43 = vpop.eup %2296 }
 0x3e4   :  { %v2299_v53 = vpop.eup %2298  ;;  %1258 = vadd.xlane.f32.xlu0 %v2297_v43 }
 0x3e5   :  { %1256 = vadd.xlane.f32.xlu1 %v2299_v53  ;;  %v2301_v21 = vpop.eup %2300  ;;  %v1270_v32 = vpack.c.bf16 %v2297_v43, %v2299_v53  ;;  %v4135_v53 = vld [vmem:[#allocation19_spill] sm:$0xff] }
 0x3e8   :  { %1262 = vadd.xlane.f32.xlu0 %v2301_v21 }
 0x3e9   :  { %2112 = vmatmul.mubr.bf16.gmra.mrb[20].mxu0 %v4129_v44 }
 0x3ea   :  { %2115 = vmatprep.mubr.bf16.mxu0 %v1268_v51  ;;  %v1661_v51 = vmul.f32 1.442695, %v1633_v35 }
 0x3ec   :  { %1671 = vadd.xlane.f32.xlu0 %v3453_v4  ;;  %v3730_v4 = vpop.eup %2302 }
 0x3ed   :  { %v2305_v31 = vpop.eup %2304 }
 0x3f0   :  { %1675 = vadd.xlane.f32.xlu0 %v3511_v50 }
 0x3f1   :  { %2116 = vmatmul.mubr.bf16.gmra.mrb[24].mxu0 %v1269_v52 }
 0x3f2   :  { %2119 = vmatprep.mubr.bf16.mxu0 %v1270_v32 }
 0x3f4   :  { %1679 = vadd.xlane.f32.xlu0 %v3517_v6 }
 0x3f8   :  { %1683 = vadd.xlane.f32.xlu0 %v3595_v36 }
 0x3fc   :  { %1687 = vadd.xlane.f32.xlu0 %v3665_v1 }
 0x400   :  { %1691 = vadd.xlane.f32.xlu0 %v3706_v15 }
 0x404   :  { %1695 = vadd.xlane.f32.xlu0 %v3730_v4 }
 0x409   :  { %v1181_v54 = vpop.xlane.xlu1 %1180  ;;  %v796_v25 = vpop.xlane.xlu0 %795 }
 0x40a   :  { %v1198_v8 = vsub.f32 %v3609_v34, %v1181_v54  ;;  %2306 = vrcp.f32 %v796_v25  ;;  %v4134_v34 = vld [vmem:[#allocation36_spill] sm:$0xff] }
 0x40b   :  { %2308 = vrcp.f32 %v4131_v62  ;;  %v551_v26 = vmul.f32 %v2305_v31, %v4134_v34 }
 0x40c   :  { %v1228_v28 = vmul.f32 1.442695, %v1198_v8  ;;  %v4140_v8 = vld [vmem:[#allocation37_spill] sm:$0xff] }
 0x40d   :  { %v1618_v33 = vpop.xlane.xlu1 %1617  ;;  %v800_v14 = vpop.xlane.xlu0 %799 }
 0x40e   :  { %2310 = vpow2.f32 %v1228_v28  ;;  %v1635_v25 = vsub.f32 %v3621_v2, %v1618_v33  ;;  %v4142_v33 = vld [vmem:[#allocation40_spill] sm:$0xff] }
 0x40f   :  { %2312 = vrcp.f32 %v800_v14 }
 0x410   :  { %2314 = vrcp.f32 %v4132_v55  ;;  %v1665_v55 = vmul.f32 1.442695, %v1635_v25  ;;  %v4152_v25 = vld [vmem:[#allocation47_spill] sm:$0xff] }
 0x411   :  { %v1620_v16 = vpop.xlane.xlu1 %1619  ;;  %v802_v47 = vpop.xlane.xlu0 %801 }
 0x412   :  { %v1636_v23 = vsub.f32 %v3629_v0, %v1620_v16  ;;  %2316 = vrcp.f32 %v802_v47  ;;  %v4141_v47 = vld [vmem:[#allocation20_spill] sm:$0xff] }
 0x413   :  { %2318 = vrcp.f32 %v4133_v57  ;;  %v4145_v57 = vld [vmem:[#allocation42_spill] sm:$0xff] }
 0x414   :  { %v2307_v9 = vpop.eup %2306  ;;  %v1667_v29 = vmul.f32 1.442695, %v1636_v23  ;;  %v4143_v23 = vpack.c.bf16 %v3595_v36, %v3593_v39 }
 0x415   :  { %v1724_v56 = vpop.permute.xlu1 %1723  ;;  %v804_v63 = vpop.xlane.xlu0 %803  ;;  %v972_v40 = vmul.f32 %v2307_v9, %v3613_v46  ;;  %v4137_v46 = vpack.c.bf16 %v3511_v50, %v3515_v58 }
 0x416   :  { %2320 = vpow2.f32 %v1667_v29  ;;  %2137 = vmatprep.subr.bf16.mxu1 %v1724_v56  ;;  %v2309_v27 = vpop.eup %2308  ;;  %v4144_v29 = vld [vmem:[#allocation21_spill] sm:$0xff] }
 0x417   :  { %2322 = vrcp.f32 %v804_v63  ;;  %2138 = vmatpush3.bf16.msra.mxu1 %v1724_v56  ;;  %v3743_v0 = vadd.f32 %v972_v40, %v551_v26  ;;  %v553_v24 = vmul.f32 %v2309_v27, %v4136_v20  ;;  %v4147_v63 = vld [vmem:[#allocation39_spill] sm:$0xff] }
 0x418   :  { %v2311_v13 = vpop.eup %2310  ;;  %2324 = vrcp.f32 %v4135_v53 }
 0x419   :  { %v2313_v43 = vpop.eup %2312  ;;  %1260 = vadd.xlane.f32.xlu1 %v2311_v13  ;;  %v806_v44 = vpop.xlane.xlu0 %805  ;;  %v1271_v52 = vpack.c.bf16 %v2301_v21, %v2311_v13 }
 0x41a   :  { %2326 = vrcp.f32 %v806_v44  ;;  %2140 = vmatmul.mubr.bf16.vlgmr.msra.gmra.mrb[16].mxu1 %v4137_v46  ;;  %v974_v32 = vmul.f32 %v2313_v43, %v3605_v11  ;;  %v2315_v17 = vpop.eup %2314  ;;  %v4149_v44 = vld [vmem:[#allocation41_spill] sm:$0xff] }
 0x41b   :  { %2120 = vmatmul.mubr.bf16.gmra.mrb[28].mxu0 %v1271_v52  ;;  %2143 = vmatprep.mubr.bf16.mxu1 %v4138_v60  ;;  %2328 = vrcp.f32 %v4139_v30  ;;  %v554_v28 = vmul.f32 %v2315_v17, %v4140_v8  ;;  %v4150_v46 = vld [vmem:[#allocation9_spill] sm:$0xff] }
 0x41c   :  { %v3755_v54 = vadd.f32 %v974_v32, %v553_v24  ;;  %v2317_v21 = vpop.eup %2316  ;;  %2330 = vpow2.f32 %v1661_v51  ;;  %v4148_v51 = vld [vmem:[#allocation23_spill] sm:$0xff]  ;;  %v4151_v32 = vld [vmem:[#allocation48_spill] sm:$0xff] }
 0x41d   :  { %1669 = vadd.xlane.f32.xlu1 %v3449_v10  ;;  %v808_v50 = vpop.xlane.xlu0 %807  ;;  %v975_v11 = vmul.f32 %v2317_v21, %v3615_v7  ;;  %v2319_v62 = vpop.eup %2318 }
 0x41e   :  { %2332 = vrcp.f32 %v808_v50  ;;  %v555_v10 = vmul.f32 %v2319_v62, %v4142_v33 }
 0x41f   :  { %v3761_v14 = vadd.f32 %v975_v11, %v554_v28  ;;  %2334 = vrcp.f32 %v4141_v47 }
 0x420   :  { %v2321_v6 = vpop.eup %2320 }
 0x421   :  { %v2323_v16 = vpop.eup %2322  ;;  %1673 = vadd.xlane.f32.xlu1 %v3515_v58  ;;  %1699 = vadd.xlane.f32.xlu0 %v2321_v6  ;;  %v810_v2 = vpop.xlane.xlu0 %809 }
 0x422   :  { %2336 = vrcp.f32 %v810_v2  ;;  %2144 = vmatmul.mubr.bf16.gmra.mrb[20].mxu1 %v4143_v23  ;;  %v976_v7 = vmul.f32 %v2323_v16, %v3633_v22  ;;  %v2325_v31 = vpop.eup %2324  ;;  %v4154_v2 = vld [vmem:[#allocation53_spill] sm:$0xff] }
 0x423   :  { %2147 = vmatprep.mubr.bf16.mxu1 %v1705_v12  ;;  %2338 = vrcp.f32 %v4144_v29  ;;  %v556_v34 = vmul.f32 %v2325_v31, %v4145_v57  ;;  %v4146_v12 = vld [vmem:[#allocation22_spill] sm:$0xff]  ;;  %v4156_v31 = vld [vmem:[#allocation29_spill] sm:$0xff]  ;;  %v4157_v29 = vld [vmem:[#allocation31_spill] sm:$0xff] }
 0x424   :  { %v2327_v9 = vpop.eup %2326  ;;  %v3774_v58 = vadd.f32 %v976_v7, %v555_v10  ;;  %2340 = vpow2.f32 %v1665_v55 }
 0x425   :  { %1677 = vadd.xlane.f32.xlu1 %v3513_v49  ;;  %v814_v26 = vpop.xlane.xlu0 %813  ;;  %v977_v36 = vmul.f32 %v2327_v9, %v3637_v45  ;;  %v2329_v35 = vpop.eup %2328 }
 0x426   :  { %2342 = vrcp.f32 %v814_v26  ;;  %v2331_v22 = vpop.eup %2330  ;;  %v557_v40 = vmul.f32 %v2329_v35, %v4147_v63  ;;  %v4158_v26 = vld [vmem:[#allocation33_spill] sm:$0xff] }
 0x427   :  { %v3779_v56 = vadd.f32 %v977_v36, %v556_v34  ;;  %2344 = vrcp.f32 %v4146_v12  ;;  %v1707_v13 = vpack.c.bf16 %v3730_v4, %v2331_v22  ;;  %v4159_v36 = vld [vmem:[#allocation4_spill] sm:$0xff] }
 0x428   :  { %v2333_v1 = vpop.eup %2332 }
 0x429   :  { %1681 = vadd.xlane.f32.xlu1 %v3593_v39  ;;  %v818_v27 = vpop.xlane.xlu0 %817  ;;  %v978_v49 = vmul.f32 %v2333_v1, %v3625_v18  ;;  %v2335_v45 = vpop.eup %2334 }
 0x42a   :  { %2346 = vrcp.f32 %v818_v27  ;;  %2148 = vmatmul.mubr.bf16.gmra.mrb[24].mxu1 %v1706_v42  ;;  %v558_v52 = vmul.f32 %v2335_v45, %v4149_v44  ;;  %v4161_v27 = vld [vmem:[#allocation34_spill] sm:$0xff] }
 0x42b   :  { %2151 = vmatprep.mubr.bf16.mxu1 %v1707_v13  ;;  %v3789_v43 = vadd.f32 %v978_v49, %v557_v40  ;;  %2348 = vrcp.f32 %v4148_v51  ;;  %v4162_v13 = vld [vmem:[#allocation46_spill] sm:$0xff] }
 0x42c   :  { %v2337_v53 = vpop.eup %2336 }
 0x42d   :  { %1685 = vadd.xlane.f32.xlu1 %v3662_v19  ;;  %v822_v39 = vpop.xlane.xlu0 %821  ;;  %v979_v4 = vmul.f32 %v2337_v53, %v3635_v37  ;;  %v2339_v18 = vpop.eup %2338  ;;  %v4163_v53 = vld [vmem:[#allocation8_spill] sm:$0xff] }
 0x42e   :  { %2350 = vrcp.f32 %v822_v39  ;;  %v2341_v20 = vpop.eup %2340  ;;  %v560_v60 = vmul.f32 %v2339_v18, %v4151_v32 }
 0x42f   :  { %v3795_v24 = vadd.f32 %v979_v4, %v558_v52  ;;  %v1708_v42 = vpack.c.bf16 %v2321_v6, %v2341_v20  ;;  %2352 = vrcp.f32 %v4150_v46  ;;  %v4153_v6 = vld [vmem:[#allocation54_spill] sm:$0xff]  ;;  %v4164_v4 = vld [vmem:[#allocation44_spill] sm:$0xff] }
 0x430   :  { %v2343_v15 = vpop.eup %2342 }
 0x431   :  { %1689 = vadd.xlane.f32.xlu1 %v3708_v41  ;;  %v826_v17 = vpop.xlane.xlu0 %825  ;;  %v981_v30 = vmul.f32 %v2343_v15, %v3649_v38  ;;  %v2345_v19 = vpop.eup %2344 }
 0x432   :  { %2354 = vrcp.f32 %v826_v17  ;;  %2152 = vmatmul.mubr.bf16.gmra.mrb[28].mxu1 %v1708_v42  ;;  %v562_v50 = vmul.f32 %v2345_v19, %v4152_v25 }
 0x433   :  { %v3801_v37 = vadd.f32 %v981_v30, %v560_v60  ;;  %v4166_v60 = vld [vmem:[#allocation51_spill] sm:$0xff] }
 0x434   :  { %v2347_v21 = vpop.eup %2346 }
 0x435   :  { %1693 = vadd.xlane.f32.xlu1 %v2331_v22  ;;  %v983_v8 = vmul.f32 %v2347_v21, %v3647_v3  ;;  %v2349_v28 = vpop.eup %2348  ;;  %v4155_v3 = vld [vmem:[#allocation17_spill] sm:$0xff]  ;;  %v4160_v22 = vld [vmem:[#allocation12_spill] sm:$0xff] }
 0x436   :  { %v564_v41 = vmul.f32 %v2349_v28, %v4153_v6  ;;  %2356 = vrcp.f32 %v4155_v3 }
 0x437   :  { %v3805_v11 = vadd.f32 %v983_v8, %v562_v50  ;;  %v4167_v50 = vld [vmem:[#allocation50_spill] sm:$0xff] }
 0x438   :  { %v2351_v62 = vpop.eup %2350 }
 0x439   :  { %1697 = vadd.xlane.f32.xlu1 %v2341_v20  ;;  %v985_v38 = vmul.f32 %v2351_v62, %v3680_v5  ;;  %v2353_v16 = vpop.eup %2352  ;;  %v4165_v20 = vld [vmem:[#allocation2_spill] sm:$0xff] }
 0x43a   :  { %v566_v33 = vmul.f32 %v2353_v16, %v4154_v2 }
 0x43b   :  { %v3809_v47 = vadd.f32 %v985_v38, %v564_v41  ;;  %v1235_v41 = vpop.xlane.xlu0 %1234 }
 0x43c   :  { %v2355_v55 = vpop.eup %2354 }
 0x43d   :  { %v987_v10 = vmul.f32 %v2355_v55, %v3678_v48 }
 0x43f   :  { %v3813_v23 = vadd.f32 %v987_v10, %v566_v33  ;;  %v1239_v16 = vpop.xlane.xlu0 %1238 }
 0x440   :  { %v2357_v57 = vpop.eup %2356 }
 0x441   :  { %v552_v48 = vmul.f32 %v2357_v57, %v4159_v36 }
 0x443   :  { %v1243_v2 = vpop.xlane.xlu0 %1242 }
 0x446   :  { %v798_v7 = vpop.xlane.xlu1 %797 }
 0x447   :  { %2358 = vrcp.f32 %v798_v7 }
 0x448   :  { %2360 = vrcp.f32 %v4156_v31 }
 0x44a   :  { %v812_v9 = vpop.xlane.xlu1 %811 }
 0x44b   :  { %2362 = vrcp.f32 %v812_v9 }
 0x44c   :  { %2364 = vrcp.f32 %v4157_v29 }
 0x44e   :  { %v816_v5 = vpop.xlane.xlu1 %815 }
 0x44f   :  { %2366 = vrcp.f32 %v816_v5 }
 0x450   :  { %2368 = vrcp.f32 %v4158_v26 }
 0x451   :  { %v2359_v34 = vpop.eup %2358 }
 0x452   :  { %v820_v35 = vpop.xlane.xlu1 %819  ;;  %v973_v1 = vmul.f32 %v2359_v34, %v4160_v22  ;;  %v2361_v12 = vpop.eup %2360 }
 0x453   :  { %2370 = vrcp.f32 %v820_v35  ;;  %v559_v49 = vmul.f32 %v2361_v12, %v4162_v13 }
 0x454   :  { %v989_v63 = vadd.f32 %v973_v1, %v552_v48  ;;  %2372 = vrcp.f32 %v4161_v27 }
 0x455   :  { %v2363_v40 = vpop.eup %2362 }
 0x456   :  { %v824_v45 = vpop.xlane.xlu1 %823  ;;  %v980_v51 = vmul.f32 %v2363_v40, %v4163_v53  ;;  %v2365_v44 = vpop.eup %2364 }
 0x457   :  { %2374 = vrcp.f32 %v824_v45  ;;  %v561_v18 = vmul.f32 %v2365_v44, %v4164_v4 }
 0x458   :  { %v3824_v52 = vadd.f32 %v980_v51, %v559_v49 }
 0x459   :  { %v2367_v39 = vpop.eup %2366 }
 0x45a   :  { %v982_v15 = vmul.f32 %v2367_v39, %v4165_v20  ;;  %v2369_v42 = vpop.eup %2368  ;;  %v1233_v6 = vpop.xlane.xlu1 %1232 }
 0x45b   :  { %v563_v17 = vmul.f32 %v2369_v42, %v4166_v60 }
 0x45c   :  { %v3828_v46 = vadd.f32 %v982_v15, %v561_v18 }
 0x45d   :  { %v2371_v32 = vpop.eup %2370 }
 0x45e   :  { %v984_v30 = vmul.f32 %v2371_v32, %v3674_v61  ;;  %v2373_v19 = vpop.eup %2372  ;;  %v1237_v38 = vpop.xlane.xlu1 %1236 }
 0x45f   :  { %v565_v8 = vmul.f32 %v2373_v19, %v4167_v50  ;;  %2376 = vrcp.f32 %v1237_v38  ;;  %v1247_v61 = vpop.xlane.xlu0 %1246 }
 0x460   :  { %v3832_v21 = vadd.f32 %v984_v30, %v563_v17  ;;  %2378 = vrcp.f32 %v1233_v6 }
 0x461   :  { %v2375_v25 = vpop.eup %2374  ;;  %2380 = vrcp.f32 %v1239_v16 }
 0x462   :  { %v986_v28 = vmul.f32 %v2375_v25, %v3672_v59  ;;  %v1241_v55 = vpop.xlane.xlu1 %1240  ;;  %2382 = vrcp.f32 %v1235_v41 }
 0x463   :  { %v1251_v3 = vpop.xlane.xlu0 %1250 }
 0x464   :  { %v3836_v62 = vadd.f32 %v986_v28, %v565_v8 }
 0x466   :  { %v1245_v33 = vpop.xlane.xlu1 %1244 }
 0x467   :  { %2384 = vrcp.f32 %v1245_v33  ;;  %v1255_v40 = vpop.xlane.xlu0 %1254 }
 0x468   :  { %2386 = vrcp.f32 %v1241_v55 }
 0x469   :  { %v2377_v7 = vpop.eup %2376  ;;  %2388 = vrcp.f32 %v1247_v61 }
 0x46a   :  { %v1249_v10 = vpop.xlane.xlu1 %1248  ;;  %v2379_v31 = vpop.eup %2378  ;;  %2390 = vrcp.f32 %v1243_v2 }
 0x46b   :  { %v2381_v5 = vpop.eup %2380 }
 0x46c   :  { %v2383_v26 = vpop.eup %2382 }
 0x46e   :  { %v1253_v36 = vpop.xlane.xlu1 %1252 }
 0x46f   :  { %2392 = vrcp.f32 %v1253_v36 }
 0x470   :  { %2394 = vrcp.f32 %v1249_v10 }
 0x471   :  { %v2385_v49 = vpop.eup %2384  ;;  %2396 = vrcp.f32 %v1255_v40  ;;  %v1259_v60 = vpop.xlane.xlu0 %1258 }
 0x472   :  { %v2387_v53 = vpop.eup %2386  ;;  %2398 = vrcp.f32 %v1251_v3  ;;  %v1257_v30 = vpop.xlane.xlu1 %1256 }
 0x473   :  { %v2389_v44 = vpop.eup %2388  ;;  %2400 = vrcp.f32 %v1257_v30 }
 0x474   :  { %v2391_v4 = vpop.eup %2390 }
 0x475   :  { %v1263_v2 = vpop.xlane.xlu0 %1262 }
 0x476   :  { %2402 = vrcp.f32 %v1263_v2 }
 0x479   :  { %v2393_v17 = vpop.eup %2392  ;;  %v1672_v3 = vpop.xlane.xlu0 %1671 }
 0x47a   :  { %v2395_v25 = vpop.eup %2394 }
 0x47b   :  { %v2397_v8 = vpop.eup %2396 }
 0x47c   :  { %v2399_v41 = vpop.eup %2398 }
 0x4a6   :  { %v1261_v16 = vpop.xlane.xlu1 %1260 }
 0x4a7   :  { %2404 = vrcp.f32 %v1261_v16 }
 0x4aa   :  { %v1670_v10 = vpop.xlane.xlu1 %1669 }
 0x4b4   :  { %v2109_v59 = vpop.f32.mrb[16].mxu0 }
 0x4b5   :  { %v1411_v9 = vmul.f32 %v2377_v7, %v2109_v59  ;;  %v1330_v29 = vpop.f32.mrb[17].mxu0  ;;  %v1674_v7 = vpop.xlane.xlu1 %1673 }
 0x4b6   :  { %v1409_v57 = vmul.f32 %v2379_v31, %v1330_v29  ;;  %v2110_v34 = vpop.f32.mrb[18].mxu0  ;;  %v1676_v59 = vpop.xlane.xlu0 %1675  ;;  %2406 = vrcp.f32 %v1674_v7 }
 0x4b7   :  { %v3839_v48 = vadd.f32 %v1411_v9, %v3755_v54  ;;  %v1412_v35 = vmul.f32 %v2381_v5, %v2110_v34  ;;  %v1333_v22 = vpop.f32.mrb[19].mxu0  ;;  %2408 = vrcp.f32 %v1670_v10 }
 0x4b8   :  { %v3842_v1 = vadd.f32 %v1409_v57, %v3743_v0  ;;  %v1410_v12 = vmul.f32 %v2383_v26, %v1333_v22  ;;  %2410 = vrcp.f32 %v1676_v59 }
 0x4b9   :  { %v3845_v27 = vadd.f32 %v1412_v35, %v3761_v14  ;;  %2412 = vrcp.f32 %v1672_v3 }
 0x4ba   :  { %v3847_v13 = vadd.f32 %v1410_v12, %v989_v63  ;;  %v1680_v31 = vpop.xlane.xlu0 %1679  ;;  %2414 = vrcp.f32 %v1259_v60 }
 0x4bc   :  { %v2113_v45 = vpop.f32.mrb[20].mxu0 }
 0x4bd   :  { %v1415_v54 = vmul.f32 %v2385_v49, %v2113_v45  ;;  %v1346_v51 = vpop.f32.mrb[21].mxu0 }
 0x4be   :  { %v1413_v39 = vmul.f32 %v2387_v53, %v1346_v51  ;;  %v2114_v0 = vpop.f32.mrb[22].mxu0  ;;  %v1684_v29 = vpop.xlane.xlu0 %1683 }
 0x4bf   :  { %v3850_v18 = vadd.f32 %v1415_v54, %v3789_v43  ;;  %v1416_v14 = vmul.f32 %v2389_v44, %v2114_v0  ;;  %v1349_v20 = vpop.f32.mrb[23].mxu0 }
 0x4c0   :  { %v3853_v63 = vadd.f32 %v1413_v39, %v3774_v58  ;;  %v1414_v15 = vmul.f32 %v2391_v4, %v1349_v20 }
 0x4c1   :  { %v3856_v42 = vadd.f32 %v1416_v14, %v3795_v24 }
 0x4c2   :  { %v3859_v32 = vadd.f32 %v1414_v15, %v3779_v56 }
 0x4c4   :  { %v2117_v19 = vpop.f32.mrb[24].mxu0 }
 0x4c5   :  { %v1419_v50 = vmul.f32 %v2393_v17, %v2117_v19  ;;  %v1362_v43 = vpop.f32.mrb[25].mxu0  ;;  %v3877_v17 = vld [vmem:[%s3990_s3] ss:$0 sm:$0xff] }
 0x4c6   :  { %v1417_v28 = vmul.f32 %v2395_v25, %v1362_v43  ;;  %v2118_v6 = vpop.f32.mrb[26].mxu0 }
 0x4c7   :  { %v3862_v58 = vadd.f32 %v1419_v50, %v3828_v46  ;;  %v1420_v38 = vmul.f32 %v2397_v8, %v2118_v6  ;;  %v1365_v24 = vpop.f32.mrb[27].mxu0  ;;  %v1678_v46 = vpop.xlane.xlu1 %1677 }
 0x4c8   :  { %v3865_v56 = vadd.f32 %v1417_v28, %v3824_v52  ;;  %v1418_v55 = vmul.f32 %v2399_v41, %v1365_v24  ;;  %v1688_v52 = vpop.xlane.xlu0 %1687 }
 0x4c9   :  { %v3868_v33 = vadd.f32 %v1420_v38, %v3805_v11 }
 0x4ca   :  { %v3871_v61 = vadd.f32 %v1418_v55, %v3801_v37  ;;  %v2401_v37 = vpop.eup %2400 }
 0x4cb   :  { %v1682_v9 = vpop.xlane.xlu1 %1681  ;;  %v2403_v5 = vpop.eup %2402 }
 0x4cc   :  { %2416 = vrcp.f32 %v1682_v9  ;;  %v2405_v57 = vpop.eup %2404  ;;  %v1692_v36 = vpop.xlane.xlu0 %1691 }
 0x4cd   :  { %2418 = vrcp.f32 %v1678_v46  ;;  %v2407_v26 = vpop.eup %2406 }
 0x4ce   :  { %2420 = vrcp.f32 %v1684_v29  ;;  %v2409_v22 = vpop.eup %2408 }
 0x4cf   :  { %v1686_v11 = vpop.xlane.xlu1 %1685  ;;  %2422 = vrcp.f32 %v1680_v31  ;;  %v2411_v45 = vpop.eup %2410 }
 0x4d0   :  { %v2413_v39 = vpop.eup %2412 }
 0x4d1   :  { %v2415_v60 = vpop.eup %2414 }
 0x4d3   :  { %v1690_v34 = vpop.xlane.xlu1 %1689 }
 0x4d4   :  { %2424 = vrcp.f32 %v1690_v34 }
 0x4d5   :  { %2426 = vrcp.f32 %v1686_v11 }
 0x4d6   :  { %v2417_v2 = vpop.eup %2416  ;;  %2428 = vrcp.f32 %v1692_v36 }
 0x4d7   :  { %v1694_v8 = vpop.xlane.xlu1 %1693  ;;  %v2419_v3 = vpop.eup %2418  ;;  %2430 = vrcp.f32 %v1688_v52 }
 0x4d8   :  { %v2421_v31 = vpop.eup %2420 }
 0x4ed   :  { %v2141_v35 = vpop.f32.mrb[16].mxu1 }
 0x4ee   :  { %v1848_v12 = vmul.f32 %v2407_v26, %v2141_v35  ;;  %v2121_v40 = vpop.f32.mrb[28].mxu0  ;;  %v1767_v49 = vpop.f32.mrb[17].mxu1 }
 0x4ef   :  { %v1423_v53 = vmul.f32 %v2405_v57, %v2121_v40  ;;  %v1846_v54 = vmul.f32 %v2409_v22, %v1767_v49  ;;  %v1378_v51 = vpop.f32.mrb[29].mxu0  ;;  %v2142_v44 = vpop.f32.mrb[18].mxu1 }
 0x4f0   :  { %v1864_v0 = vadd.f32 %v1848_v12, %v3839_v48  ;;  %v1421_v4 = vmul.f32 %v2401_v37, %v1378_v51  ;;  %v1849_v14 = vmul.f32 %v2411_v45, %v2142_v44  ;;  %v2122_v20 = vpop.f32.mrb[30].mxu0  ;;  %v1770_v15 = vpop.f32.mrb[19].mxu1 }
 0x4f1   :  { %v3880_v30 = vadd.f32 %v1423_v53, %v3836_v62  ;;  %v1862_v19 = vadd.f32 %v1846_v54, %v3842_v1  ;;  %v1424_v25 = vmul.f32 %v2403_v5, %v2122_v20  ;;  %v1847_v50 = vmul.f32 %v2413_v39, %v1770_v15  ;;  %v1381_v43 = vpop.f32.mrb[31].mxu0  ;;  %v2423_v37 = vpop.eup %2422 }
 0x4f2   :  { %v1880_v48 = vmul.f32 0.25, %v1864_v0  ;;  %v3884_v28 = vadd.f32 %v1421_v4, %v3832_v21  ;;  %v1865_v6 = vadd.f32 %v1849_v14, %v3845_v27  ;;  %v1422_v41 = vmul.f32 %v2415_v60, %v1381_v43  ;;  %v1698_v5 = vpop.xlane.xlu1 %1697  ;;  %v2425_v54 = vpop.eup %2424 }
 0x4f3   :  { %v1878_v38 = vmul.f32 0.25, %v1862_v19  ;;  %v3888_v24 = vadd.f32 %v1424_v25, %v3813_v23  ;;  %v1863_v62 = vadd.f32 %v1847_v50, %v3847_v13  ;;  %v1696_v23 = vpop.xlane.xlu0 %1695  ;;  %2432 = vrcp.f32 %v1698_v5 }
 0x4f4   :  { %v1903_v1 = vadd.f32 %v3877_v17, %v1880_v48  ;;  %v1881_v16 = vmul.f32 0.25, %v1865_v6  ;;  %v3893_v55 = vadd.f32 %v1422_v41, %v3809_v47  ;;  %2434 = vrcp.f32 %v1694_v8 }
 0x4f5   :  { %v1901_v21 = vadd.f32 %v3877_v17, %v1878_v38  ;;  %v1879_v27 = vmul.f32 0.25, %v1863_v62  ;;  %v2145_v10 = vpop.f32.mrb[20].mxu1 }
 0x4f6   :  { %v1919_v7 = vmax.f32 %v1903_v1, 0.0  ;;  %v1904_v13 = vadd.f32 %v3877_v17, %v1881_v16  ;;  %v1852_v59 = vmul.f32 %v2417_v2, %v2145_v10  ;;  %v1783_v46 = vpop.f32.mrb[21].mxu1 }
 0x4f7   :  { %v1917_v9 = vmax.f32 %v1901_v21, 0.0  ;;  %v1902_v47 = vadd.f32 %v3877_v17, %v1879_v27  ;;  %v1850_v29 = vmul.f32 %v2419_v3, %v1783_v46  ;;  %v2146_v11 = vpop.f32.mrb[22].mxu1  ;;  %v1700_v12 = vpop.xlane.xlu0 %1699 }
 0x4f8   :  { %1936 = vst.msk [vmem:[%s3991_s5 + $0x10] sm:$0xff] %vm1933_vm15, %v1919_v7  ;;  %v1920_v52 = vmax.f32 %v1904_v13, 0.0  ;;  %v1868_v57 = vadd.f32 %v1852_v59, %v3850_v18  ;;  %v1853_v34 = vmul.f32 %v2421_v31, %v2146_v11  ;;  %v1786_v26 = vpop.f32.mrb[23].mxu1  ;;  %2436 = vrcp.f32 %v1700_v12 }
 0x4f9   :  { %1934 = vst.msk [vmem:[%s3991_s5] sm:$0xff] %vm1933_vm15, %v1917_v9  ;;  %v1918_v36 = vmax.f32 %v1902_v47, 0.0  ;;  %v1866_v35 = vadd.f32 %v1850_v29, %v3853_v63  ;;  %v1851_v22 = vmul.f32 %v2423_v37, %v1786_v26  ;;  %2438 = vrcp.f32 %v1696_v23 }
 0x4fa   :  { %1937 = vst.msk [vmem:[%s3991_s5 + $0x18] sm:$0xff] %vm1933_vm15, %v1920_v52  ;;  %v1884_v40 = vmul.f32 0.25, %v1868_v57  ;;  %v1869_v18 = vadd.f32 %v1853_v34, %v3856_v42  ;;  %v2427_v42 = vpop.eup %2426 }
 0x4fb   :  { %1935 = vst.msk [vmem:[%s3991_s5 + $0x8] sm:$0xff] %vm1933_vm15, %v1918_v36  ;;  %v1882_v49 = vmul.f32 0.25, %v1866_v35  ;;  %v1867_v45 = vadd.f32 %v1851_v22, %v3859_v32  ;;  %v2429_v15 = vpop.eup %2428 }
 0x4fc   :  { %v1907_v63 = vadd.f32 %v3877_v17, %v1884_v40  ;;  %v1885_v53 = vmul.f32 0.25, %v1869_v18  ;;  %v2431_v50 = vpop.eup %2430 }
 0x4fd   :  { %v1905_v51 = vadd.f32 %v3877_v17, %v1882_v49  ;;  %v1883_v44 = vmul.f32 0.25, %v1867_v45  ;;  %v2149_v39 = vpop.f32.mrb[24].mxu1  ;;  %v2433_v27 = vpop.eup %2432 }
 0x4fe   :  { %v1923_v0 = vmax.f32 %v1907_v63, 0.0  ;;  %v1908_v4 = vadd.f32 %v3877_v17, %v1885_v53  ;;  %v1856_v14 = vmul.f32 %v2425_v54, %v2149_v39  ;;  %v1799_v20 = vpop.f32.mrb[25].mxu1  ;;  %v2435_v7 = vpop.eup %2434 }
 0x4ff   :  { %v1921_v60 = vmax.f32 %v1905_v51, 0.0  ;;  %v1906_v32 = vadd.f32 %v3877_v17, %v1883_v44  ;;  %v1854_v19 = vmul.f32 %v2427_v42, %v1799_v20  ;;  %v2150_v25 = vpop.f32.mrb[26].mxu1 }
 0x500   :  { %1940 = vst.msk [vmem:[%s3991_s5 + $0x30] sm:$0xff] %vm1933_vm15, %v1923_v0  ;;  %v1924_v43 = vmax.f32 %v1908_v4, 0.0  ;;  %v1872_v8 = vadd.f32 %v1856_v14, %v3862_v58  ;;  %v1857_v48 = vmul.f32 %v2429_v15, %v2150_v25  ;;  %v1802_v6 = vpop.f32.mrb[27].mxu1 }
 0x501   :  { %1938 = vst.msk [vmem:[%s3991_s5 + $0x20] sm:$0xff] %vm1933_vm15, %v1921_v60  ;;  %v1922_v41 = vmax.f32 %v1906_v32, 0.0  ;;  %v1870_v38 = vadd.f32 %v1854_v19, %v3865_v56  ;;  %v1855_v62 = vmul.f32 %v2431_v50, %v1802_v6 }
 0x502   :  { %1941 = vst.msk [vmem:[%s3991_s5 + $0x38] sm:$0xff] %vm1933_vm15, %v1924_v43  ;;  %v1888_v1 = vmul.f32 0.25, %v1872_v8  ;;  %v1873_v16 = vadd.f32 %v1857_v48, %v3868_v33  ;;  %v2437_v31 = vpop.eup %2436 }
 0x503   :  { %1939 = vst.msk [vmem:[%s3991_s5 + $0x28] sm:$0xff] %vm1933_vm15, %v1922_v41  ;;  %v1886_v58 = vmul.f32 0.25, %v1870_v38  ;;  %v1871_v2 = vadd.f32 %v1855_v62, %v3871_v61  ;;  %v2439_v11 = vpop.eup %2438 }
 0x504   :  { %v1911_v21 = vadd.f32 %v3877_v17, %v1888_v1  ;;  %v1889_v56 = vmul.f32 0.25, %v1873_v16 }
 0x505   :  { %v1909_v10 = vadd.f32 %v3877_v17, %v1886_v58  ;;  %v1887_v3 = vmul.f32 0.25, %v1871_v2  ;;  %v2153_v23 = vpop.f32.mrb[28].mxu1 }
 0x506   :  { %v1927_v13 = vmax.f32 %v1911_v21, 0.0  ;;  %v1912_v33 = vadd.f32 %v3877_v17, %v1889_v56  ;;  %v1860_v59 = vmul.f32 %v2433_v27, %v2153_v23  ;;  %v1815_v46 = vpop.f32.mrb[29].mxu1 }
 0x507   :  { %v1925_v9 = vmax.f32 %v1909_v10, 0.0  ;;  %v1910_v47 = vadd.f32 %v3877_v17, %v1887_v3  ;;  %v1858_v29 = vmul.f32 %v2435_v7, %v1815_v46  ;;  %v2154_v61 = vpop.f32.mrb[30].mxu1 }
 0x508   :  { %1944 = vst.msk [vmem:[%s3991_s5 + $0x50] sm:$0xff] %vm1933_vm15, %v1927_v13  ;;  %v1928_v37 = vmax.f32 %v1912_v33, 0.0  ;;  %v1876_v5 = vadd.f32 %v1860_v59, %v3880_v30  ;;  %v1861_v52 = vmul.f32 %v2437_v31, %v2154_v61  ;;  %v1818_v57 = vpop.f32.mrb[31].mxu1 }
 0x509   :  { %1942 = vst.msk [vmem:[%s3991_s5 + $0x40] sm:$0xff] %vm1933_vm15, %v1925_v9  ;;  %v1926_v34 = vmax.f32 %v1910_v47, 0.0  ;;  %v1874_v26 = vadd.f32 %v1858_v29, %v3884_v28  ;;  %v1859_v36 = vmul.f32 %v2439_v11, %v1818_v57 }
 0x50a   :  { %1945 = vst.msk [vmem:[%s3991_s5 + $0x58] sm:$0xff] %vm1933_vm15, %v1928_v37  ;;  %v1892_v35 = vmul.f32 0.25, %v1876_v5  ;;  %v1877_v22 = vadd.f32 %v1861_v52, %v3888_v24 }
 0x50b   :  { %1943 = vst.msk [vmem:[%s3991_s5 + $0x48] sm:$0xff] %vm1933_vm15, %v1926_v34  ;;  %v1890_v30 = vmul.f32 0.25, %v1874_v26  ;;  %v1875_v12 = vadd.f32 %v1859_v36, %v3893_v55 }
 0x50c   :  { %v1915_v40 = vadd.f32 %v3877_v17, %v1892_v35  ;;  %v1893_v28 = vmul.f32 0.25, %v1877_v22 }
 0x50d   :  { %v1913_v18 = vadd.f32 %v3877_v17, %v1890_v30  ;;  %v1891_v49 = vmul.f32 0.25, %v1875_v12 }
 0x50e   :  { %v1931_v45 = vmax.f32 %v1915_v40, 0.0  ;;  %v1916_v63 = vadd.f32 %v3877_v17, %v1893_v28 }
 0x50f   :  { %v1929_v53 = vmax.f32 %v1913_v18, 0.0  ;;  %v1914_v24 = vadd.f32 %v3877_v17, %v1891_v49 }
 0x510   :  { %1948 = vst.msk [vmem:[%s3991_s5 + $0x70] sm:$0xff] %vm1933_vm15, %v1931_v45  ;;  %v1932_v54 = vmax.f32 %v1916_v63, 0.0 }
 0x511   :  { %1946 = vst.msk [vmem:[%s3991_s5 + $0x60] sm:$0xff] %vm1933_vm15, %v1929_v53  ;;  %v1930_v55 = vmax.f32 %v1914_v24, 0.0 }
 0x512   :  { %1949 = vst.msk [vmem:[%s3991_s5 + $0x78] sm:$0xff] %vm1933_vm15, %v1932_v54 }
 0x513   :  { %1947 = vst.msk [vmem:[%s3991_s5 + $0x68] sm:$0xff] %vm1933_vm15, %v1930_v55 }

</bundles_post_ra>
